<compile_context>
chip_gen: v5e
topology: v5e:2x2
jax: 0.10.0
libtpu: 0.0.40
codegen_flags: <defaults>
</compile_context>

<pallas_src>
import jax
import jax.numpy as jnp
from jax.experimental import pallas as pl
from jax.experimental.pallas import tpu as pltpu

LANE = 128
VMEM_LIMIT = 32 * 1024 * 1024  # safe on v5e/v6e (128 MiB) and v7x (64 MiB)


def _round_up(x, m):
    return (x + m - 1) // m * m


def _pick_tile(n_pad, cap):
    """Largest power-of-two tile <= cap that divides n_pad (n_pad % 128 == 0)."""
    t = LANE
    while t * 2 <= cap and n_pad % (t * 2) == 0:
        t *= 2
    return t


def _pad2d(a, rows, cols, dtype):
    a = a.astype(dtype)
    pr, pc = rows - a.shape[0], cols - a.shape[1]
    if pr or pc:
        a = jnp.pad(a, ((0, pr), (0, pc)))
    return a


# ----------------------------------------------------------------------------
# Support kernel: s = (relu?(x)) @ W   -> bf16 output, f32 MXU accumulation
# ----------------------------------------------------------------------------
def _make_support_kernel(apply_relu):
    def kernel(x_ref, w_ref, out_ref):
        xv = x_ref[...]
        if apply_relu:
            xv = jnp.maximum(xv, 0.0)  # relu of previous layer, fused on read
        s = jnp.dot(xv.astype(jnp.bfloat16), w_ref[...],
                    preferred_element_type=jnp.float32)
        out_ref[...] = s.astype(jnp.bfloat16)
    return kernel


def _support(x, w, *, apply_relu, tm):
    n, f = x.shape
    h = w.shape[1]
    return pl.pallas_call(
        _make_support_kernel(apply_relu),
        out_shape=jax.ShapeDtypeStruct((n, h), jnp.bfloat16),
        grid=(n // tm,),
        in_specs=[pl.BlockSpec((tm, f), lambda i: (i, 0)),
                  pl.BlockSpec((f, h), lambda i: (0, 0))],
        out_specs=pl.BlockSpec((tm, h), lambda i: (i, 0)),
        compiler_params=pltpu.CompilerParams(
            dimension_semantics=("parallel",),
            vmem_limit_bytes=VMEM_LIMIT),
    )(x, w)


# ----------------------------------------------------------------------------
# Aggregate kernel: out = adj @ s + b  (tiled reduction over adj columns)
# ----------------------------------------------------------------------------
def _aggregate_kernel(adj_ref, sup_ref, b_ref, out_ref, acc_ref):
    k = pl.program_id(1)

    @pl.when(k == 0)
    def _():
        acc_ref[...] = jnp.zeros_like(acc_ref)

    acc_ref[...] += jnp.dot(adj_ref[...], sup_ref[...],
                            preferred_element_type=jnp.float32)

    @pl.when(k == pl.num_programs(1) - 1)
    def _():
        out_ref[...] = acc_ref[...] + b_ref[...]


def _make_aggregate_final_kernel(nclass):
    """Same as _aggregate_kernel but with a fused log_softmax(dim=1) epilogue.

    Padded class lanes (>= nclass) are masked to -inf so they do not affect
    the row max / sum; the wrapper slices them away.
    """
    def kernel(adj_ref, sup_ref, b_ref, embed_ref, logp_ref, acc_ref):
        k = pl.program_id(1)

        @pl.when(k == 0)
        def _():
            acc_ref[...] = jnp.zeros_like(acc_ref)

        acc_ref[...] += jnp.dot(adj_ref[...], sup_ref[...],
                                preferred_element_type=jnp.float32)

        @pl.when(k == pl.num_programs(1) - 1)
        def _():
            pre = acc_ref[...] + b_ref[...]
            embed_ref[...] = pre
            lane = jax.lax.broadcasted_iota(jnp.int32, pre.shape, 1)
            masked = jnp.where(lane < nclass, pre, -jnp.inf)
            m = jnp.max(masked, axis=1, keepdims=True)
            s = masked - m
            lse = jnp.log(jnp.sum(jnp.exp(s), axis=1, keepdims=True))
            logp_ref[...] = s - lse
    return kernel


def _aggregate(adj, sup, b, *, tm, tk, nclass=None):
    n = adj.shape[0]
    h = sup.shape[1]
    grid = (n // tm, n // tk)  # reduction axis last
    in_specs = [
        pl.BlockSpec((tm, tk), lambda i, k: (i, k)),   # adj tile
        pl.BlockSpec((tk, h), lambda i, k: (k, 0)),    # support tile
        pl.BlockSpec((1, h), lambda i, k: (0, 0)),     # bias
    ]
    scratch = [pltpu.VMEM((tm, h), jnp.float32)]
    cp = pltpu.CompilerParams(
        dimension_semantics=("parallel", "arbitrary"),
        vmem_limit_bytes=VMEM_LIMIT)

    if nclass is None:
        return pl.pallas_call(
            _aggregate_kernel,
            out_shape=jax.ShapeDtypeStruct((n, h), jnp.float32),
            grid=grid,
            in_specs=in_specs,
            out_specs=pl.BlockSpec((tm, h), lambda i, k: (i, 0)),
            scratch_shapes=scratch,
            compiler_params=cp,
        )(adj, sup, b)

    return pl.pallas_call(
        _make_aggregate_final_kernel(nclass),
        out_shape=(jax.ShapeDtypeStruct((n, h), jnp.float32),   # embed3
                   jax.ShapeDtypeStruct((n, h), jnp.float32)),  # log_softmax
        grid=grid,
        in_specs=in_specs,
        out_specs=(pl.BlockSpec((tm, h), lambda i, k: (i, 0)),
                   pl.BlockSpec((tm, h), lambda i, k: (i, 0))),
        scratch_shapes=scratch,
        compiler_params=cp,
    )(adj, sup, b)


# ----------------------------------------------------------------------------
# Model: GCN_pia2_unlearn forward
# ----------------------------------------------------------------------------
def init_params(key, nfeat, nhid, nclass):
    """Matches GraphConvolution's uniform(-stdv, stdv) init, stdv=1/sqrt(out)."""
    def layer(key, fan_in, fan_out):
        stdv = 1.0 / jnp.sqrt(jnp.float32(fan_out))
        kw, kb = jax.random.split(key)
        w = jax.random.uniform(kw, (fan_in, fan_out), jnp.float32, -stdv, stdv)
        b = jax.random.uniform(kb, (1, fan_out), jnp.float32, -stdv, stdv)
        return w, b

    k1, k2, k3 = jax.random.split(key, 3)
    return {
        "gc1": layer(k1, nfeat, nhid),
        "gc2": layer(k2, nhid, nhid),
        "gc3": layer(k3, nfeat if False else nhid, nclass),
    }


def gcn_pia2_unlearn_forward(params, x, adj):
    n, nfeat = x.shape
    w1, b1 = params["gc1"]
    w2, b2 = params["gc2"]
    w3, b3 = params["gc3"]
    nhid = w1.shape[1]
    nclass = w3.shape[1]

    # Pad everything to lane-dense (multiple-of-128) shapes; zero padding keeps
    # the real region exact (padded adj rows/cols are zero so garbage rows never
    # contaminate real rows).
    n_pad = _round_up(n, LANE)
    f_pad = _round_up(nfeat, LANE)
    h_pad = _round_up(nhid, LANE)
    c_pad = _round_up(nclass, LANE)

    tm = _pick_tile(n_pad, 256)   # output-row tile (parallel axis)
    tk = _pick_tile(n_pad, 512)   # adj-column / reduction tile (arbitrary axis)

    adj_p = _pad2d(adj, n_pad, n_pad, jnp.bfloat16)      # MXU input in bf16
    x_p = _pad2d(x, n_pad, f_pad, jnp.float32)
    w1_p = _pad2d(w1, f_pad, h_pad, jnp.bfloat16)
    w2_p = _pad2d(w2, h_pad, h_pad, jnp.bfloat16)
    w3_p = _pad2d(w3, h_pad, c_pad, jnp.bfloat16)
    b1_p = _pad2d(b1, 1, h_pad, jnp.float32)
    b2_p = _pad2d(b2, 1, h_pad, jnp.float32)
    b3_p = _pad2d(b3, 1, c_pad, jnp.float32)

    # ---- gc1: embed1 = adj @ (x @ W1) + b1
    s1 = _support(x_p, w1_p, apply_relu=False, tm=tm)
    e1 = _aggregate(adj_p, s1, b1_p, tm=tm, tk=tk)

    # relu(embed1) is fused into gc2's support kernel (no extra HBM store).
    # TODO(synk): F.dropout skipped (inference / eval-mode deterministic forward).

    # ---- gc2: embed2 = adj @ (relu(embed1) @ W2) + b2
    s2 = _support(e1, w2_p, apply_relu=True, tm=tm)
    e2 = _aggregate(adj_p, s2, b2_p, tm=tm, tk=tk)

    # ---- gc3 (+ fused log_softmax epilogue)
    s3 = _support(e2, w3_p, apply_relu=True, tm=tm)
    e3, logp = _aggregate(adj_p, s3, b3_p, tm=tm, tk=tk, nclass=nclass)

    return (logp[:n, :nclass], e1[:n, :nhid], e2[:n, :nhid], e3[:n, :nclass])


# ----------------------------------------------------------------------------
# Pure-JAX reference (f32) for a correctness check
# ----------------------------------------------------------------------------
def _reference_forward(params, x, adj):
    w1, b1 = params["gc1"]
    w2, b2 = params["gc2"]
    w3, b3 = params["gc3"]
    h = adj @ (x @ w1) + b1
    e1 = h
    h = jnp.maximum(h, 0.0)
    h = adj @ (h @ w2) + b2
    e2 = h
    h = jnp.maximum(h, 0.0)
    h = adj @ (h @ w3) + b3
    e3 = h
    return jax.nn.log_softmax(h, axis=1), e1, e2, e3


if __name__ == "__main__":
    # Small synthetic graph, sized so the kernel exercises a real (rows, K) grid.
    N, NFEAT, NHID, NCLASS = 1024, 16, 32, 8

    key = jax.random.PRNGKey(0)
    kx, kadj, kparams = jax.random.split(key, 3)

    x = jax.random.normal(kx, (N, NFEAT), dtype=jnp.float32)

    # Symmetric, row-normalized dense adjacency with self-loops.
    a = (jax.random.uniform(kadj, (N, N)) < 0.05).astype(jnp.float32)
    a = jnp.maximum(a, a.T) + jnp.eye(N, dtype=jnp.float32)
    adj = a / jnp.sum(a, axis=1, keepdims=True)

    params = init_params(kparams, NFEAT, NHID, NCLASS)

    fwd = jax.jit(gcn_pia2_unlearn_forward)
    logp, e1, e2, e3 = fwd(params, x, adj)
    jax.block_until_ready((logp, e1, e2, e3))

    assert logp.shape == (N, NCLASS)
    assert e1.shape == (N, NHID)
    assert e2.shape == (N, NHID)
    assert e3.shape == (N, NCLASS)

    # Correctness vs. pure-JAX f32 reference (loose tol: bf16 MXU inputs).
    r_logp, r_e1, r_e2, r_e3 = _reference_forward(params, x, adj)
    for got, ref in ((logp, r_logp), (e1, r_e1), (e2, r_e2), (e3, r_e3)):
        err = float(jnp.max(jnp.abs(got - ref)))
        assert err < 1e-1, f"max abs err too large: {err}"

    print("KERNEL_OK")
</pallas_src>

<mosaic_0001>
module attributes {stable_mosaic.version = 11 : i64} {
  func.func @kernel(%arg0: i32, %arg1: memref<256x128xf32, #tpu.memory_space<vmem>>, %arg2: memref<128x128xbf16, #tpu.memory_space<vmem>>, %arg3: memref<256x128xbf16, #tpu.memory_space<vmem>>) attributes {dimension_semantics = [#tpu.dimension_semantics<parallel>], iteration_bounds = array<i64: 4>, scalar_prefetch = 0 : i64, scratch_operands = 0 : i64, tpu.core_type = #tpu.core_type<tc>, window_params = [{transform_indices = @transform_0, window_bounds = array<i64: 256, 128>}, {pipeline_mode = #tpu.pipeline_mode<synchronous>, transform_indices = @transform_1, window_bounds = array<i64: 128, 128>}, {transform_indices = @transform_2, window_bounds = array<i64: 256, 128>}]} {
    %c0 = arith.constant 0 : index
    %c0_0 = arith.constant 0 : index
    %0 = vector.load %arg1[%c0, %c0_0] : memref<256x128xf32, #tpu.memory_space<vmem>>, vector<256x128xf32>
    %1 = arith.truncf %0 : vector<256x128xf32> to vector<256x128xbf16>
    %c0_1 = arith.constant 0 : index
    %c0_2 = arith.constant 0 : index
    %2 = vector.load %arg2[%c0_1, %c0_2] : memref<128x128xbf16, #tpu.memory_space<vmem>>, vector<128x128xbf16>
    %cst = arith.constant dense<0.000000e+00> : vector<256x128xf32>
    %3 = tpu.matmul %1, %2, %cst {dimension_numbers = #tpu.dot_dimension_numbers<[1], [0], [0], [1], [0, 0, 1, 1], [], []>} : vector<256x128xbf16>, vector<128x128xbf16>, vector<256x128xf32> -> vector<256x128xf32>
    %4 = arith.truncf %3 : vector<256x128xf32> to vector<256x128xbf16>
    %c0_3 = arith.constant 0 : index
    %c0_4 = arith.constant 0 : index
    %5 = vector.load %arg3[%c0_3, %c0_4] : memref<256x128xbf16, #tpu.memory_space<vmem>>, vector<256x128xbf16>
    tpu.vector_store %arg3[%c0_3, %c0_4], %4 {strides = array<i32>} : memref<256x128xbf16, #tpu.memory_space<vmem>>, vector<256x128xbf16>,
    return
  }
  func.func @transform_0(%arg0: i32) -> (i32, i32) {
    %c0_i32 = arith.constant 0 : i32
    %c0_i32_0 = arith.constant 0 : i32
    return %arg0, %c0_i32 : i32, i32
  }
  func.func @transform_1(%arg0: i32) -> (i32, i32) {
    %c0_i32 = arith.constant 0 : i32
    %c0_i32_0 = arith.constant 0 : i32
    %c0_i32_1 = arith.constant 0 : i32
    return %c0_i32, %c0_i32_0 : i32, i32
  }
  func.func @transform_2(%arg0: i32) -> (i32, i32) {
    %c0_i32 = arith.constant 0 : i32
    %c0_i32_0 = arith.constant 0 : i32
    return %arg0, %c0_i32 : i32, i32
  }
}

module attributes {stable_mosaic.version = 11 : i64} {
  func.func @_aggregate_kernel(%arg0: i32, %arg1: i32, %arg2: memref<256x512xbf16, #tpu.memory_space<vmem>>, %arg3: memref<512x128xbf16, #tpu.memory_space<vmem>>, %arg4: memref<1x128xf32, #tpu.memory_space<vmem>>, %arg5: memref<256x128xf32, #tpu.memory_space<vmem>>, %arg6: memref<256x128xf32, #tpu.memory_space<vmem>>) attributes {dimension_semantics = [#tpu.dimension_semantics<parallel>, #tpu.dimension_semantics<arbitrary>], iteration_bounds = array<i64: 4, 2>, scalar_prefetch = 0 : i64, scratch_operands = 1 : i64, tpu.core_type = #tpu.core_type<tc>, window_params = [{transform_indices = @transform_0, window_bounds = array<i64: 256, 512>}, {transform_indices = @transform_1, window_bounds = array<i64: 512, 128>}, {pipeline_mode = #tpu.pipeline_mode<synchronous>, transform_indices = @transform_2, window_bounds = array<i64: 1, 128>}, {transform_indices = @transform_3, window_bounds = array<i64: 256, 128>}]} {
    %c0_i32 = arith.constant 0 : i32
    %0 = arith.cmpi eq, %arg1, %c0_i32 : i32
    %1 = arith.extui %0 : i1 to i32
    %c0_i32_0 = arith.constant 0 : i32
    %2 = arith.cmpi ne, %1, %c0_i32_0 : i32
    scf.if %2 {
      %cst_9 = arith.constant 0.000000e+00 : f32
      %12 = vector.broadcast %cst_9 : f32 to vector<256x128xf32>
      %c0_10 = arith.constant 0 : index
      %c0_11 = arith.constant 0 : index
      %13 = vector.load %arg6[%c0_10, %c0_11] : memref<256x128xf32, #tpu.memory_space<vmem>>, vector<256x128xf32>
      tpu.vector_store %arg6[%c0_10, %c0_11], %12 {strides = array<i32>} : memref<256x128xf32, #tpu.memory_space<vmem>>, vector<256x128xf32>,
    } else {
    }
    %c0 = arith.constant 0 : index
    %c0_1 = arith.constant 0 : index
    %3 = vector.load %arg6[%c0, %c0_1] : memref<256x128xf32, #tpu.memory_space<vmem>>, vector<256x128xf32>
    %c0_2 = arith.constant 0 : index
    %c0_3 = arith.constant 0 : index
    %4 = vector.load %arg2[%c0_2, %c0_3] : memref<256x512xbf16, #tpu.memory_space<vmem>>, vector<256x512xbf16>
    %c0_4 = arith.constant 0 : index
    %c0_5 = arith.constant 0 : index
    %5 = vector.load %arg3[%c0_4, %c0_5] : memref<512x128xbf16, #tpu.memory_space<vmem>>, vector<512x128xbf16>
    %cst = arith.constant dense<0.000000e+00> : vector<256x128xf32>
    %6 = tpu.matmul %4, %5, %cst {dimension_numbers = #tpu.dot_dimension_numbers<[1], [0], [0], [1], [0, 0, 1, 1], [], []>} : vector<256x512xbf16>, vector<512x128xbf16>, vector<256x128xf32> -> vector<256x128xf32>
    %7 = arith.addf %3, %6 : vector<256x128xf32>
    %c0_6 = arith.constant 0 : index
    %c0_7 = arith.constant 0 : index
    %8 = vector.load %arg6[%c0_6, %c0_7] : memref<256x128xf32, #tpu.memory_space<vmem>>, vector<256x128xf32>
    tpu.vector_store %arg6[%c0_6, %c0_7], %7 {strides = array<i32>} : memref<256x128xf32, #tpu.memory_space<vmem>>, vector<256x128xf32>,
    %c1_i32 = arith.constant 1 : i32
    %9 = arith.cmpi eq, %arg1, %c1_i32 : i32
    %10 = arith.extui %9 : i1 to i32
    %c0_i32_8 = arith.constant 0 : i32
    %11 = arith.cmpi ne, %10, %c0_i32_8 : i32
    scf.if %11 {
      %c0_9 = arith.constant 0 : index
      %c0_10 = arith.constant 0 : index
      %12 = vector.load %arg6[%c0_9, %c0_10] : memref<256x128xf32, #tpu.memory_space<vmem>>, vector<256x128xf32>
      %c0_11 = arith.constant 0 : index
      %c0_12 = arith.constant 0 : index
      %13 = vector.load %arg4[%c0_11, %c0_12] : memref<1x128xf32, #tpu.memory_space<vmem>>, vector<1x128xf32>
      %14 = vector.broadcast %13 : vector<1x128xf32> to vector<256x128xf32>
      %15 = arith.addf %12, %14 : vector<256x128xf32>
      %c0_13 = arith.constant 0 : index
      %c0_14 = arith.constant 0 : index
      %16 = vector.load %arg5[%c0_13, %c0_14] : memref<256x128xf32, #tpu.memory_space<vmem>>, vector<256x128xf32>
      tpu.vector_store %arg5[%c0_13, %c0_14], %15 {strides = array<i32>} : memref<256x128xf32, #tpu.memory_space<vmem>>, vector<256x128xf32>,
    } else {
    }
    return
  }
  func.func @transform_0(%arg0: i32, %arg1: i32) -> (i32, i32) {
    %c0_i32 = arith.constant 0 : i32
    return %arg0, %arg1 : i32, i32
  }
  func.func @transform_1(%arg0: i32, %arg1: i32) -> (i32, i32) {
    %c0_i32 = arith.constant 0 : i32
    %c0_i32_0 = arith.constant 0 : i32
    return %arg1, %c0_i32 : i32, i32
  }
  func.func @transform_2(%arg0: i32, %arg1: i32) -> (i32, i32) {
    %c0_i32 = arith.constant 0 : i32
    %c0_i32_0 = arith.constant 0 : i32
    %c0_i32_1 = arith.constant 0 : i32
    return %c0_i32, %c0_i32_0 : i32, i32
  }
  func.func @transform_3(%arg0: i32, %arg1: i32) -> (i32, i32) {
    %c0_i32 = arith.constant 0 : i32
    %c0_i32_0 = arith.constant 0 : i32
    return %arg0, %c0_i32 : i32, i32
  }
}

module attributes {stable_mosaic.version = 11 : i64} {
  func.func @kernel(%arg0: i32, %arg1: i32, %arg2: memref<256x512xbf16, #tpu.memory_space<vmem>>, %arg3: memref<512x128xbf16, #tpu.memory_space<vmem>>, %arg4: memref<1x128xf32, #tpu.memory_space<vmem>>, %arg5: memref<256x128xf32, #tpu.memory_space<vmem>>, %arg6: memref<256x128xf32, #tpu.memory_space<vmem>>, %arg7: memref<256x128xf32, #tpu.memory_space<vmem>>) attributes {dimension_semantics = [#tpu.dimension_semantics<parallel>, #tpu.dimension_semantics<arbitrary>], iteration_bounds = array<i64: 4, 2>, scalar_prefetch = 0 : i64, scratch_operands = 1 : i64, tpu.core_type = #tpu.core_type<tc>, window_params = [{transform_indices = @transform_0, window_bounds = array<i64: 256, 512>}, {transform_indices = @transform_1, window_bounds = array<i64: 512, 128>}, {pipeline_mode = #tpu.pipeline_mode<synchronous>, transform_indices = @transform_2, window_bounds = array<i64: 1, 128>}, {transform_indices = @transform_3, window_bounds = array<i64: 256, 128>}, {transform_indices = @transform_4, window_bounds = array<i64: 256, 128>}]} {
    %c0_i32 = arith.constant 0 : i32
    %0 = arith.cmpi eq, %arg1, %c0_i32 : i32
    %1 = arith.extui %0 : i1 to i32
    %c0_i32_0 = arith.constant 0 : i32
    %2 = arith.cmpi ne, %1, %c0_i32_0 : i32
    scf.if %2 {
      %cst_9 = arith.constant 0.000000e+00 : f32
      %12 = vector.broadcast %cst_9 : f32 to vector<256x128xf32>
      %c0_10 = arith.constant 0 : index
      %c0_11 = arith.constant 0 : index
      %13 = vector.load %arg7[%c0_10, %c0_11] : memref<256x128xf32, #tpu.memory_space<vmem>>, vector<256x128xf32>
      tpu.vector_store %arg7[%c0_10, %c0_11], %12 {strides = array<i32>} : memref<256x128xf32, #tpu.memory_space<vmem>>, vector<256x128xf32>,
    } else {
    }
    %c0 = arith.constant 0 : index
    %c0_1 = arith.constant 0 : index
    %3 = vector.load %arg7[%c0, %c0_1] : memref<256x128xf32, #tpu.memory_space<vmem>>, vector<256x128xf32>
    %c0_2 = arith.constant 0 : index
    %c0_3 = arith.constant 0 : index
    %4 = vector.load %arg2[%c0_2, %c0_3] : memref<256x512xbf16, #tpu.memory_space<vmem>>, vector<256x512xbf16>
    %c0_4 = arith.constant 0 : index
    %c0_5 = arith.constant 0 : index
    %5 = vector.load %arg3[%c0_4, %c0_5] : memref<512x128xbf16, #tpu.memory_space<vmem>>, vector<512x128xbf16>
    %cst = arith.constant dense<0.000000e+00> : vector<256x128xf32>
    %6 = tpu.matmul %4, %5, %cst {dimension_numbers = #tpu.dot_dimension_numbers<[1], [0], [0], [1], [0, 0, 1, 1], [], []>} : vector<256x512xbf16>, vector<512x128xbf16>, vector<256x128xf32> -> vector<256x128xf32>
    %7 = arith.addf %3, %6 : vector<256x128xf32>
    %c0_6 = arith.constant 0 : index
    %c0_7 = arith.constant 0 : index
    %8 = vector.load %arg7[%c0_6, %c0_7] : memref<256x128xf32, #tpu.memory_space<vmem>>, vector<256x128xf32>
    tpu.vector_store %arg7[%c0_6, %c0_7], %7 {strides = array<i32>} : memref<256x128xf32, #tpu.memory_space<vmem>>, vector<256x128xf32>,
    %c1_i32 = arith.constant 1 : i32
    %9 = arith.cmpi eq, %arg1, %c1_i32 : i32
    %10 = arith.extui %9 : i1 to i32
    %c0_i32_8 = arith.constant 0 : i32
    %11 = arith.cmpi ne, %10, %c0_i32_8 : i32
    scf.if %11 {
      %c0_9 = arith.constant 0 : index
      %c0_10 = arith.constant 0 : index
      %12 = vector.load %arg7[%c0_9, %c0_10] : memref<256x128xf32, #tpu.memory_space<vmem>>, vector<256x128xf32>
      %c0_11 = arith.constant 0 : index
      %c0_12 = arith.constant 0 : index
      %13 = vector.load %arg4[%c0_11, %c0_12] : memref<1x128xf32, #tpu.memory_space<vmem>>, vector<1x128xf32>
      %14 = vector.broadcast %13 : vector<1x128xf32> to vector<256x128xf32>
      %15 = arith.addf %12, %14 : vector<256x128xf32>
      %c0_13 = arith.constant 0 : index
      %c0_14 = arith.constant 0 : index
      %16 = vector.load %arg5[%c0_13, %c0_14] : memref<256x128xf32, #tpu.memory_space<vmem>>, vector<256x128xf32>
      tpu.vector_store %arg5[%c0_13, %c0_14], %15 {strides = array<i32>} : memref<256x128xf32, #tpu.memory_space<vmem>>, vector<256x128xf32>,
      %17 = tpu.iota {dimensions = array<i32: 1>} : vector<256x128xi32>
      %c8_i32 = arith.constant 8 : i32
      %18 = vector.broadcast %c8_i32 : i32 to vector<256x128xi32>
      %19 = arith.cmpi slt, %17, %18 : vector<256x128xi32>
      %cst_15 = arith.constant 0xFF800000 : f32
      %20 = vector.broadcast %cst_15 : f32 to vector<256x128xf32>
      %21 = arith.select %19, %15, %20 : vector<256x128xi1>, vector<256x128xf32>
      %cst_16 = arith.constant dense<0xFF800000> : vector<256xf32>
      %22 = vector.multi_reduction <maximumf>, %21, %cst_16 [1] : vector<256x128xf32> to vector<256xf32>
      %23 = vector.shape_cast %22 : vector<256xf32> to vector<256x1xf32>
      %24 = vector.broadcast %23 : vector<256x1xf32> to vector<256x128xf32>
      %25 = arith.subf %21, %24 : vector<256x128xf32>
      %26 = math.exp %25 : vector<256x128xf32>
      %cst_17 = arith.constant dense<0.000000e+00> : vector<256xf32>
      %27 = vector.multi_reduction <add>, %26, %cst_17 [1] : vector<256x128xf32> to vector<256xf32>
      %28 = vector.shape_cast %27 : vector<256xf32> to vector<256x1xf32>
      %29 = math.log %28 : vector<256x1xf32>
      %30 = vector.broadcast %29 : vector<256x1xf32> to vector<256x128xf32>
      %31 = arith.subf %25, %30 : vector<256x128xf32>
      %c0_18 = arith.constant 0 : index
      %c0_19 = arith.constant 0 : index
      %32 = vector.load %arg6[%c0_18, %c0_19] : memref<256x128xf32, #tpu.memory_space<vmem>>, vector<256x128xf32>
      tpu.vector_store %arg6[%c0_18, %c0_19], %31 {strides = array<i32>} : memref<256x128xf32, #tpu.memory_space<vmem>>, vector<256x128xf32>,
    } else {
    }
    return
  }
  func.func @transform_0(%arg0: i32, %arg1: i32) -> (i32, i32) {
    %c0_i32 = arith.constant 0 : i32
    return %arg0, %arg1 : i32, i32
  }
  func.func @transform_1(%arg0: i32, %arg1: i32) -> (i32, i32) {
    %c0_i32 = arith.constant 0 : i32
    %c0_i32_0 = arith.constant 0 : i32
    return %arg1, %c0_i32 : i32, i32
  }
  func.func @transform_2(%arg0: i32, %arg1: i32) -> (i32, i32) {
    %c0_i32 = arith.constant 0 : i32
    %c0_i32_0 = arith.constant 0 : i32
    %c0_i32_1 = arith.constant 0 : i32
    return %c0_i32, %c0_i32_0 : i32, i32
  }
  func.func @transform_3(%arg0: i32, %arg1: i32) -> (i32, i32) {
    %c0_i32 = arith.constant 0 : i32
    %c0_i32_0 = arith.constant 0 : i32
    return %arg0, %c0_i32 : i32, i32
  }
  func.func @transform_4(%arg0: i32, %arg1: i32) -> (i32, i32) {
    %c0_i32 = arith.constant 0 : i32
    %c0_i32_0 = arith.constant 0 : i32
    return %arg0, %c0_i32 : i32, i32
  }
}

module attributes {stable_mosaic.version = 11 : i64} {
  func.func @kernel(%arg0: i32, %arg1: memref<256x128xf32, #tpu.memory_space<vmem>>, %arg2: memref<128x128xbf16, #tpu.memory_space<vmem>>, %arg3: memref<256x128xbf16, #tpu.memory_space<vmem>>) attributes {dimension_semantics = [#tpu.dimension_semantics<parallel>], iteration_bounds = array<i64: 4>, scalar_prefetch = 0 : i64, scratch_operands = 0 : i64, tpu.core_type = #tpu.core_type<tc>, window_params = [{transform_indices = @transform_0, window_bounds = array<i64: 256, 128>}, {pipeline_mode = #tpu.pipeline_mode<synchronous>, transform_indices = @transform_1, window_bounds = array<i64: 128, 128>}, {transform_indices = @transform_2, window_bounds = array<i64: 256, 128>}]} {
    %c0 = arith.constant 0 : index
    %c0_0 = arith.constant 0 : index
    %0 = vector.load %arg1[%c0, %c0_0] : memref<256x128xf32, #tpu.memory_space<vmem>>, vector<256x128xf32>
    %cst = arith.constant 0.000000e+00 : f32
    %1 = vector.broadcast %cst : f32 to vector<256x128xf32>
    %2 = arith.maximumf %0, %1 : vector<256x128xf32>
    %3 = arith.truncf %2 : vector<256x128xf32> to vector<256x128xbf16>
    %c0_1 = arith.constant 0 : index
    %c0_2 = arith.constant 0 : index
    %4 = vector.load %arg2[%c0_1, %c0_2] : memref<128x128xbf16, #tpu.memory_space<vmem>>, vector<128x128xbf16>
    %cst_3 = arith.constant dense<0.000000e+00> : vector<256x128xf32>
    %5 = tpu.matmul %3, %4, %cst_3 {dimension_numbers = #tpu.dot_dimension_numbers<[1], [0], [0], [1], [0, 0, 1, 1], [], []>} : vector<256x128xbf16>, vector<128x128xbf16>, vector<256x128xf32> -> vector<256x128xf32>
    %6 = arith.truncf %5 : vector<256x128xf32> to vector<256x128xbf16>
    %c0_4 = arith.constant 0 : index
    %c0_5 = arith.constant 0 : index
    %7 = vector.load %arg3[%c0_4, %c0_5] : memref<256x128xbf16, #tpu.memory_space<vmem>>, vector<256x128xbf16>
    tpu.vector_store %arg3[%c0_4, %c0_5], %6 {strides = array<i32>} : memref<256x128xbf16, #tpu.memory_space<vmem>>, vector<256x128xbf16>,
    return
  }
  func.func @transform_0(%arg0: i32) -> (i32, i32) {
    %c0_i32 = arith.constant 0 : i32
    %c0_i32_0 = arith.constant 0 : i32
    return %arg0, %c0_i32 : i32, i32
  }
  func.func @transform_1(%arg0: i32) -> (i32, i32) {
    %c0_i32 = arith.constant 0 : i32
    %c0_i32_0 = arith.constant 0 : i32
    %c0_i32_1 = arith.constant 0 : i32
    return %c0_i32, %c0_i32_0 : i32, i32
  }
  func.func @transform_2(%arg0: i32) -> (i32, i32) {
    %c0_i32 = arith.constant 0 : i32
    %c0_i32_0 = arith.constant 0 : i32
    return %arg0, %c0_i32 : i32, i32
  }
}

</mosaic_0001>

<bundles_post_ra>
// kernel: gcn_pia2_unlearn_forward.6
= control target key start
LH: loop header
LB: loop body
LE: loop exit
PB: predicated region body
PF: predicated region fallthrough
CT: control target
= control target key end

     0   :  { %s669_s9 = smov 0   ;;  %s766_s0 = inlined_call_operand.vmem [shape: f32[1024,128], index: 0, kind: input, shape index: {}]   ;;  %s767_s1 = inlined_call_operand.vmem [shape: bf16[128,128], index: 1, kind: input, shape index: {}]   ;;  %s768_s2 = inlined_call_operand.vmem [shape: bf16[1024,128], index: 2, kind: output, shape index: {}]  }
   0x1 LB: > { %s468_s10 = sadd.s32 4294967295, %s652_s9   ;;  %p472_p0 = scmp.ge.s32.totalorder %s652_s9, 1  ;;  %s652_s9 = sphi %s669_s9, %s12_s9  }
   0x2   : > { %p113_p1 = scmp.lt.s32.totalorder %s652_s9, 5 }
   0x4   : > { %p114_p2 = pnand %p472_p0, %p113_p1 }
   0x5   : > { %s473_s17 = sshll.u32 (!%p114_p2), %s468_s10, 5 }
   0x6   : > { %117 = sbr.rel (%p114_p2) target bundleno = 236 (0xec), region = 28  ;;  %p136_p3 = scmp.lt.s32.totalorder (!%p114_p2), %s473_s17, 127 }
   0xb   : > { %v518_v0 = vld [vmem:[%s767_s1 + $0x38] sm:$0xff]  ;;  %v517_v1 = vld [vmem:[%s767_s1 + $0x30] sm:$0xff]  ;;  %v516_v2 = vld [vmem:[%s767_s1 + $0x28] sm:$0xff]  ;;  %s770_s17 = smov (!%p136_p3, %s473_s17), 127 }
   0xc   : > { %259 = vmatpush.bf16.msra.mxu0 %v518_v0  ;;  %614 = vmatpush.bf16.msra.mxu1 %v518_v0  ;;  %v515_v3 = vld [vmem:[%s767_s1 + $0x20] sm:$0xff]  ;;  %v514_v4 = vld [vmem:[%s767_s1 + $0x18] sm:$0xff]  ;;  %v513_v5 = vld [vmem:[%s767_s1 + $0x10] sm:$0xff]  ;;  %s474_s24 = sshll.u32 %s770_s17, 3  ;;  %s476_s4 = sshll.u32 %s770_s17, 2 }
   0xd   : > { %615 = vmatpush.bf16.msra.mxu2 %v518_v0  ;;  %616 = vmatpush.bf16.msra.mxu3 %v518_v0  ;;  %v512_v6 = vld [vmem:[%s767_s1 + $0x8] sm:$0xff]  ;;  %s704_s29 = scalar_lea.vmem %s766_s0, %s474_s24  ;;  %v511_v7 = vld [vmem:[%s767_s1] sm:$0xff]  ;;  %s745_s7 = scalar_lea.vmem %s768_s2, %s476_s4 }
   0xe   : > { %v147_v8 = vld [vmem:[%s704_s29] sm:$0xff]  ;;  %v148_v9 = vld [vmem:[%s704_s29 + $0x8] sm:$0xff]  ;;  %v149_v20 = vld [vmem:[%s704_s29 + $0x10] sm:$0xff] }
   0xf   : > { %v155_v10 = vld [vmem:[%s704_s29 + $0x40] sm:$0xff]  ;;  %v156_v11 = vld [vmem:[%s704_s29 + $0x48] sm:$0xff]  ;;  %v179_v16 = vpack.c.bf16 %v148_v9, %v147_v8  ;;  %v150_v21 = vld [vmem:[%s704_s29 + $0x18] sm:$0xff] }
  0x10   : > { %260 = vmatpush.bf16.msra.mxu0 %v517_v1  ;;  %617 = vmatpush.bf16.msra.mxu1 %v517_v1  ;;  %v163_v12 = vld [vmem:[%s704_s29 + $0x80] sm:$0xff]  ;;  %v164_v13 = vld [vmem:[%s704_s29 + $0x88] sm:$0xff]  ;;  %v183_v17 = vpack.c.bf16 %v156_v11, %v155_v10  ;;  %v157_v22 = vld [vmem:[%s704_s29 + $0x50] sm:$0xff]  ;;  %v180_v28 = vpack.c.bf16 %v150_v21, %v149_v20 }
  0x11   : > { %618 = vmatpush.bf16.msra.mxu2 %v517_v1  ;;  %619 = vmatpush.bf16.msra.mxu3 %v517_v1  ;;  %v171_v14 = vld [vmem:[%s704_s29 + $0xc0] sm:$0xff]  ;;  %v172_v15 = vld [vmem:[%s704_s29 + $0xc8] sm:$0xff]  ;;  %v187_v18 = vpack.c.bf16 %v164_v13, %v163_v12  ;;  %v158_v23 = vld [vmem:[%s704_s29 + $0x58] sm:$0xff] }
  0x12   : > { %v191_v19 = vpack.c.bf16 %v172_v15, %v171_v14  ;;  %v165_v24 = vld [vmem:[%s704_s29 + $0x90] sm:$0xff]  ;;  %v166_v25 = vld [vmem:[%s704_s29 + $0x98] sm:$0xff]  ;;  %v184_v29 = vpack.c.bf16 %v158_v23, %v157_v22  ;;  %v151_v32 = vld [vmem:[%s704_s29 + $0x20] sm:$0xff] }
  0x13   : > { %v173_v26 = vld [vmem:[%s704_s29 + $0xd0] sm:$0xff]  ;;  %v174_v27 = vld [vmem:[%s704_s29 + $0xd8] sm:$0xff]  ;;  %v188_v30 = vpack.c.bf16 %v166_v25, %v165_v24  ;;  %v152_v33 = vld [vmem:[%s704_s29 + $0x28] sm:$0xff] }
  0x14   : > { %261 = vmatpush.bf16.msra.mxu0 %v516_v2  ;;  %620 = vmatpush.bf16.msra.mxu1 %v516_v2  ;;  %v192_v31 = vpack.c.bf16 %v174_v27, %v173_v26  ;;  %v159_v34 = vld [vmem:[%s704_s29 + $0x60] sm:$0xff]  ;;  %v160_v35 = vld [vmem:[%s704_s29 + $0x68] sm:$0xff]  ;;  %v181_v40 = vpack.c.bf16 %v152_v33, %v151_v32  ;;  %v153_v44 = vld [vmem:[%s704_s29 + $0x30] sm:$0xff] }
  0x15   : > { %621 = vmatpush.bf16.msra.mxu2 %v516_v2  ;;  %622 = vmatpush.bf16.msra.mxu3 %v516_v2  ;;  %v167_v36 = vld [vmem:[%s704_s29 + $0xa0] sm:$0xff]  ;;  %v168_v37 = vld [vmem:[%s704_s29 + $0xa8] sm:$0xff]  ;;  %v185_v41 = vpack.c.bf16 %v160_v35, %v159_v34  ;;  %v154_v45 = vld [vmem:[%s704_s29 + $0x38] sm:$0xff] }
  0x16   : > { %v175_v38 = vld [vmem:[%s704_s29 + $0xe0] sm:$0xff]  ;;  %v176_v39 = vld [vmem:[%s704_s29 + $0xe8] sm:$0xff]  ;;  %v189_v42 = vpack.c.bf16 %v168_v37, %v167_v36  ;;  %v161_v46 = vld [vmem:[%s704_s29 + $0x70] sm:$0xff]  ;;  %v182_v52 = vpack.c.bf16 %v154_v45, %v153_v44 }
  0x17   : > { %v193_v43 = vpack.c.bf16 %v176_v39, %v175_v38  ;;  %v162_v47 = vld [vmem:[%s704_s29 + $0x78] sm:$0xff]  ;;  %v169_v48 = vld [vmem:[%s704_s29 + $0xb0] sm:$0xff] }
  0x18   : > { %262 = vmatpush.bf16.msra.mxu0 %v515_v3  ;;  %623 = vmatpush.bf16.msra.mxu1 %v515_v3  ;;  %v170_v49 = vld [vmem:[%s704_s29 + $0xb8] sm:$0xff]  ;;  %v177_v50 = vld [vmem:[%s704_s29 + $0xf0] sm:$0xff]  ;;  %v186_v53 = vpack.c.bf16 %v162_v47, %v161_v46 }
  0x19   : > { %624 = vmatpush.bf16.msra.mxu2 %v515_v3  ;;  %625 = vmatpush.bf16.msra.mxu3 %v515_v3  ;;  %v178_v51 = vld [vmem:[%s704_s29 + $0xf8] sm:$0xff]  ;;  %v190_v54 = vpack.c.bf16 %v170_v49, %v169_v48 }
  0x1a   : > { %v194_v55 = vpack.c.bf16 %v178_v51, %v177_v50 }
  0x1c   : > { %263 = vmatpush.bf16.msra.mxu0 %v514_v4  ;;  %626 = vmatpush.bf16.msra.mxu1 %v514_v4 }
  0x1d   : > { %627 = vmatpush.bf16.msra.mxu2 %v514_v4  ;;  %628 = vmatpush.bf16.msra.mxu3 %v514_v4 }
  0x20   : > { %264 = vmatpush.bf16.msra.mxu0 %v513_v5  ;;  %629 = vmatpush.bf16.msra.mxu1 %v513_v5 }
  0x21   : > { %630 = vmatpush.bf16.msra.mxu2 %v513_v5  ;;  %631 = vmatpush.bf16.msra.mxu3 %v513_v5 }
  0x24   : > { %265 = vmatpush.bf16.msra.mxu0 %v512_v6  ;;  %632 = vmatpush.bf16.msra.mxu1 %v512_v6 }
  0x25   : > { %633 = vmatpush.bf16.msra.mxu2 %v512_v6  ;;  %634 = vmatpush.bf16.msra.mxu3 %v512_v6 }
  0x28   : > { %266 = vmatpush.bf16.msra.mxu0 %v511_v7  ;;  %635 = vmatpush.bf16.msra.mxu1 %v511_v7 }
  0x29   : > { %636 = vmatpush.bf16.msra.mxu2 %v511_v7  ;;  %637 = vmatpush.bf16.msra.mxu3 %v511_v7 }
  0x2b   : > { %267 = vmatmul.bf16.vlgmr.msra.gmra.mxu0 %v179_v16  ;;  %287 = vmatmul.bf16.vlgmr.msra.gmra.mxu1 %v183_v17 }
  0x2c   : > { %307 = vmatmul.bf16.vlgmr.msra.gmra.mxu2 %v187_v18  ;;  %327 = vmatmul.bf16.vlgmr.msra.gmra.mxu3 %v191_v19 }
  0x3b   : > { %272 = vmatmul.bf16.gmra.mxu0 %v180_v28  ;;  %292 = vmatmul.bf16.gmra.mxu1 %v184_v29 }
  0x3c   : > { %312 = vmatmul.bf16.gmra.mxu2 %v188_v30  ;;  %332 = vmatmul.bf16.gmra.mxu3 %v192_v31 }
  0x4b   : > { %277 = vmatmul.bf16.gmra.mxu0 %v181_v40  ;;  %297 = vmatmul.bf16.gmra.mxu1 %v185_v41 }
  0x4c   : > { %317 = vmatmul.bf16.gmra.mxu2 %v189_v42  ;;  %337 = vmatmul.bf16.gmra.mxu3 %v193_v43 }
  0x5b   : > { %282 = vmatmul.bf16.gmra.mxu0 %v182_v52  ;;  %302 = vmatmul.bf16.gmra.mxu1 %v186_v53 }
  0x5c   : > { %322 = vmatmul.bf16.gmra.mxu2 %v190_v54  ;;  %342 = vmatmul.bf16.gmra.mxu3 %v194_v55 }
  0xa8   : > { %v268_v56 = vpop.f32.mrf.mxu0  ;;  %v288_v57 = vpop.f32.mrf.mxu1 }
  0xaf   : > { %v308_v58 = vpop.f32.mrf.mxu2  ;;  %v328_v59 = vpop.f32.mrf.mxu3 }
  0xb0   : > { %v270_v60 = vpop.f32.mrf.mxu0  ;;  %v290_v61 = vpop.f32.mrf.mxu1 }
  0xb1   : > { %v522_v62 = vpack.c.bf16 %v270_v60, %v268_v56  ;;  %v542_v63 = vpack.c.bf16 %v290_v61, %v288_v57 }
  0xb3   : > { %523 = vst [vmem:[%s745_s7] sm:$0xff] %v522_v62  }
  0xb4   : > { %602 = vst [vmem:[%s745_s7 + $0x20] sm:$0xff] %v542_v63  }
  0xb7   : > { %v310_v0 = vpop.f32.mrf.mxu2  ;;  %v330_v1 = vpop.f32.mrf.mxu3 }
  0xb8   : > { %v562_v2 = vpack.c.bf16 %v310_v0, %v308_v58  ;;  %v582_v3 = vpack.c.bf16 %v330_v1, %v328_v59  ;;  %v273_v4 = vpop.f32.mrf.mxu0  ;;  %v293_v5 = vpop.f32.mrf.mxu1 }
  0xba   : > { %606 = vst [vmem:[%s745_s7 + $0x40] sm:$0xff] %v562_v2  }
  0xbb   : > { %610 = vst [vmem:[%s745_s7 + $0x60] sm:$0xff] %v582_v3  }
  0xbf   : > { %v313_v6 = vpop.f32.mrf.mxu2  ;;  %v333_v7 = vpop.f32.mrf.mxu3 }
  0xc0   : > { %v275_v8 = vpop.f32.mrf.mxu0  ;;  %v295_v9 = vpop.f32.mrf.mxu1 }
  0xc1   : > { %v527_v10 = vpack.c.bf16 %v275_v8, %v273_v4  ;;  %v547_v11 = vpack.c.bf16 %v295_v9, %v293_v5 }
  0xc3   : > { %599 = vst [vmem:[%s745_s7 + $0x8] sm:$0xff] %v527_v10  }
  0xc4   : > { %603 = vst [vmem:[%s745_s7 + $0x28] sm:$0xff] %v547_v11  }
  0xc7   : > { %v315_v12 = vpop.f32.mrf.mxu2  ;;  %v335_v13 = vpop.f32.mrf.mxu3 }
  0xc8   : > { %v567_v14 = vpack.c.bf16 %v315_v12, %v313_v6  ;;  %v587_v15 = vpack.c.bf16 %v335_v13, %v333_v7  ;;  %v278_v16 = vpop.f32.mrf.mxu0  ;;  %v298_v17 = vpop.f32.mrf.mxu1 }
  0xca   : > { %607 = vst [vmem:[%s745_s7 + $0x48] sm:$0xff] %v567_v14  }
  0xcb   : > { %611 = vst [vmem:[%s745_s7 + $0x68] sm:$0xff] %v587_v15  }
  0xcf   : > { %v318_v18 = vpop.f32.mrf.mxu2  ;;  %v338_v19 = vpop.f32.mrf.mxu3 }
  0xd0   : > { %v280_v20 = vpop.f32.mrf.mxu0  ;;  %v300_v21 = vpop.f32.mrf.mxu1 }
  0xd1   : > { %v532_v22 = vpack.c.bf16 %v280_v20, %v278_v16  ;;  %v552_v23 = vpack.c.bf16 %v300_v21, %v298_v17 }
  0xd3   : > { %600 = vst [vmem:[%s745_s7 + $0x10] sm:$0xff] %v532_v22  }
  0xd4   : > { %604 = vst [vmem:[%s745_s7 + $0x30] sm:$0xff] %v552_v23  }
  0xd7   : > { %v320_v24 = vpop.f32.mrf.mxu2  ;;  %v340_v25 = vpop.f32.mrf.mxu3 }
  0xd8   : > { %v572_v26 = vpack.c.bf16 %v320_v24, %v318_v18  ;;  %v592_v27 = vpack.c.bf16 %v340_v25, %v338_v19  ;;  %v283_v28 = vpop.f32.mrf.mxu0  ;;  %v303_v29 = vpop.f32.mrf.mxu1 }
  0xda   : > { %608 = vst [vmem:[%s745_s7 + $0x50] sm:$0xff] %v572_v26  }
  0xdb   : > { %612 = vst [vmem:[%s745_s7 + $0x70] sm:$0xff] %v592_v27  }
  0xdf   : > { %v323_v30 = vpop.f32.mrf.mxu2  ;;  %v343_v31 = vpop.f32.mrf.mxu3 }
  0xe0   : > { %v285_v32 = vpop.f32.mrf.mxu0  ;;  %v305_v33 = vpop.f32.mrf.mxu1 }
  0xe1   : > { %v537_v34 = vpack.c.bf16 %v285_v32, %v283_v28  ;;  %v557_v35 = vpack.c.bf16 %v305_v33, %v303_v29 }
  0xe3   : > { %601 = vst [vmem:[%s745_s7 + $0x18] sm:$0xff] %v537_v34  }
  0xe4   : > { %605 = vst [vmem:[%s745_s7 + $0x38] sm:$0xff] %v557_v35  }
  0xe7   : > { %v325_v36 = vpop.f32.mrf.mxu2  ;;  %v345_v37 = vpop.f32.mrf.mxu3 }
  0xe8   : > { %v577_v38 = vpack.c.bf16 %v325_v36, %v323_v30  ;;  %v597_v39 = vpack.c.bf16 %v345_v37, %v343_v31 }
  0xea   : > { %609 = vst [vmem:[%s745_s7 + $0x58] sm:$0xff] %v577_v38  }
  0xeb   : > { %613 = vst [vmem:[%s745_s7 + $0x78] sm:$0xff] %v597_v39  }
  0xec PF: > { %s12_s9 = sadd.s32 1, %s652_s9  }
  0xed   : > { %p9_p4 = scmp.ge.s32.totalorder %s12_s9, 6  }
  0xef   :  { %11 = sbr.rel (!%p9_p4) target bundleno = 1 (0x1), region = 58 }

// kernel: gcn_pia2_unlearn_forward.8
= control target key start
LH: loop header
LB: loop body
LE: loop exit
PB: predicated region body
PF: predicated region fallthrough
CT: control target
= control target key end

     0   :  { %s701_s9 = smov 0   ;;  %s798_s0 = inlined_call_operand.vmem [shape: f32[1024,128], index: 0, kind: input, shape index: {}]   ;;  %s799_s1 = inlined_call_operand.vmem [shape: bf16[128,128], index: 1, kind: input, shape index: {}]   ;;  %s800_s2 = inlined_call_operand.vmem [shape: bf16[1024,128], index: 2, kind: output, shape index: {}]  }
   0x1 LB: > { %s500_s10 = sadd.s32 4294967295, %s684_s9   ;;  %p504_p0 = scmp.ge.s32.totalorder %s684_s9, 1  ;;  %s684_s9 = sphi %s701_s9, %s12_s9  }
   0x2   : > { %p113_p1 = scmp.lt.s32.totalorder %s684_s9, 5 }
   0x4   : > { %p114_p2 = pnand %p504_p0, %p113_p1 }
   0x5   : > { %s505_s15 = sshll.u32 (!%p114_p2), %s500_s10, 5 }
   0x6   : > { %117 = sbr.rel (%p114_p2) target bundleno = 236 (0xec), region = 28  ;;  %p136_p3 = scmp.lt.s32.totalorder (!%p114_p2), %s505_s15, 127 }
   0xb   : > { %v550_v0 = vld [vmem:[%s799_s1 + $0x38] sm:$0xff]  ;;  %v549_v1 = vld [vmem:[%s799_s1 + $0x30] sm:$0xff]  ;;  %v548_v2 = vld [vmem:[%s799_s1 + $0x28] sm:$0xff]  ;;  %s802_s15 = smov (!%p136_p3, %s505_s15), 127 }
   0xc   : > { %291 = vmatpush.bf16.msra.mxu0 %v550_v0  ;;  %646 = vmatpush.bf16.msra.mxu1 %v550_v0  ;;  %v547_v3 = vld [vmem:[%s799_s1 + $0x20] sm:$0xff]  ;;  %v546_v4 = vld [vmem:[%s799_s1 + $0x18] sm:$0xff]  ;;  %s506_s22 = sshll.u32 %s802_s15, 3  ;;  %v545_v5 = vld [vmem:[%s799_s1 + $0x10] sm:$0xff]  ;;  %s508_s4 = sshll.u32 %s802_s15, 2 }
   0xd   : > { %647 = vmatpush.bf16.msra.mxu2 %v550_v0  ;;  %648 = vmatpush.bf16.msra.mxu3 %v550_v0  ;;  %s733_s27 = scalar_lea.vmem %s798_s0, %s506_s22  ;;  %v544_v6 = vld [vmem:[%s799_s1 + $0x8] sm:$0xff]  ;;  %v543_v19 = vld [vmem:[%s799_s1] sm:$0xff]  ;;  %s777_s7 = scalar_lea.vmem %s800_s2, %s508_s4 }
   0xe   : > { %v147_v7 = vld [vmem:[%s733_s27] sm:$0xff]  ;;  %v148_v8 = vld [vmem:[%s733_s27 + $0x8] sm:$0xff]  ;;  %v149_v28 = vld [vmem:[%s733_s27 + $0x10] sm:$0xff] }
   0xf   : > { %v155_v9 = vld [vmem:[%s733_s27 + $0x40] sm:$0xff]  ;;  %v156_v10 = vld [vmem:[%s733_s27 + $0x48] sm:$0xff]  ;;  %v179_v15 = vmax.f32 %v147_v7, 0.0  ;;  %v180_v16 = vmax.f32 %v148_v8, 0.0  ;;  %v150_v29 = vld [vmem:[%s733_s27 + $0x18] sm:$0xff]  ;;  %v181_v36 = vmax.f32 %v149_v28, 0.0 }
  0x10   : > { %292 = vmatpush.bf16.msra.mxu0 %v549_v1  ;;  %649 = vmatpush.bf16.msra.mxu1 %v549_v1  ;;  %v163_v11 = vld [vmem:[%s733_s27 + $0x80] sm:$0xff]  ;;  %v164_v12 = vld [vmem:[%s733_s27 + $0x88] sm:$0xff]  ;;  %v187_v17 = vmax.f32 %v155_v9, 0.0  ;;  %v188_v18 = vmax.f32 %v156_v10, 0.0  ;;  %v157_v30 = vld [vmem:[%s733_s27 + $0x50] sm:$0xff]  ;;  %v182_v37 = vmax.f32 %v150_v29, 0.0 }
  0x11   : > { %650 = vmatpush.bf16.msra.mxu2 %v549_v1  ;;  %651 = vmatpush.bf16.msra.mxu3 %v549_v1  ;;  %v171_v13 = vld [vmem:[%s733_s27 + $0xc0] sm:$0xff]  ;;  %v172_v14 = vld [vmem:[%s733_s27 + $0xc8] sm:$0xff]  ;;  %v195_v20 = vmax.f32 %v163_v11, 0.0  ;;  %v196_v21 = vmax.f32 %v164_v12, 0.0  ;;  %v211_v24 = vpack.c.bf16 %v180_v16, %v179_v15  ;;  %v158_v31 = vld [vmem:[%s733_s27 + $0x58] sm:$0xff]  ;;  %v189_v38 = vmax.f32 %v157_v30, 0.0 }
  0x12   : > { %v203_v22 = vmax.f32 %v171_v13, 0.0  ;;  %v204_v23 = vmax.f32 %v172_v14, 0.0  ;;  %v215_v25 = vpack.c.bf16 %v188_v18, %v187_v17  ;;  %v165_v32 = vld [vmem:[%s733_s27 + $0x90] sm:$0xff]  ;;  %v166_v33 = vld [vmem:[%s733_s27 + $0x98] sm:$0xff]  ;;  %v190_v39 = vmax.f32 %v158_v31, 0.0  ;;  %v151_v48 = vld [vmem:[%s733_s27 + $0x20] sm:$0xff] }
  0x13   : > { %v219_v26 = vpack.c.bf16 %v196_v21, %v195_v20  ;;  %v173_v34 = vld [vmem:[%s733_s27 + $0xd0] sm:$0xff]  ;;  %v174_v35 = vld [vmem:[%s733_s27 + $0xd8] sm:$0xff]  ;;  %v197_v40 = vmax.f32 %v165_v32, 0.0  ;;  %v198_v41 = vmax.f32 %v166_v33, 0.0  ;;  %v212_v44 = vpack.c.bf16 %v182_v37, %v181_v36  ;;  %v152_v49 = vld [vmem:[%s733_s27 + $0x28] sm:$0xff] }
  0x14   : > { %293 = vmatpush.bf16.msra.mxu0 %v548_v2  ;;  %652 = vmatpush.bf16.msra.mxu1 %v548_v2  ;;  %v223_v27 = vpack.c.bf16 %v204_v23, %v203_v22  ;;  %v205_v42 = vmax.f32 %v173_v34, 0.0  ;;  %v206_v43 = vmax.f32 %v174_v35, 0.0  ;;  %v216_v45 = vpack.c.bf16 %v190_v39, %v189_v38  ;;  %v159_v50 = vld [vmem:[%s733_s27 + $0x60] sm:$0xff]  ;;  %v160_v51 = vld [vmem:[%s733_s27 + $0x68] sm:$0xff]  ;;  %v162_v7 = vld [vmem:[%s733_s27 + $0x78] sm:$0xff] }
  0x15   : > { %653 = vmatpush.bf16.msra.mxu2 %v548_v2  ;;  %654 = vmatpush.bf16.msra.mxu3 %v548_v2  ;;  %v220_v46 = vpack.c.bf16 %v198_v41, %v197_v40  ;;  %v167_v52 = vld [vmem:[%s733_s27 + $0xa0] sm:$0xff]  ;;  %v168_v53 = vld [vmem:[%s733_s27 + $0xa8] sm:$0xff]  ;;  %v183_v56 = vmax.f32 %v151_v48, 0.0  ;;  %v184_v57 = vmax.f32 %v152_v49, 0.0  ;;  %v191_v58 = vmax.f32 %v159_v50, 0.0  ;;  %v169_v8 = vld [vmem:[%s733_s27 + $0xb0] sm:$0xff] }
  0x16   : > { %v224_v47 = vpack.c.bf16 %v206_v43, %v205_v42  ;;  %v175_v54 = vld [vmem:[%s733_s27 + $0xe0] sm:$0xff]  ;;  %v176_v55 = vld [vmem:[%s733_s27 + $0xe8] sm:$0xff]  ;;  %v192_v59 = vmax.f32 %v160_v51, 0.0  ;;  %v199_v60 = vmax.f32 %v167_v52, 0.0  ;;  %v200_v61 = vmax.f32 %v168_v53, 0.0  ;;  %v170_v9 = vld [vmem:[%s733_s27 + $0xb8] sm:$0xff] }
  0x17   : > { %v207_v62 = vmax.f32 %v175_v54, 0.0  ;;  %v208_v63 = vmax.f32 %v176_v55, 0.0  ;;  %v213_v0 = vpack.c.bf16 %v184_v57, %v183_v56  ;;  %v177_v10 = vld [vmem:[%s733_s27 + $0xf0] sm:$0xff]  ;;  %v178_v11 = vld [vmem:[%s733_s27 + $0xf8] sm:$0xff]  ;;  %v194_v15 = vmax.f32 %v162_v7, 0.0 }
  0x18   : > { %294 = vmatpush.bf16.msra.mxu0 %v547_v3  ;;  %655 = vmatpush.bf16.msra.mxu1 %v547_v3  ;;  %v217_v1 = vpack.c.bf16 %v192_v59, %v191_v58  ;;  %v221_v2 = vpack.c.bf16 %v200_v61, %v199_v60  ;;  %v201_v16 = vmax.f32 %v169_v8, 0.0  ;;  %v202_v17 = vmax.f32 %v170_v9, 0.0 }
  0x19   : > { %656 = vmatpush.bf16.msra.mxu2 %v547_v3  ;;  %657 = vmatpush.bf16.msra.mxu3 %v547_v3  ;;  %v225_v3 = vpack.c.bf16 %v208_v63, %v207_v62  ;;  %v209_v18 = vmax.f32 %v177_v10, 0.0 }
  0x1a   : > { %v222_v22 = vpack.c.bf16 %v202_v17, %v201_v16 }
  0x1c   : > { %295 = vmatpush.bf16.msra.mxu0 %v546_v4  ;;  %658 = vmatpush.bf16.msra.mxu1 %v546_v4 }
  0x1d   : > { %659 = vmatpush.bf16.msra.mxu2 %v546_v4  ;;  %660 = vmatpush.bf16.msra.mxu3 %v546_v4  ;;  %v153_v4 = vld [vmem:[%s733_s27 + $0x30] sm:$0xff] }
  0x1e   : > { %v185_v12 = vmax.f32 %v153_v4, 0.0 }
  0x20   : > { %296 = vmatpush.bf16.msra.mxu0 %v545_v5  ;;  %661 = vmatpush.bf16.msra.mxu1 %v545_v5 }
  0x21   : > { %662 = vmatpush.bf16.msra.mxu2 %v545_v5  ;;  %663 = vmatpush.bf16.msra.mxu3 %v545_v5  ;;  %v154_v5 = vld [vmem:[%s733_s27 + $0x38] sm:$0xff] }
  0x22   : > { %v186_v13 = vmax.f32 %v154_v5, 0.0 }
  0x24   : > { %297 = vmatpush.bf16.msra.mxu0 %v544_v6  ;;  %664 = vmatpush.bf16.msra.mxu1 %v544_v6  ;;  %v214_v20 = vpack.c.bf16 %v186_v13, %v185_v12 }
  0x25   : > { %665 = vmatpush.bf16.msra.mxu2 %v544_v6  ;;  %666 = vmatpush.bf16.msra.mxu3 %v544_v6  ;;  %v161_v6 = vld [vmem:[%s733_s27 + $0x70] sm:$0xff] }
  0x26   : > { %v193_v14 = vmax.f32 %v161_v6, 0.0 }
  0x28   : > { %298 = vmatpush.bf16.msra.mxu0 %v543_v19  ;;  %667 = vmatpush.bf16.msra.mxu1 %v543_v19  ;;  %v218_v21 = vpack.c.bf16 %v194_v15, %v193_v14 }
  0x29   : > { %668 = vmatpush.bf16.msra.mxu2 %v543_v19  ;;  %669 = vmatpush.bf16.msra.mxu3 %v543_v19  ;;  %v210_v19 = vmax.f32 %v178_v11, 0.0 }
  0x2b   : > { %299 = vmatmul.bf16.vlgmr.msra.gmra.mxu0 %v211_v24  ;;  %319 = vmatmul.bf16.vlgmr.msra.gmra.mxu1 %v215_v25  ;;  %v226_v23 = vpack.c.bf16 %v210_v19, %v209_v18 }
  0x2c   : > { %339 = vmatmul.bf16.vlgmr.msra.gmra.mxu2 %v219_v26  ;;  %359 = vmatmul.bf16.vlgmr.msra.gmra.mxu3 %v223_v27 }
  0x3b   : > { %304 = vmatmul.bf16.gmra.mxu0 %v212_v44  ;;  %324 = vmatmul.bf16.gmra.mxu1 %v216_v45 }
  0x3c   : > { %344 = vmatmul.bf16.gmra.mxu2 %v220_v46  ;;  %364 = vmatmul.bf16.gmra.mxu3 %v224_v47 }
  0x4b   : > { %309 = vmatmul.bf16.gmra.mxu0 %v213_v0  ;;  %329 = vmatmul.bf16.gmra.mxu1 %v217_v1 }
  0x4c   : > { %349 = vmatmul.bf16.gmra.mxu2 %v221_v2  ;;  %369 = vmatmul.bf16.gmra.mxu3 %v225_v3 }
  0x5b   : > { %314 = vmatmul.bf16.gmra.mxu0 %v214_v20  ;;  %334 = vmatmul.bf16.gmra.mxu1 %v218_v21 }
  0x5c   : > { %354 = vmatmul.bf16.gmra.mxu2 %v222_v22  ;;  %374 = vmatmul.bf16.gmra.mxu3 %v226_v23 }
  0xa8   : > { %v300_v24 = vpop.f32.mrf.mxu0  ;;  %v320_v25 = vpop.f32.mrf.mxu1 }
  0xaf   : > { %v340_v26 = vpop.f32.mrf.mxu2  ;;  %v360_v27 = vpop.f32.mrf.mxu3 }
  0xb0   : > { %v302_v28 = vpop.f32.mrf.mxu0  ;;  %v322_v29 = vpop.f32.mrf.mxu1 }
  0xb1   : > { %v554_v30 = vpack.c.bf16 %v302_v28, %v300_v24  ;;  %v574_v31 = vpack.c.bf16 %v322_v29, %v320_v25 }
  0xb3   : > { %555 = vst [vmem:[%s777_s7] sm:$0xff] %v554_v30  }
  0xb4   : > { %634 = vst [vmem:[%s777_s7 + $0x20] sm:$0xff] %v574_v31  }
  0xb7   : > { %v342_v32 = vpop.f32.mrf.mxu2  ;;  %v362_v33 = vpop.f32.mrf.mxu3 }
  0xb8   : > { %v594_v34 = vpack.c.bf16 %v342_v32, %v340_v26  ;;  %v614_v35 = vpack.c.bf16 %v362_v33, %v360_v27  ;;  %v305_v36 = vpop.f32.mrf.mxu0  ;;  %v325_v37 = vpop.f32.mrf.mxu1 }
  0xba   : > { %638 = vst [vmem:[%s777_s7 + $0x40] sm:$0xff] %v594_v34  }
  0xbb   : > { %642 = vst [vmem:[%s777_s7 + $0x60] sm:$0xff] %v614_v35  }
  0xbf   : > { %v345_v38 = vpop.f32.mrf.mxu2  ;;  %v365_v39 = vpop.f32.mrf.mxu3 }
  0xc0   : > { %v307_v40 = vpop.f32.mrf.mxu0  ;;  %v327_v41 = vpop.f32.mrf.mxu1 }
  0xc1   : > { %v559_v42 = vpack.c.bf16 %v307_v40, %v305_v36  ;;  %v579_v43 = vpack.c.bf16 %v327_v41, %v325_v37 }
  0xc3   : > { %631 = vst [vmem:[%s777_s7 + $0x8] sm:$0xff] %v559_v42  }
  0xc4   : > { %635 = vst [vmem:[%s777_s7 + $0x28] sm:$0xff] %v579_v43  }
  0xc7   : > { %v347_v44 = vpop.f32.mrf.mxu2  ;;  %v367_v45 = vpop.f32.mrf.mxu3 }
  0xc8   : > { %v599_v46 = vpack.c.bf16 %v347_v44, %v345_v38  ;;  %v619_v47 = vpack.c.bf16 %v367_v45, %v365_v39  ;;  %v310_v48 = vpop.f32.mrf.mxu0  ;;  %v330_v49 = vpop.f32.mrf.mxu1 }
  0xca   : > { %639 = vst [vmem:[%s777_s7 + $0x48] sm:$0xff] %v599_v46  }
  0xcb   : > { %643 = vst [vmem:[%s777_s7 + $0x68] sm:$0xff] %v619_v47  }
  0xcf   : > { %v350_v50 = vpop.f32.mrf.mxu2  ;;  %v370_v51 = vpop.f32.mrf.mxu3 }
  0xd0   : > { %v312_v52 = vpop.f32.mrf.mxu0  ;;  %v332_v53 = vpop.f32.mrf.mxu1 }
  0xd1   : > { %v564_v54 = vpack.c.bf16 %v312_v52, %v310_v48  ;;  %v584_v55 = vpack.c.bf16 %v332_v53, %v330_v49 }
  0xd3   : > { %632 = vst [vmem:[%s777_s7 + $0x10] sm:$0xff] %v564_v54  }
  0xd4   : > { %636 = vst [vmem:[%s777_s7 + $0x30] sm:$0xff] %v584_v55  }
  0xd7   : > { %v352_v56 = vpop.f32.mrf.mxu2  ;;  %v372_v57 = vpop.f32.mrf.mxu3 }
  0xd8   : > { %v604_v58 = vpack.c.bf16 %v352_v56, %v350_v50  ;;  %v624_v59 = vpack.c.bf16 %v372_v57, %v370_v51  ;;  %v315_v60 = vpop.f32.mrf.mxu0  ;;  %v335_v61 = vpop.f32.mrf.mxu1 }
  0xda   : > { %640 = vst [vmem:[%s777_s7 + $0x50] sm:$0xff] %v604_v58  }
  0xdb   : > { %644 = vst [vmem:[%s777_s7 + $0x70] sm:$0xff] %v624_v59  }
  0xdf   : > { %v355_v62 = vpop.f32.mrf.mxu2  ;;  %v375_v63 = vpop.f32.mrf.mxu3 }
  0xe0   : > { %v317_v0 = vpop.f32.mrf.mxu0  ;;  %v337_v1 = vpop.f32.mrf.mxu1 }
  0xe1   : > { %v569_v2 = vpack.c.bf16 %v317_v0, %v315_v60  ;;  %v589_v3 = vpack.c.bf16 %v337_v1, %v335_v61 }
  0xe3   : > { %633 = vst [vmem:[%s777_s7 + $0x18] sm:$0xff] %v569_v2  }
  0xe4   : > { %637 = vst [vmem:[%s777_s7 + $0x38] sm:$0xff] %v589_v3  }
  0xe7   : > { %v357_v4 = vpop.f32.mrf.mxu2  ;;  %v377_v5 = vpop.f32.mrf.mxu3 }
  0xe8   : > { %v609_v6 = vpack.c.bf16 %v357_v4, %v355_v62  ;;  %v629_v7 = vpack.c.bf16 %v377_v5, %v375_v63 }
  0xea   : > { %641 = vst [vmem:[%s777_s7 + $0x58] sm:$0xff] %v609_v6  }
  0xeb   : > { %645 = vst [vmem:[%s777_s7 + $0x78] sm:$0xff] %v629_v7  }
  0xec PF: > { %s12_s9 = sadd.s32 1, %s684_s9  }
  0xed   : > { %p9_p4 = scmp.ge.s32.totalorder %s12_s9, 6  }
  0xef   :  { %11 = sbr.rel (!%p9_p4) target bundleno = 1 (0x1), region = 58 }

// kernel: gcn_pia2_unlearn_forward.11
= control target key start
LH: loop header
LB: loop body
LE: loop exit
PB: predicated region body
PF: predicated region fallthrough
CT: control target
= control target key end

     0   :  { %s2912_s15 = smov 0   ;;  %s2914_s16 = smov 0   ;;  %s3737_s0 = inlined_call_operand.vmem [shape: bf16[1024,1024], index: 0, kind: input, shape index: {}]   ;;  %s3738_s1 = inlined_call_operand.vmem [shape: bf16[1024,128], index: 1, kind: input, shape index: {}]   ;;  %s3739_s2 = inlined_call_operand.vmem [shape: f32[1,128], index: 2, kind: input, shape index: {}]   ;;  %s3740_s3 = inlined_call_operand.vmem [shape: f32[1024,128], index: 3, kind: output, shape index: {0}]   ;;  %s3741_s4 = inlined_call_operand.vmem [shape: f32[1024,128], index: 4, kind: output, shape index: {1}]  }
   0x1   :  { %s2916_s17 = smov 0   ;;  %s2918_s18 = smov 0  }
   0x2   :  { %s2920_s19 = smov 0   ;;  %s2922_s20 = smov 0  }
   0x3   :  { %s2924_s21 = smov 0  }
   0x4 LB: > { %s24_s22 = sadd.s32 1, %s2876_s19  ;;  %s27_s23 = sadd.s32 1, %s2880_s20  ;;  %s2884_s21 = sphi %s2924_s21, %s15_s21   ;;  %s2880_s20 = sphi %s2922_s20, %s3747_s20   ;;  %s2876_s19 = sphi %s2920_s19, %s3746_s19   ;;  %s2872_s18 = sphi %s2918_s18, %s3745_s18   ;;  %s2868_s17 = sphi %s2916_s17, %s3744_s17   ;;  %s2864_s16 = sphi %s2914_s16, %s3743_s16   ;;  %s2860_s15 = sphi %s2912_s15, %s3742_s15  }
   0x5   : > { %p25_p0 = scmp.ge.s32.totalorder %s24_s22, 2  ;;  %p43_p1 = scmp.ne.s32.totalorder %s2864_s16, %s2860_s15 }
   0x6   : > { %p44_p2 = scmp.eq.s32.totalorder %s2884_s21, 0  ;;  %s36_s27 = sadd.s32 1, %s2864_s16 }
   0x7   : > { %s3749_s22 = smov (%p25_p0, %s24_s22), 0  ;;  %s3751_s23 = smov (!%p25_p0, %s27_s23), %s2880_s20 }
   0x8   : > { %p45_p3 = por %p44_p2, %p43_p1  ;;  %p29_p4 = scmp.ge.s32.totalorder %s3751_s23, 4 }
   0x9   : > { %s32_s24 = ssub.s32 %s2876_s19, %s3749_s22  ;;  %p2145_p6 = scmp.ge.s32.totalorder %s2884_s21, 8 }
   0xa   : > { %s3753_s23 = smov (%p29_p4, %s3751_s23), 0 }
   0xb   : > { %s31_s25 = ssub.s32 %s2880_s20, %s3753_s23  ;;  %171 = sbr.rel (%p2145_p6) target bundleno = 87 (0x57), region = 20 }
   0xc   : > { %s33_s26 = sor.u32 %s32_s24, %s31_s25 }
   0xd   : > { %p34_p5 = scmp.eq.s32.totalorder %s33_s26, 0 }
   0xf   : > { %s2963_s28 = scalar_select %p34_p5, %s2864_s16, %s36_s27  }
  0x10   : > { %174 = sbr.rel (!%p45_p3) target bundleno = 87 (0x57), region = 24  ;;  %s176_s29 = sand.u32 (%p45_p3), 1, %s2864_s16  }
  0x11   : > { %s2148_s30 = sshll.u32 (%p45_p3), %s2876_s19, 2  ;;  %s2146_s5 = sshll.u32 (%p45_p3), %s176_s29, 9 }
  0x12   : > { %s2547_s6 = sshll.u32 (%p45_p3), %s2880_s20, 8  ;;  %s2977_s12 = scalar_lea.vmem (%p45_p3), [#allocation3], %s2146_s5 }
  0x13   : > { %s182_s7 = sadd.s32 (%p45_p3), %s2547_s6, %s2148_s30 }
  0x14   : > { %s2150_s8 = sshll.u32 (%p45_p3), %s182_s7, 2 }
  0x15   : > { %s2972_s11 = scalar_lea.vmem %s3737_s0, %s2150_s8 }
  0x16   : > { %v197_v0 = vld [vmem:[%s2972_s11] sm:$0xff]  ;;  %v199_v1 = vld [vmem:[%s2972_s11 + $0x8] sm:$0xff] }
  0x17   : > { %v201_v2 = vld [vmem:[%s2972_s11 + $0x20] sm:$0xff]  ;;  %198 = vst [vmem:[%s2977_s12] sm:$0xff] %v197_v0  ;;  %v203_v3 = vld [vmem:[%s2972_s11 + $0x28] sm:$0xff] }
  0x18   : > { %200 = vst [vmem:[%s2977_s12 + $0x8] sm:$0xff] %v199_v1  ;;  %v205_v4 = vld [vmem:[%s2972_s11 + $0x40] sm:$0xff]  ;;  %v207_v5 = vld [vmem:[%s2972_s11 + $0x48] sm:$0xff] }
  0x19   : > { %202 = vst [vmem:[%s2977_s12 + $0x10] sm:$0xff] %v201_v2  ;;  %v209_v6 = vld [vmem:[%s2972_s11 + $0x60] sm:$0xff]  ;;  %v211_v7 = vld [vmem:[%s2972_s11 + $0x68] sm:$0xff] }
  0x1a   : > { %204 = vst [vmem:[%s2977_s12 + $0x18] sm:$0xff] %v203_v3  ;;  %v213_v8 = vld [vmem:[%s2972_s11 + $0x80] sm:$0xff]  ;;  %v215_v9 = vld [vmem:[%s2972_s11 + $0x88] sm:$0xff] }
  0x1b   : > { %206 = vst [vmem:[%s2977_s12 + $0x20] sm:$0xff] %v205_v4  ;;  %v217_v10 = vld [vmem:[%s2972_s11 + $0xa0] sm:$0xff]  ;;  %v219_v11 = vld [vmem:[%s2972_s11 + $0xa8] sm:$0xff] }
  0x1c   : > { %208 = vst [vmem:[%s2977_s12 + $0x28] sm:$0xff] %v207_v5  ;;  %v221_v12 = vld [vmem:[%s2972_s11 + $0xc0] sm:$0xff]  ;;  %v223_v13 = vld [vmem:[%s2972_s11 + $0xc8] sm:$0xff] }
  0x1d   : > { %210 = vst [vmem:[%s2977_s12 + $0x30] sm:$0xff] %v209_v6  ;;  %v225_v14 = vld [vmem:[%s2972_s11 + $0xe0] sm:$0xff]  ;;  %v227_v15 = vld [vmem:[%s2972_s11 + $0xe8] sm:$0xff] }
  0x1e   : > { %212 = vst [vmem:[%s2977_s12 + $0x38] sm:$0xff] %v211_v7  ;;  %v229_v16 = vld [vmem:[%s2972_s11 + $0x100] sm:$0xff]  ;;  %v231_v17 = vld [vmem:[%s2972_s11 + $0x108] sm:$0xff] }
  0x1f   : > { %214 = vst [vmem:[%s2977_s12 + $0x40] sm:$0xff] %v213_v8  ;;  %v233_v18 = vld [vmem:[%s2972_s11 + $0x120] sm:$0xff]  ;;  %v235_v19 = vld [vmem:[%s2972_s11 + $0x128] sm:$0xff] }
  0x20   : > { %216 = vst [vmem:[%s2977_s12 + $0x48] sm:$0xff] %v215_v9  ;;  %v237_v20 = vld [vmem:[%s2972_s11 + $0x140] sm:$0xff]  ;;  %v239_v21 = vld [vmem:[%s2972_s11 + $0x148] sm:$0xff] }
  0x21   : > { %218 = vst [vmem:[%s2977_s12 + $0x50] sm:$0xff] %v217_v10  ;;  %v241_v22 = vld [vmem:[%s2972_s11 + $0x160] sm:$0xff]  ;;  %v243_v23 = vld [vmem:[%s2972_s11 + $0x168] sm:$0xff] }
  0x22   : > { %220 = vst [vmem:[%s2977_s12 + $0x58] sm:$0xff] %v219_v11  ;;  %v245_v24 = vld [vmem:[%s2972_s11 + $0x180] sm:$0xff]  ;;  %v247_v25 = vld [vmem:[%s2972_s11 + $0x188] sm:$0xff] }
  0x23   : > { %222 = vst [vmem:[%s2977_s12 + $0x60] sm:$0xff] %v221_v12  ;;  %v249_v26 = vld [vmem:[%s2972_s11 + $0x1a0] sm:$0xff]  ;;  %v251_v27 = vld [vmem:[%s2972_s11 + $0x1a8] sm:$0xff] }
  0x24   : > { %224 = vst [vmem:[%s2977_s12 + $0x68] sm:$0xff] %v223_v13  ;;  %v253_v28 = vld [vmem:[%s2972_s11 + $0x1c0] sm:$0xff]  ;;  %v255_v29 = vld [vmem:[%s2972_s11 + $0x1c8] sm:$0xff] }
  0x25   : > { %226 = vst [vmem:[%s2977_s12 + $0x70] sm:$0xff] %v225_v14  ;;  %v257_v30 = vld [vmem:[%s2972_s11 + $0x1e0] sm:$0xff]  ;;  %v259_v31 = vld [vmem:[%s2972_s11 + $0x1e8] sm:$0xff] }
  0x26   : > { %228 = vst [vmem:[%s2977_s12 + $0x78] sm:$0xff] %v227_v15  ;;  %v261_v32 = vld [vmem:[%s2972_s11 + $0x200] sm:$0xff]  ;;  %v263_v33 = vld [vmem:[%s2972_s11 + $0x208] sm:$0xff] }
  0x27   : > { %230 = vst [vmem:[%s2977_s12 + $0x80] sm:$0xff] %v229_v16  ;;  %v265_v34 = vld [vmem:[%s2972_s11 + $0x220] sm:$0xff]  ;;  %v267_v35 = vld [vmem:[%s2972_s11 + $0x228] sm:$0xff] }
  0x28   : > { %232 = vst [vmem:[%s2977_s12 + $0x88] sm:$0xff] %v231_v17  ;;  %v269_v36 = vld [vmem:[%s2972_s11 + $0x240] sm:$0xff]  ;;  %v271_v37 = vld [vmem:[%s2972_s11 + $0x248] sm:$0xff] }
  0x29   : > { %234 = vst [vmem:[%s2977_s12 + $0x90] sm:$0xff] %v233_v18  ;;  %v273_v38 = vld [vmem:[%s2972_s11 + $0x260] sm:$0xff]  ;;  %v275_v39 = vld [vmem:[%s2972_s11 + $0x268] sm:$0xff] }
  0x2a   : > { %236 = vst [vmem:[%s2977_s12 + $0x98] sm:$0xff] %v235_v19  ;;  %v277_v40 = vld [vmem:[%s2972_s11 + $0x280] sm:$0xff]  ;;  %v279_v41 = vld [vmem:[%s2972_s11 + $0x288] sm:$0xff] }
  0x2b   : > { %238 = vst [vmem:[%s2977_s12 + $0xa0] sm:$0xff] %v237_v20  ;;  %v281_v42 = vld [vmem:[%s2972_s11 + $0x2a0] sm:$0xff]  ;;  %v283_v43 = vld [vmem:[%s2972_s11 + $0x2a8] sm:$0xff] }
  0x2c   : > { %240 = vst [vmem:[%s2977_s12 + $0xa8] sm:$0xff] %v239_v21  ;;  %v285_v44 = vld [vmem:[%s2972_s11 + $0x2c0] sm:$0xff]  ;;  %v287_v45 = vld [vmem:[%s2972_s11 + $0x2c8] sm:$0xff] }
  0x2d   : > { %242 = vst [vmem:[%s2977_s12 + $0xb0] sm:$0xff] %v241_v22  ;;  %v289_v46 = vld [vmem:[%s2972_s11 + $0x2e0] sm:$0xff]  ;;  %v291_v47 = vld [vmem:[%s2972_s11 + $0x2e8] sm:$0xff] }
  0x2e   : > { %244 = vst [vmem:[%s2977_s12 + $0xb8] sm:$0xff] %v243_v23  ;;  %v293_v48 = vld [vmem:[%s2972_s11 + $0x300] sm:$0xff]  ;;  %v295_v49 = vld [vmem:[%s2972_s11 + $0x308] sm:$0xff] }
  0x2f   : > { %246 = vst [vmem:[%s2977_s12 + $0xc0] sm:$0xff] %v245_v24  ;;  %v297_v50 = vld [vmem:[%s2972_s11 + $0x320] sm:$0xff]  ;;  %v299_v51 = vld [vmem:[%s2972_s11 + $0x328] sm:$0xff] }
  0x30   : > { %248 = vst [vmem:[%s2977_s12 + $0xc8] sm:$0xff] %v247_v25  ;;  %v301_v52 = vld [vmem:[%s2972_s11 + $0x340] sm:$0xff]  ;;  %v303_v53 = vld [vmem:[%s2972_s11 + $0x348] sm:$0xff] }
  0x31   : > { %250 = vst [vmem:[%s2977_s12 + $0xd0] sm:$0xff] %v249_v26  ;;  %v305_v54 = vld [vmem:[%s2972_s11 + $0x360] sm:$0xff]  ;;  %v307_v55 = vld [vmem:[%s2972_s11 + $0x368] sm:$0xff] }
  0x32   : > { %252 = vst [vmem:[%s2977_s12 + $0xd8] sm:$0xff] %v251_v27  ;;  %v309_v56 = vld [vmem:[%s2972_s11 + $0x380] sm:$0xff]  ;;  %v311_v57 = vld [vmem:[%s2972_s11 + $0x388] sm:$0xff] }
  0x33   : > { %254 = vst [vmem:[%s2977_s12 + $0xe0] sm:$0xff] %v253_v28  ;;  %v313_v58 = vld [vmem:[%s2972_s11 + $0x3a0] sm:$0xff]  ;;  %v315_v59 = vld [vmem:[%s2972_s11 + $0x3a8] sm:$0xff] }
  0x34   : > { %256 = vst [vmem:[%s2977_s12 + $0xe8] sm:$0xff] %v255_v29  ;;  %v317_v60 = vld [vmem:[%s2972_s11 + $0x3c0] sm:$0xff]  ;;  %v319_v61 = vld [vmem:[%s2972_s11 + $0x3c8] sm:$0xff] }
  0x35   : > { %258 = vst [vmem:[%s2977_s12 + $0xf0] sm:$0xff] %v257_v30  ;;  %v321_v62 = vld [vmem:[%s2972_s11 + $0x3e0] sm:$0xff]  ;;  %v323_v63 = vld [vmem:[%s2972_s11 + $0x3e8] sm:$0xff] }
  0x36   : > { %260 = vst [vmem:[%s2977_s12 + $0xf8] sm:$0xff] %v259_v31 }
  0x37   : > { %262 = vst [vmem:[%s2977_s12 + $0x100] sm:$0xff] %v261_v32 }
  0x38   : > { %264 = vst [vmem:[%s2977_s12 + $0x108] sm:$0xff] %v263_v33 }
  0x39   : > { %266 = vst [vmem:[%s2977_s12 + $0x110] sm:$0xff] %v265_v34 }
  0x3a   : > { %268 = vst [vmem:[%s2977_s12 + $0x118] sm:$0xff] %v267_v35 }
  0x3b   : > { %270 = vst [vmem:[%s2977_s12 + $0x120] sm:$0xff] %v269_v36 }
  0x3c   : > { %272 = vst [vmem:[%s2977_s12 + $0x128] sm:$0xff] %v271_v37 }
  0x3d   : > { %274 = vst [vmem:[%s2977_s12 + $0x130] sm:$0xff] %v273_v38 }
  0x3e   : > { %276 = vst [vmem:[%s2977_s12 + $0x138] sm:$0xff] %v275_v39 }
  0x3f   : > { %278 = vst [vmem:[%s2977_s12 + $0x140] sm:$0xff] %v277_v40 }
  0x40   : > { %280 = vst [vmem:[%s2977_s12 + $0x148] sm:$0xff] %v279_v41 }
  0x41   : > { %282 = vst [vmem:[%s2977_s12 + $0x150] sm:$0xff] %v281_v42 }
  0x42   : > { %284 = vst [vmem:[%s2977_s12 + $0x158] sm:$0xff] %v283_v43 }
  0x43   : > { %286 = vst [vmem:[%s2977_s12 + $0x160] sm:$0xff] %v285_v44 }
  0x44   : > { %288 = vst [vmem:[%s2977_s12 + $0x168] sm:$0xff] %v287_v45 }
  0x45   : > { %290 = vst [vmem:[%s2977_s12 + $0x170] sm:$0xff] %v289_v46 }
  0x46   : > { %292 = vst [vmem:[%s2977_s12 + $0x178] sm:$0xff] %v291_v47 }
  0x47   : > { %294 = vst [vmem:[%s2977_s12 + $0x180] sm:$0xff] %v293_v48 }
  0x48   : > { %296 = vst [vmem:[%s2977_s12 + $0x188] sm:$0xff] %v295_v49 }
  0x49   : > { %298 = vst [vmem:[%s2977_s12 + $0x190] sm:$0xff] %v297_v50 }
  0x4a   : > { %300 = vst [vmem:[%s2977_s12 + $0x198] sm:$0xff] %v299_v51 }
  0x4b   : > { %302 = vst [vmem:[%s2977_s12 + $0x1a0] sm:$0xff] %v301_v52 }
  0x4c   : > { %304 = vst [vmem:[%s2977_s12 + $0x1a8] sm:$0xff] %v303_v53 }
  0x4d   : > { %306 = vst [vmem:[%s2977_s12 + $0x1b0] sm:$0xff] %v305_v54 }
  0x4e   : > { %308 = vst [vmem:[%s2977_s12 + $0x1b8] sm:$0xff] %v307_v55 }
  0x4f   : > { %310 = vst [vmem:[%s2977_s12 + $0x1c0] sm:$0xff] %v309_v56 }
  0x50   : > { %312 = vst [vmem:[%s2977_s12 + $0x1c8] sm:$0xff] %v311_v57 }
  0x51   : > { %314 = vst [vmem:[%s2977_s12 + $0x1d0] sm:$0xff] %v313_v58 }
  0x52   : > { %316 = vst [vmem:[%s2977_s12 + $0x1d8] sm:$0xff] %v315_v59 }
  0x53   : > { %318 = vst [vmem:[%s2977_s12 + $0x1e0] sm:$0xff] %v317_v60 }
  0x54   : > { %320 = vst [vmem:[%s2977_s12 + $0x1e8] sm:$0xff] %v319_v61 }
  0x55   : > { %322 = vst [vmem:[%s2977_s12 + $0x1f0] sm:$0xff] %v321_v62 }
  0x56   : > { %324 = vst [vmem:[%s2977_s12 + $0x1f8] sm:$0xff] %v323_v63 }
  0x57 PF: > { %p2151_p7 = scmp.ge.s32.totalorder %s2884_s21, 1  ;;  %p338_p8 = scmp.lt.s32.totalorder %s2884_s21, 9 }
  0x59   : > { %p339_p9 = pnand %p2151_p7, %p338_p8 }
  0x5a   : > { %s345_s13 = sand.u32 (!%p339_p9), 1, %s2860_s15   ;;  %s2153_s14 = sshll.u32 (!%p339_p9), %s2868_s17, 6 }
  0x5b   : > { %342 = sbr.rel (%p339_p9) target bundleno = 909 (0x38d), region = 51  ;;  %s2152_s24 = sshll.u32 (!%p339_p9), %s345_s13, 9 }
  0x5c   : > { %p383_p10 = scmp.lt.s32.totalorder (!%p339_p9), %s2153_s14, 127  ;;  %s2155_s25 = sshll.u32 (!%p339_p9), %s2872_s18, 5 }
  0x5d   : > { %p389_p11 = scmp.lt.s32.totalorder (!%p339_p9), %s2155_s25, 127  ;;  %s3124_s18 = scalar_lea.vmem (!%p339_p9), [#allocation3], %s2152_s24 }
  0x5e   : > { %p2159_p12 = scmp.ne.s32.totalorder (!%p339_p9), %s2868_s17, 0 }
  0x60   : > { %s3755_s14 = smov (!%p383_p10, %s2153_s14), 127  ;;  %s3757_s25 = smov (!%p389_p11, %s2155_s25), 127 }
  0x61   : > { %s2154_s26 = sshll.u32 %s3755_s14, 2  ;;  %s2156_s5 = sshll.u32 %s3757_s25, 3 }
  0x62   : > { %s3112_s30 = scalar_lea.vmem %s3738_s1, %s2154_s26  ;;  %s3117_s8 = scalar_lea.vmem %s3740_s3, %s2156_s5 }
  0x63   : > { %s3122_s10 = scalar_lea.vmem %s3741_s4, %s2156_s5  ;;  %403 = sbr.rel (%p2159_p12) target bundleno = 137 (0x89), region = 59 }
  0x68   : > { %v2886_v0 = vmov 0.0  }
  0x69   : > { %404 = vst [vmem:[#allocation2 + $0xb0] sm:$0xff] %v2886_v0 }
  0x6a   : > { %405 = vst [vmem:[#allocation2] sm:$0xff] %v2886_v0 }
  0x6b   : > { %406 = vst [vmem:[#allocation2 + $0xd8] sm:$0xff] %v2886_v0 }
  0x6c   : > { %407 = vst [vmem:[#allocation2 + $0x18] sm:$0xff] %v2886_v0 }
  0x6d   : > { %408 = vst [vmem:[#allocation2 + $0x50] sm:$0xff] %v2886_v0 }
  0x6e   : > { %409 = vst [vmem:[#allocation2 + $0x68] sm:$0xff] %v2886_v0 }
  0x6f   : > { %410 = vst [vmem:[#allocation2 + $0x30] sm:$0xff] %v2886_v0 }
  0x70   : > { %411 = vst [vmem:[#allocation2 + $0x48] sm:$0xff] %v2886_v0 }
  0x71   : > { %412 = vst [vmem:[#allocation2 + $0x80] sm:$0xff] %v2886_v0 }
  0x72   : > { %413 = vst [vmem:[#allocation2 + $0x88] sm:$0xff] %v2886_v0 }
  0x73   : > { %414 = vst [vmem:[#allocation2 + $0xe8] sm:$0xff] %v2886_v0 }
  0x74   : > { %415 = vst [vmem:[#allocation2 + $0xb8] sm:$0xff] %v2886_v0 }
  0x75   : > { %416 = vst [vmem:[#allocation2 + $0x60] sm:$0xff] %v2886_v0 }
  0x76   : > { %417 = vst [vmem:[#allocation2 + $0xf0] sm:$0xff] %v2886_v0 }
  0x77   : > { %418 = vst [vmem:[#allocation2 + $0x8] sm:$0xff] %v2886_v0 }
  0x78   : > { %419 = vst [vmem:[#allocation2 + $0x78] sm:$0xff] %v2886_v0 }
  0x79   : > { %420 = vst [vmem:[#allocation2 + $0x38] sm:$0xff] %v2886_v0 }
  0x7a   : > { %421 = vst [vmem:[#allocation2 + $0x58] sm:$0xff] %v2886_v0 }
  0x7b   : > { %422 = vst [vmem:[#allocation2 + $0x40] sm:$0xff] %v2886_v0 }
  0x7c   : > { %423 = vst [vmem:[#allocation2 + $0xc8] sm:$0xff] %v2886_v0 }
  0x7d   : > { %424 = vst [vmem:[#allocation2 + $0xe0] sm:$0xff] %v2886_v0 }
  0x7e   : > { %425 = vst [vmem:[#allocation2 + $0x90] sm:$0xff] %v2886_v0 }
  0x7f   : > { %426 = vst [vmem:[#allocation2 + $0x70] sm:$0xff] %v2886_v0 }
  0x80   : > { %427 = vst [vmem:[#allocation2 + $0xc0] sm:$0xff] %v2886_v0 }
  0x81   : > { %428 = vst [vmem:[#allocation2 + $0xa8] sm:$0xff] %v2886_v0 }
  0x82   : > { %429 = vst [vmem:[#allocation2 + $0xd0] sm:$0xff] %v2886_v0 }
  0x83   : > { %430 = vst [vmem:[#allocation2 + $0x10] sm:$0xff] %v2886_v0 }
  0x84   : > { %431 = vst [vmem:[#allocation2 + $0x28] sm:$0xff] %v2886_v0 }
  0x85   : > { %432 = vst [vmem:[#allocation2 + $0xa0] sm:$0xff] %v2886_v0 }
  0x86   : > { %433 = vst [vmem:[#allocation2 + $0xf8] sm:$0xff] %v2886_v0 }
  0x87   : > { %434 = vst [vmem:[#allocation2 + $0x20] sm:$0xff] %v2886_v0 }
  0x88   : > { %435 = vst [vmem:[#allocation2 + $0x98] sm:$0xff] %v2886_v0 }
  0x89 PF: > { %v2619_v1 = vld [vmem:[%s3112_s30 + $0x38] sm:$0xff]  ;;  %v2618_v5 = vld [vmem:[%s3112_s30 + $0x30] sm:$0xff]  ;;  %v2617_v9 = vld [vmem:[%s3112_s30 + $0x28] sm:$0xff]  ;;  %p2544_p13 = scmp.ne.s32.totalorder %s2868_s17, 1 }
  0x8a   : > { %v2627_v2 = vld [vmem:[%s3112_s30 + $0x78] sm:$0xff]  ;;  %1108 = vmatpush.bf16.msra.mxu0 %v2619_v1  ;;  %v2626_v6 = vld [vmem:[%s3112_s30 + $0x70] sm:$0xff]  ;;  %v2625_v10 = vld [vmem:[%s3112_s30 + $0x68] sm:$0xff] }
  0x8b   : > { %v2635_v3 = vld [vmem:[%s3112_s30 + $0xb8] sm:$0xff]  ;;  %1197 = vmatpush.bf16.msra.mxu1 %v2627_v2  ;;  %v2634_v7 = vld [vmem:[%s3112_s30 + $0xb0] sm:$0xff]  ;;  %v2633_v11 = vld [vmem:[%s3112_s30 + $0xa8] sm:$0xff] }
  0x8c   : > { %v2643_v4 = vld [vmem:[%s3112_s30 + $0xf8] sm:$0xff]  ;;  %1286 = vmatpush.bf16.msra.mxu2 %v2635_v3  ;;  %v2642_v8 = vld [vmem:[%s3112_s30 + $0xf0] sm:$0xff]  ;;  %v2641_v12 = vld [vmem:[%s3112_s30 + $0xe8] sm:$0xff] }
  0x8d   : > { %1375 = vmatpush.bf16.msra.mxu3 %v2643_v4  ;;  %v2616_v13 = vld [vmem:[%s3112_s30 + $0x20] sm:$0xff]  ;;  %v2615_v17 = vld [vmem:[%s3112_s30 + $0x18] sm:$0xff]  ;;  %v2614_v21 = vld [vmem:[%s3112_s30 + $0x10] sm:$0xff] }
  0x8e   : > { %1109 = vmatpush.bf16.msra.mxu0 %v2618_v5  ;;  %v2624_v14 = vld [vmem:[%s3112_s30 + $0x60] sm:$0xff]  ;;  %v2623_v18 = vld [vmem:[%s3112_s30 + $0x58] sm:$0xff]  ;;  %v2622_v22 = vld [vmem:[%s3112_s30 + $0x50] sm:$0xff] }
  0x8f   : > { %1198 = vmatpush.bf16.msra.mxu1 %v2626_v6  ;;  %v2632_v15 = vld [vmem:[%s3112_s30 + $0xa0] sm:$0xff]  ;;  %v2631_v19 = vld [vmem:[%s3112_s30 + $0x98] sm:$0xff]  ;;  %v2630_v23 = vld [vmem:[%s3112_s30 + $0x90] sm:$0xff] }
  0x90   : > { %1287 = vmatpush.bf16.msra.mxu2 %v2634_v7  ;;  %v2640_v16 = vld [vmem:[%s3112_s30 + $0xe0] sm:$0xff]  ;;  %v2639_v20 = vld [vmem:[%s3112_s30 + $0xd8] sm:$0xff]  ;;  %v2638_v24 = vld [vmem:[%s3112_s30 + $0xd0] sm:$0xff] }
  0x91   : > { %1376 = vmatpush.bf16.msra.mxu3 %v2642_v8  ;;  %v2613_v25 = vld [vmem:[%s3112_s30 + $0x8] sm:$0xff]  ;;  %v2612_v29 = vld [vmem:[%s3112_s30] sm:$0xff]  ;;  %v2550_v34 = vld [vmem:[%s3124_s18 + $0xc] sm:$0xf0] }
  0x92   : > { %1110 = vmatpush.bf16.msra.mxu0 %v2617_v9  ;;  %v2621_v26 = vld [vmem:[%s3112_s30 + $0x48] sm:$0xff]  ;;  %v2620_v30 = vld [vmem:[%s3112_s30 + $0x40] sm:$0xff]  ;;  %v2164_v36 = vld [vmem:[%s3124_s18 + $0x10] sm:$0xf0] }
  0x93   : > { %1199 = vmatpush.bf16.msra.mxu1 %v2625_v10  ;;  %v2629_v27 = vld [vmem:[%s3112_s30 + $0x88] sm:$0xff]  ;;  %v2628_v31 = vld [vmem:[%s3112_s30 + $0x80] sm:$0xff]  ;;  %v2551_v38 = vld [vmem:[%s3124_s18 + $0x14] sm:$0xf0] }
  0x94   : > { %1288 = vmatpush.bf16.msra.mxu2 %v2633_v11  ;;  %v2637_v28 = vld [vmem:[%s3112_s30 + $0xc8] sm:$0xff]  ;;  %v2636_v32 = vld [vmem:[%s3112_s30 + $0xc0] sm:$0xff]  ;;  %v2172_v40 = vld [vmem:[%s3124_s18 + $0x18] sm:$0xf0] }
  0x95   : > { %1377 = vmatpush.bf16.msra.mxu3 %v2641_v12  ;;  %v2162_v33 = vld [vmem:[%s3124_s18] sm:$0xf]  ;;  %v2548_v35 = vld [vmem:[%s3124_s18 + $0x4] sm:$0xf]  ;;  %v2170_v37 = vld [vmem:[%s3124_s18 + $0x8] sm:$0xf] }
  0x96   : > { %1111 = vmatpush.bf16.msra.mxu0 %v2616_v13  ;;  %v2549_v39 = vld [vmem:[%s3124_s18 + $0xc] sm:$0xf]  ;;  %v2163_v41 = vor.u32 %v2550_v34, %v2162_v33  ;;  %v2167_v42 = vor.u32 %v2548_v35, %v2164_v36  ;;  %v2171_v43 = vor.u32 %v2551_v38, %v2170_v37  ;;  %v2178_v45 = vld [vmem:[%s3124_s18 + $0x20] sm:$0xf]  ;;  %v2554_v46 = vld [vmem:[%s3124_s18 + $0x2c] sm:$0xf0] }
  0x97   : > { %1200 = vmatpush.bf16.msra.mxu1 %v2624_v14  ;;  %v2175_v44 = vor.u32 %v2549_v39, %v2172_v40  ;;  %v2552_v47 = vld [vmem:[%s3124_s18 + $0x24] sm:$0xf]  ;;  %v2180_v48 = vld [vmem:[%s3124_s18 + $0x30] sm:$0xf0]  ;;  %v2186_v49 = vld [vmem:[%s3124_s18 + $0x28] sm:$0xf]  ;;  %v2179_v53 = vor.u32 %v2554_v46, %v2178_v45 }
  0x98   : > { %1289 = vmatpush.bf16.msra.mxu2 %v2632_v15  ;;  %v2555_v50 = vld [vmem:[%s3124_s18 + $0x34] sm:$0xf0]  ;;  %v2553_v51 = vld [vmem:[%s3124_s18 + $0x2c] sm:$0xf]  ;;  %v2188_v52 = vld [vmem:[%s3124_s18 + $0x38] sm:$0xf0]  ;;  %v2183_v54 = vor.u32 %v2552_v47, %v2180_v48 }
  0x99   : > { %1378 = vmatpush.bf16.msra.mxu3 %v2640_v16  ;;  %v2187_v55 = vor.u32 %v2555_v50, %v2186_v49  ;;  %v2191_v56 = vor.u32 %v2553_v51, %v2188_v52  ;;  %v2194_v57 = vld [vmem:[%s3124_s18 + $0x40] sm:$0xf]  ;;  %v2558_v58 = vld [vmem:[%s3124_s18 + $0x4c] sm:$0xf0]  ;;  %v2556_v59 = vld [vmem:[%s3124_s18 + $0x44] sm:$0xf] }
  0x9a   : > { %1112 = vmatpush.bf16.msra.mxu0 %v2615_v17  ;;  %v2196_v60 = vld [vmem:[%s3124_s18 + $0x50] sm:$0xf0]  ;;  %v2202_v61 = vld [vmem:[%s3124_s18 + $0x48] sm:$0xf]  ;;  %v2559_v62 = vld [vmem:[%s3124_s18 + $0x54] sm:$0xf0]  ;;  %v2195_v1 = vor.u32 %v2558_v58, %v2194_v57 }
  0x9b   : > { %1201 = vmatpush.bf16.msra.mxu1 %v2623_v18  ;;  %v2557_v63 = vld [vmem:[%s3124_s18 + $0x4c] sm:$0xf]  ;;  %v2204_v0 = vld [vmem:[%s3124_s18 + $0x58] sm:$0xf0]  ;;  %v2199_v2 = vor.u32 %v2556_v59, %v2196_v60  ;;  %v2203_v3 = vor.u32 %v2559_v62, %v2202_v61  ;;  %v2210_v5 = vld [vmem:[%s3124_s18 + $0x60] sm:$0xf] }
  0x9c   : > { %1290 = vmatpush.bf16.msra.mxu2 %v2631_v19  ;;  %v2207_v4 = vor.u32 %v2557_v63, %v2204_v0  ;;  %v2562_v6 = vld [vmem:[%s3124_s18 + $0x6c] sm:$0xf0]  ;;  %v2560_v7 = vld [vmem:[%s3124_s18 + $0x64] sm:$0xf]  ;;  %v2212_v8 = vld [vmem:[%s3124_s18 + $0x70] sm:$0xf0] }
  0x9d   : > { %1379 = vmatpush.bf16.msra.mxu3 %v2639_v20  ;;  %v2218_v9 = vld [vmem:[%s3124_s18 + $0x68] sm:$0xf]  ;;  %v2563_v10 = vld [vmem:[%s3124_s18 + $0x74] sm:$0xf0]  ;;  %v2561_v11 = vld [vmem:[%s3124_s18 + $0x6c] sm:$0xf]  ;;  %v2211_v13 = vor.u32 %v2562_v6, %v2210_v5  ;;  %v2215_v14 = vor.u32 %v2560_v7, %v2212_v8 }
  0x9e   : > { %1113 = vmatpush.bf16.msra.mxu0 %v2614_v21  ;;  %v2220_v12 = vld [vmem:[%s3124_s18 + $0x78] sm:$0xf0]  ;;  %v2219_v15 = vor.u32 %v2563_v10, %v2218_v9  ;;  %v2226_v17 = vld [vmem:[%s3124_s18 + $0x80] sm:$0xf]  ;;  %v2566_v18 = vld [vmem:[%s3124_s18 + $0x8c] sm:$0xf0] }
  0x9f   : > { %1202 = vmatpush.bf16.msra.mxu1 %v2622_v22  ;;  %v2223_v16 = vor.u32 %v2561_v11, %v2220_v12  ;;  %v2564_v19 = vld [vmem:[%s3124_s18 + $0x84] sm:$0xf]  ;;  %v2228_v20 = vld [vmem:[%s3124_s18 + $0x90] sm:$0xf0]  ;;  %v2234_v21 = vld [vmem:[%s3124_s18 + $0x88] sm:$0xf] }
  0xa0   : > { %1291 = vmatpush.bf16.msra.mxu2 %v2630_v23  ;;  %v2567_v22 = vld [vmem:[%s3124_s18 + $0x94] sm:$0xf0]  ;;  %v2565_v23 = vld [vmem:[%s3124_s18 + $0x8c] sm:$0xf]  ;;  %v2250_v33 = vld [vmem:[%s3124_s18 + $0xa8] sm:$0xf] }
  0xa1   : > { %1380 = vmatpush.bf16.msra.mxu3 %v2638_v24  ;;  %v2236_v24 = vld [vmem:[%s3124_s18 + $0x98] sm:$0xf0]  ;;  %v2571_v34 = vld [vmem:[%s3124_s18 + $0xb4] sm:$0xf0]  ;;  %v2569_v35 = vld [vmem:[%s3124_s18 + $0xac] sm:$0xf] }
  0xa2   : > { %1114 = vmatpush.bf16.msra.mxu0 %v2613_v25  ;;  %v2227_v25 = vor.u32 %v2566_v18, %v2226_v17  ;;  %v2252_v36 = vld [vmem:[%s3124_s18 + $0xb8] sm:$0xf0]  ;;  %v2251_v39 = vor.u32 %v2571_v34, %v2250_v33  ;;  %v2266_v45 = vld [vmem:[%s3124_s18 + $0xc8] sm:$0xf]  ;;  %v2575_v46 = vld [vmem:[%s3124_s18 + $0xd4] sm:$0xf0] }
  0xa3   : > { %1203 = vmatpush.bf16.msra.mxu1 %v2621_v26  ;;  %v2231_v26 = vor.u32 %v2564_v19, %v2228_v20  ;;  %v2255_v40 = vor.u32 %v2569_v35, %v2252_v36  ;;  %v2573_v47 = vld [vmem:[%s3124_s18 + $0xcc] sm:$0xf]  ;;  %v2268_v48 = vld [vmem:[%s3124_s18 + $0xd8] sm:$0xf0]  ;;  %v2267_v51 = vor.u32 %v2575_v46, %v2266_v45  ;;  %v2282_v57 = vld [vmem:[%s3124_s18 + $0xe8] sm:$0xf] }
  0xa4   : > { %1292 = vmatpush.bf16.msra.mxu2 %v2629_v27  ;;  %v2235_v27 = vor.u32 %v2567_v22, %v2234_v21  ;;  %v2271_v52 = vor.u32 %v2573_v47, %v2268_v48  ;;  %v2579_v58 = vld [vmem:[%s3124_s18 + $0xf4] sm:$0xf0]  ;;  %v2577_v59 = vld [vmem:[%s3124_s18 + $0xec] sm:$0xf]  ;;  %v2284_v60 = vld [vmem:[%s3124_s18 + $0xf8] sm:$0xf0] }
  0xa5   : > { %1381 = vmatpush.bf16.msra.mxu3 %v2637_v28  ;;  %v2239_v28 = vor.u32 %v2565_v23, %v2236_v24  ;;  %v2283_v63 = vor.u32 %v2579_v58, %v2282_v57  ;;  %v2287_v0 = vor.u32 %v2577_v59, %v2284_v60  ;;  %v2298_v5 = vld [vmem:[%s3124_s18 + $0x108] sm:$0xf]  ;;  %v2583_v6 = vld [vmem:[%s3124_s18 + $0x114] sm:$0xf0]  ;;  %v2581_v7 = vld [vmem:[%s3124_s18 + $0x10c] sm:$0xf] }
  0xa6   : > { %1115 = vmatpush.bf16.msra.mxu0 %v2612_v29  ;;  %v2242_v29 = vld [vmem:[%s3124_s18 + $0xa0] sm:$0xf]  ;;  %v2300_v8 = vld [vmem:[%s3124_s18 + $0x118] sm:$0xf0]  ;;  %v436_v21 = vld [vmem:[#allocation2 + $0xb0] sm:$0xff] }
  0xa7   : > { %1204 = vmatpush.bf16.msra.mxu1 %v2620_v30  ;;  %v2570_v30 = vld [vmem:[%s3124_s18 + $0xac] sm:$0xf0]  ;;  %v2306_v23 = vld [vmem:[%s3124_s18 + $0x120] sm:$0xf]  ;;  %v2324_v57 = vld [vmem:[%s3124_s18 + $0x150] sm:$0xf0] }
  0xa8   : > { %1293 = vmatpush.bf16.msra.mxu2 %v2628_v31  ;;  %v2568_v31 = vld [vmem:[%s3124_s18 + $0xa4] sm:$0xf]  ;;  %v2243_v37 = vor.u32 %v2570_v30, %v2242_v29  ;;  %v2586_v24 = vld [vmem:[%s3124_s18 + $0x12c] sm:$0xf0]  ;;  %v2587_v29 = vld [vmem:[%s3124_s18 + $0x134] sm:$0xf0] }
  0xa9   : > { %1382 = vmatpush.bf16.msra.mxu3 %v2636_v32  ;;  %1116 = vmatmul.bf16.vlgmr.msra.gmra.mxu0 %v2163_v41  ;;  %v2244_v32 = vld [vmem:[%s3124_s18 + $0xb0] sm:$0xf0]  ;;  %v2258_v41 = vld [vmem:[%s3124_s18 + $0xc0] sm:$0xf]  ;;  %v2585_v30 = vld [vmem:[%s3124_s18 + $0x12c] sm:$0xf]  ;;  %v2307_v35 = vor.u32 %v2586_v24, %v2306_v23 }
  0xaa   : > { %1205 = vmatmul.bf16.vlgmr.msra.gmra.mxu1 %v2167_v42  ;;  %v2247_v38 = vor.u32 %v2568_v31, %v2244_v32  ;;  %v2574_v42 = vld [vmem:[%s3124_s18 + $0xcc] sm:$0xf0]  ;;  %v2316_v31 = vld [vmem:[%s3124_s18 + $0x138] sm:$0xf0]  ;;  %v2330_v58 = vld [vmem:[%s3124_s18 + $0x148] sm:$0xf] }
  0xab   : > { %1294 = vmatmul.bf16.vlgmr.msra.gmra.mxu2 %v2171_v43  ;;  %v2572_v43 = vld [vmem:[%s3124_s18 + $0xc4] sm:$0xf]  ;;  %v2259_v49 = vor.u32 %v2574_v42, %v2258_v41  ;;  %v2319_v41 = vor.u32 %v2585_v30, %v2316_v31  ;;  %v2591_v59 = vld [vmem:[%s3124_s18 + $0x154] sm:$0xf0]  ;;  %v2589_v60 = vld [vmem:[%s3124_s18 + $0x14c] sm:$0xf] }
  0xac   : > { %1383 = vmatmul.bf16.vlgmr.msra.gmra.mxu3 %v2175_v44  ;;  %v2260_v44 = vld [vmem:[%s3124_s18 + $0xd0] sm:$0xf0]  ;;  %v437_v42 = vld [vmem:[#allocation2] sm:$0xff]  ;;  %v2346_v24 = vld [vmem:[%s3124_s18 + $0x168] sm:$0xf] }
  0xad   : > { %v2263_v50 = vor.u32 %v2572_v43, %v2260_v44  ;;  %v2340_v23 = vld [vmem:[%s3124_s18 + $0x170] sm:$0xf0] }
  0xb9   : > { %1121 = vmatmul.bf16.gmra.mxu0 %v2179_v53  ;;  %v2274_v53 = vld [vmem:[%s3124_s18 + $0xe0] sm:$0xf] }
  0xba   : > { %1210 = vmatmul.bf16.gmra.mxu1 %v2183_v54  ;;  %v2578_v54 = vld [vmem:[%s3124_s18 + $0xec] sm:$0xf0] }
  0xbb   : > { %1299 = vmatmul.bf16.gmra.mxu2 %v2187_v55  ;;  %v2576_v55 = vld [vmem:[%s3124_s18 + $0xe4] sm:$0xf]  ;;  %v2275_v61 = vor.u32 %v2578_v54, %v2274_v53  ;;  %v2322_v53 = vld [vmem:[%s3124_s18 + $0x140] sm:$0xf]  ;;  %v2590_v54 = vld [vmem:[%s3124_s18 + $0x14c] sm:$0xf0] }
  0xbc   : > { %1388 = vmatmul.bf16.gmra.mxu3 %v2191_v56  ;;  %v2276_v56 = vld [vmem:[%s3124_s18 + $0xf0] sm:$0xf0] }
  0xbd   : > { %v2279_v62 = vor.u32 %v2576_v55, %v2276_v56  ;;  %v2588_v56 = vld [vmem:[%s3124_s18 + $0x144] sm:$0xf] }
  0xc9   : > { %1126 = vmatmul.bf16.gmra.mxu0 %v2195_v1  ;;  %v2290_v1 = vld [vmem:[%s3124_s18 + $0x100] sm:$0xf] }
  0xca   : > { %1215 = vmatmul.bf16.gmra.mxu1 %v2199_v2  ;;  %v2582_v2 = vld [vmem:[%s3124_s18 + $0x10c] sm:$0xf0] }
  0xcb   : > { %1304 = vmatmul.bf16.gmra.mxu2 %v2203_v3  ;;  %v2580_v3 = vld [vmem:[%s3124_s18 + $0x104] sm:$0xf]  ;;  %v2291_v9 = vor.u32 %v2582_v2, %v2290_v1  ;;  %v2323_v1 = vor.u32 %v2590_v54, %v2322_v53  ;;  %v2327_v2 = vor.u32 %v2588_v56, %v2324_v57  ;;  %v2356_v53 = vld [vmem:[%s3124_s18 + $0x190] sm:$0xf0]  ;;  %v2362_v54 = vld [vmem:[%s3124_s18 + $0x188] sm:$0xf] }
  0xcc   : > { %1393 = vmatmul.bf16.gmra.mxu3 %v2207_v4  ;;  %v2292_v4 = vld [vmem:[%s3124_s18 + $0x110] sm:$0xf0]  ;;  %v2597_v56 = vld [vmem:[%s3124_s18 + $0x18c] sm:$0xf]  ;;  %v2364_v57 = vld [vmem:[%s3124_s18 + $0x198] sm:$0xf0] }
  0xcd   : > { %v2295_v10 = vor.u32 %v2580_v3, %v2292_v4 }
  0xd9   : > { %1131 = vmatmul.bf16.gmra.mxu0 %v2211_v13  ;;  %v2299_v13 = vor.u32 %v2583_v6, %v2298_v5  ;;  %v2331_v6 = vor.u32 %v2591_v59, %v2330_v58 }
  0xda   : > { %1220 = vmatmul.bf16.gmra.mxu1 %v2215_v14  ;;  %v2303_v14 = vor.u32 %v2581_v7, %v2300_v8  ;;  %v439_v8 = vld [vmem:[#allocation2 + $0x18] sm:$0xff] }
  0xdb   : > { %1309 = vmatmul.bf16.gmra.mxu2 %v2219_v15 }
  0xdc   : > { %1398 = vmatmul.bf16.gmra.mxu3 %v2223_v16 }
  0xe9   : > { %1136 = vmatmul.bf16.gmra.mxu0 %v2227_v25 }
  0xea   : > { %1225 = vmatmul.bf16.gmra.mxu1 %v2231_v26  ;;  %v2584_v26 = vld [vmem:[%s3124_s18 + $0x124] sm:$0xf] }
  0xeb   : > { %1314 = vmatmul.bf16.gmra.mxu2 %v2235_v27  ;;  %v2308_v27 = vld [vmem:[%s3124_s18 + $0x130] sm:$0xf0] }
  0xec   : > { %1403 = vmatmul.bf16.gmra.mxu3 %v2239_v28  ;;  %v2314_v28 = vld [vmem:[%s3124_s18 + $0x128] sm:$0xf]  ;;  %v2311_v36 = vor.u32 %v2584_v26, %v2308_v27  ;;  %v2593_v26 = vld [vmem:[%s3124_s18 + $0x16c] sm:$0xf]  ;;  %v2348_v27 = vld [vmem:[%s3124_s18 + $0x178] sm:$0xf0] }
  0xf9   : > { %1141 = vmatmul.bf16.gmra.mxu0 %v2243_v37 }
  0xfa   : > { %1230 = vmatmul.bf16.gmra.mxu1 %v2247_v38 }
  0xfb   : > { %1319 = vmatmul.bf16.gmra.mxu2 %v2251_v39 }
  0xfc   : > { %1408 = vmatmul.bf16.gmra.mxu3 %v2255_v40  ;;  %v2315_v40 = vor.u32 %v2587_v29, %v2314_v28 }
 0x109   : > { %1146 = vmatmul.bf16.gmra.mxu0 %v2259_v49 }
 0x10a   : > { %1235 = vmatmul.bf16.gmra.mxu1 %v2263_v50 }
 0x10b   : > { %1324 = vmatmul.bf16.gmra.mxu2 %v2267_v51  ;;  %v438_v51 = vld [vmem:[#allocation2 + $0xd8] sm:$0xff] }
 0x10c   : > { %1413 = vmatmul.bf16.gmra.mxu3 %v2271_v52 }
 0x119   : > { %1151 = vmatmul.bf16.gmra.mxu0 %v2275_v61  ;;  %v2332_v61 = vld [vmem:[%s3124_s18 + $0x158] sm:$0xf0] }
 0x11a   : > { %1240 = vmatmul.bf16.gmra.mxu1 %v2279_v62  ;;  %v2335_v7 = vor.u32 %v2589_v60, %v2332_v61 }
 0x11b   : > { %1329 = vmatmul.bf16.gmra.mxu2 %v2283_v63 }
 0x11c   : > { %1418 = vmatmul.bf16.gmra.mxu3 %v2287_v0 }
 0x126   : > { %v1117_v11 = vpop.f32.mrf.mxu0 }
 0x127   : > { %v1206_v12 = vpop.f32.mrf.mxu1 }
 0x128   : > { %v1207_v15 = vadd.f32 %v1206_v12, %v1117_v11 }
 0x129   : > { %1156 = vmatmul.bf16.gmra.mxu0 %v2291_v9 }
 0x12a   : > { %1245 = vmatmul.bf16.gmra.mxu1 %v2295_v10 }
 0x12b   : > { %1334 = vmatmul.bf16.gmra.mxu2 %v2299_v13 }
 0x12c   : > { %1423 = vmatmul.bf16.gmra.mxu3 %v2303_v14 }
 0x12e   : > { %v1295_v16 = vpop.f32.mrf.mxu2  ;;  %v1119_v19 = vpop.f32.mrf.mxu0 }
 0x12f   : > { %v1384_v17 = vpop.f32.mrf.mxu3  ;;  %v1296_v18 = vadd.f32 %v1295_v16, %v1207_v15  ;;  %v1208_v20 = vpop.f32.mrf.mxu1 }
 0x130   : > { %v1209_v32 = vadd.f32 %v1208_v20, %v1119_v19  ;;  %v2338_v19 = vld [vmem:[%s3124_s18 + $0x160] sm:$0xf]  ;;  %v2594_v20 = vld [vmem:[%s3124_s18 + $0x16c] sm:$0xf0] }
 0x131   : > { %v1385_v22 = vadd.f32 %v1384_v17, %v1296_v18  ;;  %v440_v17 = vld [vmem:[#allocation2 + $0x50] sm:$0xff]  ;;  %v2339_v31 = vor.u32 %v2594_v20, %v2338_v19  ;;  %v2378_v20 = vld [vmem:[%s3124_s18 + $0x1a8] sm:$0xf] }
 0x132   : > { %v2372_v19 = vld [vmem:[%s3124_s18 + $0x1b0] sm:$0xf0] }
 0x133   : > { %v1464_v25 = vadd.f32 %v1385_v22, %v436_v21  ;;  %v2592_v22 = vld [vmem:[%s3124_s18 + $0x164] sm:$0xf] }
 0x135   : > { %1496 = vst [vmem:[#allocation2 + $0xb0] sm:$0xff] %v1464_v25  ;;  %v2595_v25 = vld [vmem:[%s3124_s18 + $0x174] sm:$0xf0] }
 0x136   : > { %v1297_v33 = vpop.f32.mrf.mxu2  ;;  %v1122_v38 = vpop.f32.mrf.mxu0 }
 0x137   : > { %v1386_v34 = vpop.f32.mrf.mxu3  ;;  %v1298_v37 = vadd.f32 %v1297_v33, %v1209_v32  ;;  %v1211_v39 = vpop.f32.mrf.mxu1  ;;  %v2343_v32 = vor.u32 %v2592_v22, %v2340_v23  ;;  %v2601_v22 = vld [vmem:[%s3124_s18 + $0x1ac] sm:$0xf]  ;;  %v2380_v23 = vld [vmem:[%s3124_s18 + $0x1b8] sm:$0xf0] }
 0x138   : > { %v1212_v45 = vadd.f32 %v1211_v39, %v1122_v38  ;;  %v441_v38 = vld [vmem:[#allocation2 + $0x68] sm:$0xff] }
 0x139   : > { %v1387_v43 = vadd.f32 %v1386_v34, %v1298_v37  ;;  %1161 = vmatmul.bf16.gmra.mxu0 %v2307_v35  ;;  %v2351_v37 = vor.u32 %v2593_v26, %v2348_v27 }
 0x13a   : > { %1250 = vmatmul.bf16.gmra.mxu1 %v2311_v36  ;;  %v2347_v36 = vor.u32 %v2595_v25, %v2346_v24 }
 0x13b   : > { %v1465_v44 = vadd.f32 %v1387_v43, %v437_v42  ;;  %1339 = vmatmul.bf16.gmra.mxu2 %v2315_v40 }
 0x13c   : > { %1428 = vmatmul.bf16.gmra.mxu3 %v2319_v41 }
 0x13d   : > { %1497 = vst [vmem:[#allocation2] sm:$0xff] %v1465_v44 }
 0x13e   : > { %v1300_v46 = vpop.f32.mrf.mxu2  ;;  %v1124_v49 = vpop.f32.mrf.mxu0 }
 0x13f   : > { %v1389_v47 = vpop.f32.mrf.mxu3  ;;  %v1301_v48 = vadd.f32 %v1300_v46, %v1212_v45  ;;  %v1213_v50 = vpop.f32.mrf.mxu1 }
 0x140   : > { %v1214_v62 = vadd.f32 %v1213_v50, %v1124_v49  ;;  %v2354_v49 = vld [vmem:[%s3124_s18 + $0x180] sm:$0xf]  ;;  %v2598_v50 = vld [vmem:[%s3124_s18 + $0x18c] sm:$0xf0] }
 0x141   : > { %v1390_v52 = vadd.f32 %v1389_v47, %v1301_v48  ;;  %v442_v47 = vld [vmem:[#allocation2 + $0x30] sm:$0xff]  ;;  %v2355_v61 = vor.u32 %v2598_v50, %v2354_v49  ;;  %v2394_v50 = vld [vmem:[%s3124_s18 + $0x1c8] sm:$0xf] }
 0x142   : > { %v2388_v49 = vld [vmem:[%s3124_s18 + $0x1d0] sm:$0xf0] }
 0x143   : > { %v1466_v55 = vadd.f32 %v1390_v52, %v438_v51  ;;  %v2596_v52 = vld [vmem:[%s3124_s18 + $0x184] sm:$0xf] }
 0x145   : > { %1498 = vst [vmem:[#allocation2 + $0xd8] sm:$0xff] %v1466_v55  ;;  %v2599_v55 = vld [vmem:[%s3124_s18 + $0x194] sm:$0xf0] }
 0x146   : > { %v1302_v63 = vpop.f32.mrf.mxu2  ;;  %v1127_v4 = vpop.f32.mrf.mxu0 }
 0x147   : > { %v1391_v0 = vpop.f32.mrf.mxu3  ;;  %v1303_v3 = vadd.f32 %v1302_v63, %v1214_v62  ;;  %v1216_v5 = vpop.f32.mrf.mxu1  ;;  %v2359_v62 = vor.u32 %v2596_v52, %v2356_v53  ;;  %v2605_v52 = vld [vmem:[%s3124_s18 + $0x1cc] sm:$0xf]  ;;  %v2396_v53 = vld [vmem:[%s3124_s18 + $0x1d8] sm:$0xf0] }
 0x148   : > { %v1217_v11 = vadd.f32 %v1216_v5, %v1127_v4  ;;  %v443_v4 = vld [vmem:[#allocation2 + $0x48] sm:$0xff] }
 0x149   : > { %v1392_v9 = vadd.f32 %v1391_v0, %v1303_v3  ;;  %1166 = vmatmul.bf16.gmra.mxu0 %v2323_v1  ;;  %v2367_v3 = vor.u32 %v2597_v56, %v2364_v57 }
 0x14a   : > { %1255 = vmatmul.bf16.gmra.mxu1 %v2327_v2  ;;  %v2363_v2 = vor.u32 %v2599_v55, %v2362_v54 }
 0x14b   : > { %v1467_v10 = vadd.f32 %v1392_v9, %v439_v8  ;;  %1344 = vmatmul.bf16.gmra.mxu2 %v2331_v6 }
 0x14c   : > { %1433 = vmatmul.bf16.gmra.mxu3 %v2335_v7 }
 0x14d   : > { %1499 = vst [vmem:[#allocation2 + $0x18] sm:$0xff] %v1467_v10 }
 0x14e   : > { %v1305_v12 = vpop.f32.mrf.mxu2  ;;  %v1129_v15 = vpop.f32.mrf.mxu0 }
 0x14f   : > { %v1394_v13 = vpop.f32.mrf.mxu3  ;;  %v1306_v14 = vadd.f32 %v1305_v12, %v1217_v11  ;;  %v1218_v16 = vpop.f32.mrf.mxu1 }
 0x150   : > { %v1219_v28 = vadd.f32 %v1218_v16, %v1129_v15  ;;  %v2370_v15 = vld [vmem:[%s3124_s18 + $0x1a0] sm:$0xf]  ;;  %v2602_v16 = vld [vmem:[%s3124_s18 + $0x1ac] sm:$0xf0] }
 0x151   : > { %v1395_v18 = vadd.f32 %v1394_v13, %v1306_v14  ;;  %v444_v13 = vld [vmem:[#allocation2 + $0x80] sm:$0xff]  ;;  %v2371_v27 = vor.u32 %v2602_v16, %v2370_v15  ;;  %v2404_v15 = vld [vmem:[%s3124_s18 + $0x1f0] sm:$0xf0]  ;;  %v2410_v16 = vld [vmem:[%s3124_s18 + $0x1e8] sm:$0xf] }
 0x153   : > { %v1468_v21 = vadd.f32 %v1395_v18, %v440_v17  ;;  %v2600_v18 = vld [vmem:[%s3124_s18 + $0x1a4] sm:$0xf] }
 0x155   : > { %1500 = vst [vmem:[#allocation2 + $0x50] sm:$0xff] %v1468_v21  ;;  %v2603_v21 = vld [vmem:[%s3124_s18 + $0x1b4] sm:$0xf0] }
 0x156   : > { %v1307_v29 = vpop.f32.mrf.mxu2  ;;  %v1132_v34 = vpop.f32.mrf.mxu0 }
 0x157   : > { %v1396_v30 = vpop.f32.mrf.mxu3  ;;  %v1308_v33 = vadd.f32 %v1307_v29, %v1219_v28  ;;  %v1221_v35 = vpop.f32.mrf.mxu1  ;;  %v2375_v28 = vor.u32 %v2600_v18, %v2372_v19  ;;  %v2609_v18 = vld [vmem:[%s3124_s18 + $0x1ec] sm:$0xf]  ;;  %v2412_v19 = vld [vmem:[%s3124_s18 + $0x1f8] sm:$0xf0] }
 0x158   : > { %v1222_v41 = vadd.f32 %v1221_v35, %v1132_v34  ;;  %v445_v34 = vld [vmem:[#allocation2 + $0x88] sm:$0xff] }
 0x159   : > { %v1397_v39 = vadd.f32 %v1396_v30, %v1308_v33  ;;  %1171 = vmatmul.bf16.gmra.mxu0 %v2339_v31  ;;  %v2383_v33 = vor.u32 %v2601_v22, %v2380_v23 }
 0x15a   : > { %1260 = vmatmul.bf16.gmra.mxu1 %v2343_v32  ;;  %v2379_v32 = vor.u32 %v2603_v21, %v2378_v20 }
 0x15b   : > { %v1469_v40 = vadd.f32 %v1397_v39, %v441_v38  ;;  %1349 = vmatmul.bf16.gmra.mxu2 %v2347_v36 }
 0x15c   : > { %1438 = vmatmul.bf16.gmra.mxu3 %v2351_v37 }
 0x15d   : > { %1501 = vst [vmem:[#allocation2 + $0x68] sm:$0xff] %v1469_v40 }
 0x15e   : > { %v1310_v42 = vpop.f32.mrf.mxu2  ;;  %v1134_v45 = vpop.f32.mrf.mxu0 }
 0x15f   : > { %v1399_v43 = vpop.f32.mrf.mxu3  ;;  %v1311_v44 = vadd.f32 %v1310_v42, %v1222_v41  ;;  %v1223_v46 = vpop.f32.mrf.mxu1 }
 0x160   : > { %v1224_v58 = vadd.f32 %v1223_v46, %v1134_v45  ;;  %v2386_v45 = vld [vmem:[%s3124_s18 + $0x1c0] sm:$0xf]  ;;  %v2606_v46 = vld [vmem:[%s3124_s18 + $0x1cc] sm:$0xf0] }
 0x161   : > { %v1400_v48 = vadd.f32 %v1399_v43, %v1311_v44  ;;  %v446_v43 = vld [vmem:[#allocation2 + $0xe8] sm:$0xff]  ;;  %v2387_v57 = vor.u32 %v2606_v46, %v2386_v45 }
 0x163   : > { %v1470_v51 = vadd.f32 %v1400_v48, %v442_v47  ;;  %v2604_v48 = vld [vmem:[%s3124_s18 + $0x1c4] sm:$0xf] }
 0x165   : > { %1502 = vst [vmem:[#allocation2 + $0x30] sm:$0xff] %v1470_v51  ;;  %v2607_v51 = vld [vmem:[%s3124_s18 + $0x1d4] sm:$0xf0] }
 0x166   : > { %v1312_v59 = vpop.f32.mrf.mxu2  ;;  %v1137_v0 = vpop.f32.mrf.mxu0 }
 0x167   : > { %v1401_v60 = vpop.f32.mrf.mxu3  ;;  %v1313_v63 = vadd.f32 %v1312_v59, %v1224_v58  ;;  %v1226_v1 = vpop.f32.mrf.mxu1  ;;  %v2391_v58 = vor.u32 %v2604_v48, %v2388_v49  ;;  %v451_v48 = vld [vmem:[#allocation2 + $0x78] sm:$0xff] }
 0x168   : > { %v1227_v7 = vadd.f32 %v1226_v1, %v1137_v0  ;;  %v447_v0 = vld [vmem:[#allocation2 + $0xb8] sm:$0xff] }
 0x169   : > { %v1402_v5 = vadd.f32 %v1401_v60, %v1313_v63  ;;  %1176 = vmatmul.bf16.gmra.mxu0 %v2355_v61  ;;  %v2399_v63 = vor.u32 %v2605_v52, %v2396_v53 }
 0x16a   : > { %1265 = vmatmul.bf16.gmra.mxu1 %v2359_v62  ;;  %v2395_v62 = vor.u32 %v2607_v51, %v2394_v50 }
 0x16b   : > { %v1471_v6 = vadd.f32 %v1402_v5, %v443_v4  ;;  %1354 = vmatmul.bf16.gmra.mxu2 %v2363_v2 }
 0x16c   : > { %1443 = vmatmul.bf16.gmra.mxu3 %v2367_v3 }
 0x16d   : > { %1503 = vst [vmem:[#allocation2 + $0x48] sm:$0xff] %v1471_v6 }
 0x16e   : > { %v1315_v8 = vpop.f32.mrf.mxu2  ;;  %v1139_v11 = vpop.f32.mrf.mxu0 }
 0x16f   : > { %v1404_v9 = vpop.f32.mrf.mxu3  ;;  %v1316_v10 = vadd.f32 %v1315_v8, %v1227_v7  ;;  %v1228_v12 = vpop.f32.mrf.mxu1 }
 0x170   : > { %v1229_v24 = vadd.f32 %v1228_v12, %v1139_v11  ;;  %v2402_v11 = vld [vmem:[%s3124_s18 + $0x1e0] sm:$0xf]  ;;  %v2610_v12 = vld [vmem:[%s3124_s18 + $0x1ec] sm:$0xf0] }
 0x171   : > { %v1405_v14 = vadd.f32 %v1404_v9, %v1316_v10  ;;  %v448_v9 = vld [vmem:[#allocation2 + $0x60] sm:$0xff]  ;;  %v2403_v23 = vor.u32 %v2610_v12, %v2402_v11 }
 0x172   : > { %v454_v11 = vld [vmem:[#allocation2 + $0x40] sm:$0xff] }
 0x173   : > { %v1472_v17 = vadd.f32 %v1405_v14, %v444_v13  ;;  %v2608_v14 = vld [vmem:[%s3124_s18 + $0x1e4] sm:$0xf] }
 0x175   : > { %1504 = vst [vmem:[#allocation2 + $0x80] sm:$0xff] %v1472_v17  ;;  %v2611_v17 = vld [vmem:[%s3124_s18 + $0x1f4] sm:$0xf0] }
 0x176   : > { %v1317_v25 = vpop.f32.mrf.mxu2  ;;  %v1142_v30 = vpop.f32.mrf.mxu0 }
 0x177   : > { %v1406_v26 = vpop.f32.mrf.mxu3  ;;  %v1318_v29 = vadd.f32 %v1317_v25, %v1229_v24  ;;  %v1231_v31 = vpop.f32.mrf.mxu1  ;;  %v2407_v24 = vor.u32 %v2608_v14, %v2404_v15 }
 0x178   : > { %v1232_v37 = vadd.f32 %v1231_v31, %v1142_v30  ;;  %v449_v30 = vld [vmem:[#allocation2 + $0xf0] sm:$0xff] }
 0x179   : > { %v1407_v35 = vadd.f32 %v1406_v26, %v1318_v29  ;;  %1181 = vmatmul.bf16.gmra.mxu0 %v2371_v27  ;;  %v2415_v29 = vor.u32 %v2609_v18, %v2412_v19 }
 0x17a   : > { %1270 = vmatmul.bf16.gmra.mxu1 %v2375_v28  ;;  %v2411_v28 = vor.u32 %v2611_v17, %v2410_v16 }
 0x17b   : > { %v1473_v36 = vadd.f32 %v1407_v35, %v445_v34  ;;  %1359 = vmatmul.bf16.gmra.mxu2 %v2379_v32 }
 0x17c   : > { %1448 = vmatmul.bf16.gmra.mxu3 %v2383_v33 }
 0x17d   : > { %1505 = vst [vmem:[#allocation2 + $0x88] sm:$0xff] %v1473_v36 }
 0x17e   : > { %v1320_v38 = vpop.f32.mrf.mxu2  ;;  %v1144_v41 = vpop.f32.mrf.mxu0 }
 0x17f   : > { %v1409_v39 = vpop.f32.mrf.mxu3  ;;  %v1321_v40 = vadd.f32 %v1320_v38, %v1232_v37  ;;  %v1233_v42 = vpop.f32.mrf.mxu1 }
 0x180   : > { %v1234_v54 = vadd.f32 %v1233_v42, %v1144_v41 }
 0x181   : > { %v1410_v44 = vadd.f32 %v1409_v39, %v1321_v40  ;;  %v450_v39 = vld [vmem:[#allocation2 + $0x8] sm:$0xff] }
 0x183   : > { %v1474_v47 = vadd.f32 %v1410_v44, %v446_v43 }
 0x185   : > { %1506 = vst [vmem:[#allocation2 + $0xe8] sm:$0xff] %v1474_v47 }
 0x186   : > { %v1322_v55 = vpop.f32.mrf.mxu2  ;;  %v1147_v60 = vpop.f32.mrf.mxu0 }
 0x187   : > { %v1411_v56 = vpop.f32.mrf.mxu3  ;;  %v1323_v59 = vadd.f32 %v1322_v55, %v1234_v54  ;;  %v1236_v61 = vpop.f32.mrf.mxu1 }
 0x188   : > { %v1237_v3 = vadd.f32 %v1236_v61, %v1147_v60 }
 0x189   : > { %v1412_v1 = vadd.f32 %v1411_v56, %v1323_v59  ;;  %1186 = vmatmul.bf16.gmra.mxu0 %v2387_v57  ;;  %v452_v57 = vld [vmem:[#allocation2 + $0x38] sm:$0xff] }
 0x18a   : > { %1275 = vmatmul.bf16.gmra.mxu1 %v2391_v58 }
 0x18b   : > { %v1475_v2 = vadd.f32 %v1412_v1, %v447_v0  ;;  %1364 = vmatmul.bf16.gmra.mxu2 %v2395_v62 }
 0x18c   : > { %1453 = vmatmul.bf16.gmra.mxu3 %v2399_v63 }
 0x18d   : > { %1507 = vst [vmem:[#allocation2 + $0xb8] sm:$0xff] %v1475_v2  ;;  %v453_v2 = vld [vmem:[#allocation2 + $0x58] sm:$0xff] }
 0x18e   : > { %v1325_v4 = vpop.f32.mrf.mxu2  ;;  %v1149_v7 = vpop.f32.mrf.mxu0 }
 0x18f   : > { %v1414_v5 = vpop.f32.mrf.mxu3  ;;  %v1326_v6 = vadd.f32 %v1325_v4, %v1237_v3  ;;  %v1238_v8 = vpop.f32.mrf.mxu1 }
 0x190   : > { %v1239_v20 = vadd.f32 %v1238_v8, %v1149_v7 }
 0x191   : > { %v1415_v10 = vadd.f32 %v1414_v5, %v1326_v6 }
 0x193   : > { %v1476_v13 = vadd.f32 %v1415_v10, %v448_v9 }
 0x195   : > { %1508 = vst [vmem:[#allocation2 + $0x60] sm:$0xff] %v1476_v13 }
 0x196   : > { %v1327_v21 = vpop.f32.mrf.mxu2  ;;  %v1152_v26 = vpop.f32.mrf.mxu0 }
 0x197   : > { %v1416_v22 = vpop.f32.mrf.mxu3  ;;  %v1328_v25 = vadd.f32 %v1327_v21, %v1239_v20  ;;  %v1241_v27 = vpop.f32.mrf.mxu1  ;;  %v455_v20 = vld [vmem:[#allocation2 + $0xc8] sm:$0xff] }
 0x198   : > { %v1242_v33 = vadd.f32 %v1241_v27, %v1152_v26 }
 0x199   : > { %v1417_v31 = vadd.f32 %v1416_v22, %v1328_v25  ;;  %1191 = vmatmul.bf16.gmra.mxu0 %v2403_v23 }
 0x19a   : > { %1280 = vmatmul.bf16.gmra.mxu1 %v2407_v24 }
 0x19b   : > { %v1477_v32 = vadd.f32 %v1417_v31, %v449_v30  ;;  %1369 = vmatmul.bf16.gmra.mxu2 %v2411_v28 }
 0x19c   : > { %1458 = vmatmul.bf16.gmra.mxu3 %v2415_v29  ;;  %v456_v29 = vld [vmem:[#allocation2 + $0xe0] sm:$0xff] }
 0x19d   : > { %1509 = vst [vmem:[#allocation2 + $0xf0] sm:$0xff] %v1477_v32 }
 0x19e   : > { %v1330_v34 = vpop.f32.mrf.mxu2  ;;  %v1154_v37 = vpop.f32.mrf.mxu0 }
 0x19f   : > { %v1419_v35 = vpop.f32.mrf.mxu3  ;;  %v1331_v36 = vadd.f32 %v1330_v34, %v1242_v33  ;;  %v1243_v38 = vpop.f32.mrf.mxu1 }
 0x1a0   : > { %v1244_v42 = vadd.f32 %v1243_v38, %v1154_v37  ;;  %v457_v38 = vld [vmem:[#allocation2 + $0x90] sm:$0xff] }
 0x1a1   : > { %v1420_v40 = vadd.f32 %v1419_v35, %v1331_v36 }
 0x1a3   : > { %v1478_v41 = vadd.f32 %v1420_v40, %v450_v39 }
 0x1a5   : > { %1510 = vst [vmem:[#allocation2 + $0x8] sm:$0xff] %v1478_v41 }
 0x1a6   : > { %v1332_v43 = vpop.f32.mrf.mxu2  ;;  %v1157_v46 = vpop.f32.mrf.mxu0 }
 0x1a7   : > { %v1421_v44 = vpop.f32.mrf.mxu3  ;;  %v1333_v45 = vadd.f32 %v1332_v43, %v1244_v42  ;;  %v1246_v47 = vpop.f32.mrf.mxu1 }
 0x1a8   : > { %v1247_v51 = vadd.f32 %v1246_v47, %v1157_v46  ;;  %v458_v47 = vld [vmem:[#allocation2 + $0x70] sm:$0xff] }
 0x1a9   : > { %v1422_v49 = vadd.f32 %v1421_v44, %v1333_v45 }
 0x1ab   : > { %v1479_v50 = vadd.f32 %v1422_v49, %v451_v48 }
 0x1ad   : > { %1511 = vst [vmem:[#allocation2 + $0x78] sm:$0xff] %v1479_v50 }
 0x1ae   : > { %v1335_v52 = vpop.f32.mrf.mxu2  ;;  %v1159_v55 = vpop.f32.mrf.mxu0 }
 0x1af   : > { %v1424_v53 = vpop.f32.mrf.mxu3  ;;  %v1336_v54 = vadd.f32 %v1335_v52, %v1247_v51  ;;  %v1248_v56 = vpop.f32.mrf.mxu1 }
 0x1b0   : > { %v1249_v60 = vadd.f32 %v1248_v56, %v1159_v55  ;;  %v459_v56 = vld [vmem:[#allocation2 + $0xc0] sm:$0xff] }
 0x1b1   : > { %v1425_v58 = vadd.f32 %v1424_v53, %v1336_v54 }
 0x1b3   : > { %v1480_v59 = vadd.f32 %v1425_v58, %v452_v57 }
 0x1b5   : > { %1512 = vst [vmem:[#allocation2 + $0x38] sm:$0xff] %v1480_v59 }
 0x1b6   : > { %v1337_v61 = vpop.f32.mrf.mxu2  ;;  %v1162_v0 = vpop.f32.mrf.mxu0 }
 0x1b7   : > { %v1426_v62 = vpop.f32.mrf.mxu3  ;;  %v1338_v63 = vadd.f32 %v1337_v61, %v1249_v60  ;;  %v1251_v1 = vpop.f32.mrf.mxu1 }
 0x1b8   : > { %v1252_v5 = vadd.f32 %v1251_v1, %v1162_v0  ;;  %v460_v1 = vld [vmem:[#allocation2 + $0xa8] sm:$0xff] }
 0x1b9   : > { %v1427_v3 = vadd.f32 %v1426_v62, %v1338_v63 }
 0x1bb   : > { %v1481_v4 = vadd.f32 %v1427_v3, %v453_v2 }
 0x1bd   : > { %1513 = vst [vmem:[#allocation2 + $0x58] sm:$0xff] %v1481_v4 }
 0x1be   : > { %v1340_v6 = vpop.f32.mrf.mxu2  ;;  %v1164_v9 = vpop.f32.mrf.mxu0 }
 0x1bf   : > { %v1429_v7 = vpop.f32.mrf.mxu3  ;;  %v1341_v8 = vadd.f32 %v1340_v6, %v1252_v5  ;;  %v1253_v10 = vpop.f32.mrf.mxu1 }
 0x1c0   : > { %v1254_v14 = vadd.f32 %v1253_v10, %v1164_v9  ;;  %v461_v10 = vld [vmem:[#allocation2 + $0xd0] sm:$0xff] }
 0x1c1   : > { %v1430_v12 = vadd.f32 %v1429_v7, %v1341_v8 }
 0x1c3   : > { %v1482_v13 = vadd.f32 %v1430_v12, %v454_v11 }
 0x1c5   : > { %1514 = vst [vmem:[#allocation2 + $0x40] sm:$0xff] %v1482_v13 }
 0x1c6   : > { %v1342_v15 = vpop.f32.mrf.mxu2  ;;  %v1167_v18 = vpop.f32.mrf.mxu0 }
 0x1c7   : > { %v1431_v16 = vpop.f32.mrf.mxu3  ;;  %v1343_v17 = vadd.f32 %v1342_v15, %v1254_v14  ;;  %v1256_v19 = vpop.f32.mrf.mxu1 }
 0x1c8   : > { %v1257_v23 = vadd.f32 %v1256_v19, %v1167_v18  ;;  %v462_v19 = vld [vmem:[#allocation2 + $0x10] sm:$0xff] }
 0x1c9   : > { %v1432_v21 = vadd.f32 %v1431_v16, %v1343_v17 }
 0x1cb   : > { %v1483_v22 = vadd.f32 %v1432_v21, %v455_v20 }
 0x1cd   : > { %1515 = vst [vmem:[#allocation2 + $0xc8] sm:$0xff] %v1483_v22 }
 0x1ce   : > { %v1345_v24 = vpop.f32.mrf.mxu2  ;;  %v1169_v27 = vpop.f32.mrf.mxu0 }
 0x1cf   : > { %v1434_v25 = vpop.f32.mrf.mxu3  ;;  %v1346_v26 = vadd.f32 %v1345_v24, %v1257_v23  ;;  %v1258_v28 = vpop.f32.mrf.mxu1 }
 0x1d0   : > { %v1259_v32 = vadd.f32 %v1258_v28, %v1169_v27  ;;  %v463_v28 = vld [vmem:[#allocation2 + $0x28] sm:$0xff] }
 0x1d1   : > { %v1435_v30 = vadd.f32 %v1434_v25, %v1346_v26 }
 0x1d3   : > { %v1484_v31 = vadd.f32 %v1435_v30, %v456_v29 }
 0x1d5   : > { %1516 = vst [vmem:[#allocation2 + $0xe0] sm:$0xff] %v1484_v31 }
 0x1d6   : > { %v1347_v33 = vpop.f32.mrf.mxu2  ;;  %v1172_v36 = vpop.f32.mrf.mxu0 }
 0x1d7   : > { %v1436_v34 = vpop.f32.mrf.mxu3  ;;  %v1348_v35 = vadd.f32 %v1347_v33, %v1259_v32  ;;  %v1261_v37 = vpop.f32.mrf.mxu1 }
 0x1d8   : > { %v1262_v41 = vadd.f32 %v1261_v37, %v1172_v36  ;;  %v464_v37 = vld [vmem:[#allocation2 + $0xa0] sm:$0xff] }
 0x1d9   : > { %v1437_v39 = vadd.f32 %v1436_v34, %v1348_v35 }
 0x1db   : > { %v1485_v40 = vadd.f32 %v1437_v39, %v457_v38 }
 0x1dd   : > { %1517 = vst [vmem:[#allocation2 + $0x90] sm:$0xff] %v1485_v40 }
 0x1de   : > { %v1350_v42 = vpop.f32.mrf.mxu2  ;;  %v1174_v45 = vpop.f32.mrf.mxu0 }
 0x1df   : > { %v1439_v43 = vpop.f32.mrf.mxu3  ;;  %v1351_v44 = vadd.f32 %v1350_v42, %v1262_v41  ;;  %v1263_v46 = vpop.f32.mrf.mxu1 }
 0x1e0   : > { %v1264_v50 = vadd.f32 %v1263_v46, %v1174_v45 }
 0x1e1   : > { %v1440_v48 = vadd.f32 %v1439_v43, %v1351_v44  ;;  %v465_v44 = vld [vmem:[#allocation2 + $0xf8] sm:$0xff] }
 0x1e3   : > { %v1486_v49 = vadd.f32 %v1440_v48, %v458_v47 }
 0x1e5   : > { %1518 = vst [vmem:[#allocation2 + $0x70] sm:$0xff] %v1486_v49 }
 0x1e6   : > { %v1352_v51 = vpop.f32.mrf.mxu2  ;;  %v1177_v54 = vpop.f32.mrf.mxu0 }
 0x1e7   : > { %v1441_v52 = vpop.f32.mrf.mxu3  ;;  %v1353_v53 = vadd.f32 %v1352_v51, %v1264_v50  ;;  %v1266_v55 = vpop.f32.mrf.mxu1 }
 0x1e8   : > { %v1267_v59 = vadd.f32 %v1266_v55, %v1177_v54 }
 0x1e9   : > { %v1442_v57 = vadd.f32 %v1441_v52, %v1353_v53  ;;  %v466_v53 = vld [vmem:[#allocation2 + $0x20] sm:$0xff] }
 0x1eb   : > { %v1487_v58 = vadd.f32 %v1442_v57, %v459_v56 }
 0x1ed   : > { %1519 = vst [vmem:[#allocation2 + $0xc0] sm:$0xff] %v1487_v58 }
 0x1ee   : > { %v1355_v60 = vpop.f32.mrf.mxu2  ;;  %v1179_v63 = vpop.f32.mrf.mxu0 }
 0x1ef   : > { %v1444_v61 = vpop.f32.mrf.mxu3  ;;  %v1356_v62 = vadd.f32 %v1355_v60, %v1267_v59  ;;  %v1268_v0 = vpop.f32.mrf.mxu1 }
 0x1f0   : > { %v1269_v4 = vadd.f32 %v1268_v0, %v1179_v63 }
 0x1f1   : > { %v1445_v2 = vadd.f32 %v1444_v61, %v1356_v62  ;;  %v467_v61 = vld [vmem:[#allocation2 + $0x98] sm:$0xff] }
 0x1f3   : > { %v1488_v3 = vadd.f32 %v1445_v2, %v460_v1 }
 0x1f5   : > { %1520 = vst [vmem:[#allocation2 + $0xa8] sm:$0xff] %v1488_v3 }
 0x1f6   : > { %v1357_v5 = vpop.f32.mrf.mxu2  ;;  %v1182_v8 = vpop.f32.mrf.mxu0 }
 0x1f7   : > { %v1446_v6 = vpop.f32.mrf.mxu3  ;;  %v1358_v7 = vadd.f32 %v1357_v5, %v1269_v4  ;;  %v1271_v9 = vpop.f32.mrf.mxu1 }
 0x1f8   : > { %v1272_v13 = vadd.f32 %v1271_v9, %v1182_v8 }
 0x1f9   : > { %v1447_v11 = vadd.f32 %v1446_v6, %v1358_v7 }
 0x1fb   : > { %v1489_v12 = vadd.f32 %v1447_v11, %v461_v10 }
 0x1fd   : > { %1521 = vst [vmem:[#allocation2 + $0xd0] sm:$0xff] %v1489_v12 }
 0x1fe   : > { %v1360_v14 = vpop.f32.mrf.mxu2  ;;  %v1184_v17 = vpop.f32.mrf.mxu0 }
 0x1ff   : > { %v1449_v15 = vpop.f32.mrf.mxu3  ;;  %v1361_v16 = vadd.f32 %v1360_v14, %v1272_v13  ;;  %v1273_v18 = vpop.f32.mrf.mxu1 }
 0x200   : > { %v1274_v22 = vadd.f32 %v1273_v18, %v1184_v17 }
 0x201   : > { %v1450_v20 = vadd.f32 %v1449_v15, %v1361_v16 }
 0x203   : > { %v1490_v21 = vadd.f32 %v1450_v20, %v462_v19 }
 0x205   : > { %1522 = vst [vmem:[#allocation2 + $0x10] sm:$0xff] %v1490_v21 }
 0x206   : > { %v1362_v23 = vpop.f32.mrf.mxu2  ;;  %v1187_v26 = vpop.f32.mrf.mxu0 }
 0x207   : > { %v1451_v24 = vpop.f32.mrf.mxu3  ;;  %v1363_v25 = vadd.f32 %v1362_v23, %v1274_v22  ;;  %v1276_v27 = vpop.f32.mrf.mxu1 }
 0x208   : > { %v1277_v31 = vadd.f32 %v1276_v27, %v1187_v26 }
 0x209   : > { %v1452_v29 = vadd.f32 %v1451_v24, %v1363_v25 }
 0x20b   : > { %v1491_v30 = vadd.f32 %v1452_v29, %v463_v28 }
 0x20d   : > { %1523 = vst [vmem:[#allocation2 + $0x28] sm:$0xff] %v1491_v30 }
 0x20e   : > { %v1365_v32 = vpop.f32.mrf.mxu2  ;;  %v1189_v35 = vpop.f32.mrf.mxu0 }
 0x20f   : > { %v1454_v33 = vpop.f32.mrf.mxu3  ;;  %v1366_v34 = vadd.f32 %v1365_v32, %v1277_v31  ;;  %v1278_v36 = vpop.f32.mrf.mxu1 }
 0x210   : > { %v1279_v40 = vadd.f32 %v1278_v36, %v1189_v35 }
 0x211   : > { %v1455_v38 = vadd.f32 %v1454_v33, %v1366_v34 }
 0x213   : > { %v1492_v39 = vadd.f32 %v1455_v38, %v464_v37 }
 0x215   : > { %1524 = vst [vmem:[#allocation2 + $0xa0] sm:$0xff] %v1492_v39 }
 0x216   : > { %v1367_v41 = vpop.f32.mrf.mxu2  ;;  %v1192_v45 = vpop.f32.mrf.mxu0 }
 0x217   : > { %v1456_v42 = vpop.f32.mrf.mxu3  ;;  %v1368_v43 = vadd.f32 %v1367_v41, %v1279_v40  ;;  %v1281_v46 = vpop.f32.mrf.mxu1 }
 0x218   : > { %v1282_v49 = vadd.f32 %v1281_v46, %v1192_v45 }
 0x219   : > { %v1457_v47 = vadd.f32 %v1456_v42, %v1368_v43 }
 0x21b   : > { %v1493_v48 = vadd.f32 %v1457_v47, %v465_v44 }
 0x21d   : > { %1525 = vst [vmem:[#allocation2 + $0xf8] sm:$0xff] %v1493_v48 }
 0x21e   : > { %v1370_v50 = vpop.f32.mrf.mxu2  ;;  %v1194_v55 = vpop.f32.mrf.mxu0 }
 0x21f   : > { %v1459_v51 = vpop.f32.mrf.mxu3  ;;  %v1371_v52 = vadd.f32 %v1370_v50, %v1282_v49  ;;  %v1283_v56 = vpop.f32.mrf.mxu1 }
 0x220   : > { %v1284_v58 = vadd.f32 %v1283_v56, %v1194_v55 }
 0x221   : > { %v1460_v54 = vadd.f32 %v1459_v51, %v1371_v52 }
 0x223   : > { %v1494_v57 = vadd.f32 %v1460_v54, %v466_v53 }
 0x225   : > { %1526 = vst [vmem:[#allocation2 + $0x20] sm:$0xff] %v1494_v57 }
 0x226   : > { %v1372_v59 = vpop.f32.mrf.mxu2 }
 0x227   : > { %v1373_v60 = vadd.f32 %v1372_v59, %v1284_v58  ;;  %v1461_v62 = vpop.f32.mrf.mxu3 }
 0x229   : > { %v1462_v63 = vadd.f32 %v1461_v62, %v1373_v60  ;;  %1531 = sbr.rel (%p2544_p13) target bundleno = 909 (0x38d), region = 63 }
 0x22b   : > { %v1495_v0 = vadd.f32 %v1462_v63, %v467_v61 }
 0x22d   : > { %1527 = vst [vmem:[#allocation2 + $0x98] sm:$0xff] %v1495_v0 }
 0x22e   : > { %v1536_v1 = vld [vmem:[#allocation2 + $0x50] sm:$0xff]  ;;  %v3291_v2 = vld [vmem:[%s3739_s2] ss:$0 sm:$0xff]  ;;  %v1632_v3 = vlaneseq  ;;  %v1534_v4 = vld [vmem:[#allocation2 + $0xd8] sm:$0xff] }
 0x22f   : > { %v1532_v5 = vld [vmem:[#allocation2 + $0xb0] sm:$0xff]  ;;  %v1572_v6 = vadd.f32 %v3291_v2, %v1536_v1  ;;  %v1570_v8 = vadd.f32 %v3291_v2, %v1534_v4  ;;  %v1537_v10 = vld [vmem:[#allocation2 + $0x68] sm:$0xff]  ;;  %v1535_v11 = vld [vmem:[#allocation2 + $0x18] sm:$0xff] }
 0x230   : > { %v3294_v7 = vand.u32 127, %v1632_v3  ;;  %v1568_v9 = vadd.f32 %v3291_v2, %v1532_v5  ;;  %v1533_v12 = vld [vmem:[#allocation2] sm:$0xff]  ;;  %v1573_v16 = vadd.f32 %v3291_v2, %v1537_v10  ;;  %v1571_v18 = vadd.f32 %v3291_v2, %v1535_v11  ;;  %v1538_v19 = vld [vmem:[#allocation2 + $0x30] sm:$0xff]  ;;  %v1543_v21 = vld [vmem:[#allocation2 + $0xb8] sm:$0xff] }
 0x231   : > { %1604 = vst [vmem:[%s3117_s8 + $0x20] sm:$0xff] %v1572_v6  ;;  %v1540_v17 = vld [vmem:[#allocation2 + $0x80] sm:$0xff]  ;;  %v1569_v20 = vadd.f32 %v3291_v2, %v1533_v12  ;;  %v1539_v23 = vld [vmem:[#allocation2 + $0x48] sm:$0xff]  ;;  %v1574_v24 = vadd.f32 %v3291_v2, %v1538_v19  ;;  %v1579_v26 = vadd.f32 %v3291_v2, %v1543_v21  ;;  %v1549_v36 = vld [vmem:[#allocation2 + $0x58] sm:$0xff] }
 0x232   : > { %vm1634_vm0 = vcmp.lt.s32.totalorder %v3294_v7, 8  ;;  %1602 = vst [vmem:[%s3117_s8 + $0x10] sm:$0xff] %v1570_v8  ;;  %v1576_v22 = vadd.f32 %v3291_v2, %v1540_v17  ;;  %v1541_v25 = vld [vmem:[#allocation2 + $0x88] sm:$0xff]  ;;  %v1575_v30 = vadd.f32 %v3291_v2, %v1539_v23  ;;  %v1544_v34 = vld [vmem:[#allocation2 + $0x60] sm:$0xff]  ;;  %v1545_v38 = vld [vmem:[#allocation2 + $0xf0] sm:$0xff]  ;;  %v1585_v41 = vadd.f32 %v3291_v2, %v1549_v36 }
 0x233   : > { %v3302_v13 = vsel %vm1634_vm0, %v1572_v6, -inf  ;;  %v3306_v14 = vsel %vm1634_vm0, %v1570_v8, -inf  ;;  %v3311_v15 = vsel %vm1634_vm0, %v1568_v9, -inf  ;;  %1600 = vst [vmem:[%s3117_s8] sm:$0xff] %v1568_v9  ;;  %v1546_v27 = vld [vmem:[#allocation2 + $0x8] sm:$0xff]  ;;  %v3329_v28 = vsel %vm1634_vm0, %v1573_v16, -inf  ;;  %v1547_v40 = vld [vmem:[#allocation2 + $0x78] sm:$0xff] }
 0x234   : > { %1675 = vmax.xlane.f32.xlu2 %v3302_v13  ;;  %1671 = vmax.xlane.f32.xlu1 %v3306_v14  ;;  %1605 = vst [vmem:[%s3117_s8 + $0x28] sm:$0xff] %v1573_v16  ;;  %v3333_v29 = vsel %vm1634_vm0, %v1571_v18, -inf  ;;  %v1542_v31 = vld [vmem:[#allocation2 + $0xe8] sm:$0xff]  ;;  %v3339_v32 = vsel %vm1634_vm0, %v1569_v20, -inf  ;;  %v1577_v33 = vadd.f32 %v3291_v2, %v1541_v25  ;;  %v1582_v35 = vadd.f32 %v3291_v2, %v1546_v27  ;;  %v1552_v42 = vld [vmem:[#allocation2 + $0xe0] sm:$0xff]  ;;  %v1548_v48 = vld [vmem:[#allocation2 + $0x38] sm:$0xff] }
 0x235   : > { %1667 = vmax.xlane.f32.xlu0 %v3311_v15  ;;  %1603 = vst [vmem:[%s3117_s8 + $0x18] sm:$0xff] %v1571_v18  ;;  %v1578_v37 = vadd.f32 %v3291_v2, %v1542_v31  ;;  %v1580_v39 = vadd.f32 %v3291_v2, %v1544_v34  ;;  %v1581_v43 = vadd.f32 %v3291_v2, %v1545_v38  ;;  %v3360_v45 = vsel %vm1634_vm0, %v1576_v22, -inf  ;;  %v1550_v49 = vld [vmem:[#allocation2 + $0x40] sm:$0xff]  ;;  %v1551_v57 = vld [vmem:[#allocation2 + $0xc8] sm:$0xff]  ;;  %v1553_v58 = vld [vmem:[#allocation2 + $0x90] sm:$0xff] }
 0x236   : > { %1601 = vst [vmem:[%s3117_s8 + $0x8] sm:$0xff] %v1569_v20  ;;  %v1583_v44 = vadd.f32 %v3291_v2, %v1547_v40  ;;  %v3364_v46 = vsel %vm1634_vm0, %v1575_v30, -inf  ;;  %v3368_v47 = vadd.f32 %v3291_v2, %v1552_v42  ;;  %v3372_v50 = vsel %vm1634_vm0, %v1574_v24, -inf  ;;  %v1555_v53 = vld [vmem:[#allocation2 + $0xc0] sm:$0xff]  ;;  %v1558_v62 = vld [vmem:[#allocation2 + $0x10] sm:$0xff]  ;;  %v1556_v4 = vld [vmem:[#allocation2 + $0xa8] sm:$0xff] }
 0x237   : > { %1608 = vst [vmem:[%s3117_s8 + $0x40] sm:$0xff] %v1576_v22  ;;  %v1584_v51 = vadd.f32 %v3291_v2, %v1548_v48  ;;  %v1586_v52 = vadd.f32 %v3291_v2, %v1550_v49  ;;  %v1591_v54 = vadd.f32 %v3291_v2, %v1555_v53  ;;  %v3388_v55 = vsel %vm1634_vm0, %v1579_v26, -inf  ;;  %v1554_v3 = vld [vmem:[#allocation2 + $0x70] sm:$0xff]  ;;  %v1561_v9 = vld [vmem:[#allocation2 + $0xf8] sm:$0xff]  ;;  %v1559_v17 = vld [vmem:[#allocation2 + $0x28] sm:$0xff] }
 0x238   : > { %1606 = vst [vmem:[%s3117_s8 + $0x30] sm:$0xff] %v1574_v24  ;;  %v3392_v56 = vsel %vm1634_vm0, %v1578_v37, -inf  ;;  %v3396_v59 = vsel %vm1634_vm0, %v1577_v33, -inf  ;;  %v1587_v60 = vadd.f32 %v3291_v2, %v1551_v57  ;;  %v1589_v61 = vadd.f32 %v3291_v2, %v1553_v58  ;;  %v1557_v16 = vld [vmem:[#allocation2 + $0xd0] sm:$0xff]  ;;  %v1560_v21 = vld [vmem:[#allocation2 + $0xa0] sm:$0xff] }
 0x239   : > { %1611 = vst [vmem:[%s3117_s8 + $0x58] sm:$0xff] %v1579_v26  ;;  %v1594_v63 = vadd.f32 %v3291_v2, %v1558_v62  ;;  %v3409_v0 = vsel %vm1634_vm0, %v1582_v35, -inf  ;;  %v3413_v1 = vsel %vm1634_vm0, %v1581_v43, -inf  ;;  %v3417_v5 = vsel %vm1634_vm0, %v1580_v39, -inf  ;;  %v1562_v22 = vld [vmem:[#allocation2 + $0x20] sm:$0xff] }
 0x23a   : > { %1607 = vst [vmem:[%s3117_s8 + $0x38] sm:$0xff] %v1575_v30  ;;  %v1590_v6 = vadd.f32 %v3291_v2, %v1554_v3  ;;  %v1592_v8 = vadd.f32 %v3291_v2, %v1556_v4  ;;  %v1597_v10 = vadd.f32 %v3291_v2, %v1561_v9  ;;  %v3430_v11 = vsel %vm1634_vm0, %v1585_v41, -inf  ;;  %v1563_v30 = vld [vmem:[#allocation2 + $0x98] sm:$0xff] }
 0x23b   : > { %1609 = vst [vmem:[%s3117_s8 + $0x48] sm:$0xff] %v1577_v33  ;;  %v3434_v12 = vsel %vm1634_vm0, %v1584_v51, -inf  ;;  %v3438_v18 = vsel %vm1634_vm0, %v1583_v44, -inf  ;;  %v1593_v19 = vadd.f32 %v3291_v2, %v1557_v16  ;;  %v1595_v20 = vadd.f32 %v3291_v2, %v1559_v17 }
 0x23c   : > { %1677 = vmax.xlane.f32.xlu2 %v3329_v28  ;;  %1673 = vmax.xlane.f32.xlu1 %v3333_v29  ;;  %1614 = vst [vmem:[%s3117_s8 + $0x70] sm:$0xff] %v1582_v35  ;;  %v1596_v23 = vadd.f32 %v3291_v2, %v1560_v21  ;;  %v1598_v24 = vadd.f32 %v3291_v2, %v1562_v22  ;;  %v3453_v25 = vsel %vm1634_vm0, %v3368_v47, -inf  ;;  %v3457_v26 = vsel %vm1634_vm0, %v1587_v60, -inf }
 0x23d   : > { %1669 = vmax.xlane.f32.xlu0 %v3339_v32  ;;  %1610 = vst [vmem:[%s3117_s8 + $0x50] sm:$0xff] %v1578_v37  ;;  %v3462_v27 = vsel %vm1634_vm0, %v1586_v52, -inf  ;;  %v1599_v31 = vadd.f32 %v3291_v2, %v1563_v30  ;;  %v3471_v33 = vsel %vm1634_vm0, %v1591_v54, -inf  ;;  %v3475_v34 = vsel %vm1634_vm0, %v1590_v6, -inf }
 0x23e   : > { %1612 = vst [vmem:[%s3117_s8 + $0x60] sm:$0xff] %v1580_v39  ;;  %v3479_v35 = vsel %vm1634_vm0, %v1589_v61, -inf  ;;  %v3486_v2 = vsel %vm1634_vm0, %v1594_v63, -inf  ;;  %v3490_v36 = vsel %vm1634_vm0, %v1593_v19, -inf  ;;  %v3494_v37 = vsel %vm1634_vm0, %v1592_v8, -inf }
 0x23f   : > { %1617 = vst [vmem:[%s3117_s8 + $0x88] sm:$0xff] %v1585_v41  ;;  %v3501_v38 = vsel %vm1634_vm0, %v1597_v10, -inf  ;;  %v3505_v39 = vsel %vm1634_vm0, %v1596_v23, -inf  ;;  %v3509_v40 = vsel %vm1634_vm0, %v1595_v20, -inf  ;;  %v3516_v41 = vsel %vm1634_vm0, %v1599_v31, -inf }
 0x240   : > { %1613 = vst [vmem:[%s3117_s8 + $0x68] sm:$0xff] %v1581_v43  ;;  %v3520_v42 = vsel %vm1634_vm0, %v1598_v24, -inf }
 0x241   : > { %1615 = vst [vmem:[%s3117_s8 + $0x78] sm:$0xff] %v1583_v44 }
 0x242   : > { %1620 = vst [vmem:[%s3117_s8 + $0xa0] sm:$0xff] %v3368_v47 }
 0x243   : > { %1616 = vst [vmem:[%s3117_s8 + $0x80] sm:$0xff] %v1584_v51 }
 0x244   : > { %1683 = vmax.xlane.f32.xlu2 %v3360_v45  ;;  %1681 = vmax.xlane.f32.xlu1 %v3364_v46  ;;  %1618 = vst [vmem:[%s3117_s8 + $0x90] sm:$0xff] %v1586_v52 }
 0x245   : > { %1679 = vmax.xlane.f32.xlu0 %v3372_v50  ;;  %1623 = vst [vmem:[%s3117_s8 + $0xb8] sm:$0xff] %v1591_v54 }
 0x246   : > { %1619 = vst [vmem:[%s3117_s8 + $0x98] sm:$0xff] %v1587_v60 }
 0x247   : > { %1621 = vst [vmem:[%s3117_s8 + $0xa8] sm:$0xff] %v1589_v61 }
 0x248   : > { %1626 = vst [vmem:[%s3117_s8 + $0xd0] sm:$0xff] %v1594_v63 }
 0x249   : > { %1622 = vst [vmem:[%s3117_s8 + $0xb0] sm:$0xff] %v1590_v6 }
 0x24a   : > { %1624 = vst [vmem:[%s3117_s8 + $0xc0] sm:$0xff] %v1592_v8 }
 0x24b   : > { %1629 = vst [vmem:[%s3117_s8 + $0xe8] sm:$0xff] %v1597_v10 }
 0x24c   : > { %1689 = vmax.xlane.f32.xlu2 %v3388_v55  ;;  %1687 = vmax.xlane.f32.xlu1 %v3392_v56  ;;  %1625 = vst [vmem:[%s3117_s8 + $0xc8] sm:$0xff] %v1593_v19 }
 0x24d   : > { %1685 = vmax.xlane.f32.xlu0 %v3396_v59  ;;  %1627 = vst [vmem:[%s3117_s8 + $0xd8] sm:$0xff] %v1595_v20 }
 0x24e   : > { %1628 = vst [vmem:[%s3117_s8 + $0xe0] sm:$0xff] %v1596_v23 }
 0x24f   : > { %1630 = vst [vmem:[%s3117_s8 + $0xf0] sm:$0xff] %v1598_v24 }
 0x250   : > { %1631 = vst [vmem:[%s3117_s8 + $0xf8] sm:$0xff] %v1599_v31 }
 0x254   : > { %1695 = vmax.xlane.f32.xlu2 %v3409_v0  ;;  %1693 = vmax.xlane.f32.xlu1 %v3413_v1 }
 0x255   : > { %1691 = vmax.xlane.f32.xlu0 %v3417_v5 }
 0x25c   : > { %1701 = vmax.xlane.f32.xlu2 %v3430_v11  ;;  %1699 = vmax.xlane.f32.xlu1 %v3434_v12 }
 0x25d   : > { %1697 = vmax.xlane.f32.xlu0 %v3438_v18 }
 0x264   : > { %1707 = vmax.xlane.f32.xlu2 %v3453_v25  ;;  %1705 = vmax.xlane.f32.xlu1 %v3457_v26 }
 0x265   : > { %1703 = vmax.xlane.f32.xlu0 %v3462_v27 }
 0x26c   : > { %1713 = vmax.xlane.f32.xlu2 %v3471_v33  ;;  %1711 = vmax.xlane.f32.xlu1 %v3475_v34 }
 0x26d   : > { %1709 = vmax.xlane.f32.xlu0 %v3479_v35 }
 0x274   : > { %1719 = vmax.xlane.f32.xlu2 %v3486_v2  ;;  %1717 = vmax.xlane.f32.xlu1 %v3490_v36 }
 0x275   : > { %1715 = vmax.xlane.f32.xlu0 %v3494_v37 }
 0x27c   : > { %1725 = vmax.xlane.f32.xlu2 %v3501_v38  ;;  %1723 = vmax.xlane.f32.xlu1 %v3505_v39 }
 0x27d   : > { %1721 = vmax.xlane.f32.xlu0 %v3509_v40 }
 0x284   : > { %1729 = vmax.xlane.f32.xlu1 %v3516_v41 }
 0x285   : > { %1727 = vmax.xlane.f32.xlu0 %v3520_v42 }
 0x2a7   : > { %v1676_v43 = vpop.xlane.xlu2 %1675  ;;  %v1672_v44 = vpop.xlane.xlu1 %1671 }
 0x2a8   : > { %v3525_v47 = vsub.f32 %v3306_v14, %v1672_v44  ;;  %v1668_v48 = vpop.xlane.xlu0 %1667  ;;  %v3544_v62 = vsub.f32 %v3302_v13, %v1676_v43 }
 0x2a9   : > { %v3528_v49 = vsub.f32 %v3311_v15, %v1668_v48 }
 0x2aa   : > { %v1767_v51 = vmul.f32 1.442695, %v3525_v47 }
 0x2ab   : > { %v1763_v52 = vmul.f32 1.442695, %v3528_v49 }
 0x2ac   : > { %2702 = vpow2.f32 %v1767_v51 }
 0x2ad   : > { %2704 = vpow2.f32 %v1763_v52 }
 0x2af   : > { %v1678_v7 = vpop.xlane.xlu2 %1677  ;;  %v1674_v53 = vpop.xlane.xlu1 %1673 }
 0x2b0   : > { %v3533_v54 = vsub.f32 %v3329_v28, %v1678_v7  ;;  %v3536_v57 = vsub.f32 %v3333_v29, %v1674_v53  ;;  %v1670_v14 = vpop.xlane.xlu0 %1669  ;;  %v1771_v28 = vmul.f32 1.442695, %v3544_v62 }
 0x2b1   : > { %v3539_v58 = vsub.f32 %v3339_v32, %v1670_v14 }
 0x2b2   : > { %v1773_v15 = vmul.f32 1.442695, %v3533_v54  ;;  %v1769_v60 = vmul.f32 1.442695, %v3536_v57  ;;  %v2703_v61 = vpop.eup %2702 }
 0x2b3   : > { %v1765_v63 = vmul.f32 1.442695, %v3539_v58  ;;  %v2705_v3 = vpop.eup %2704  ;;  %1831 = vadd.xlane.f32.xlu1 %v2703_v61 }
 0x2b4   : > { %2706 = vpow2.f32 %v1773_v15  ;;  %1827 = vadd.xlane.f32.xlu2 %v2705_v3 }
 0x2b5   : > { %2708 = vpow2.f32 %v1769_v60 }
 0x2b6   : > { %2710 = vpow2.f32 %v1765_v63 }
 0x2b7   : > { %v1684_v29 = vpop.xlane.xlu2 %1683  ;;  %v1682_v32 = vpop.xlane.xlu1 %1681  ;;  %2712 = vpow2.f32 %v1771_v28 }
 0x2b8   : > { %v3549_v4 = vsub.f32 %v3360_v45, %v1684_v29  ;;  %v1680_v6 = vpop.xlane.xlu0 %1679  ;;  %v3557_v17 = vsub.f32 %v3364_v46, %v1682_v32 }
 0x2b9   : > { %v3552_v8 = vsub.f32 %v3372_v50, %v1680_v6 }
 0x2ba   : > { %v2707_v13 = vpop.eup %2706  ;;  %v1779_v9 = vmul.f32 1.442695, %v3549_v4  ;;  %v1777_v50 = vmul.f32 1.442695, %v3557_v17 }
 0x2bb   : > { %v2709_v10 = vpop.eup %2708  ;;  %v1775_v16 = vmul.f32 1.442695, %v3552_v8  ;;  %1837 = vadd.xlane.f32.xlu1 %v2707_v13 }
 0x2bc   : > { %v2711_v19 = vpop.eup %2710  ;;  %2714 = vpow2.f32 %v1779_v9  ;;  %1833 = vadd.xlane.f32.xlu2 %v2709_v10 }
 0x2bd   : > { %2716 = vpow2.f32 %v1775_v16  ;;  %1829 = vadd.xlane.f32.xlu0 %v2711_v19  ;;  %v2713_v23 = vpop.eup %2712 }
 0x2be   : > { %2718 = vpow2.f32 %v1777_v50 }
 0x2bf   : > { %v1690_v45 = vpop.xlane.xlu2 %1689  ;;  %v1688_v20 = vpop.xlane.xlu1 %1687 }
 0x2c0   : > { %v3561_v21 = vsub.f32 %v3388_v55, %v1690_v45  ;;  %v1686_v22 = vpop.xlane.xlu0 %1685  ;;  %v3569_v44 = vsub.f32 %v3392_v56, %v1688_v20 }
 0x2c1   : > { %v3564_v24 = vsub.f32 %v3396_v59, %v1686_v22 }
 0x2c2   : > { %v2715_v46 = vpop.eup %2714  ;;  %v1785_v30 = vmul.f32 1.442695, %v3561_v21  ;;  %v1783_v48 = vmul.f32 1.442695, %v3569_v44 }
 0x2c3   : > { %v2717_v31 = vpop.eup %2716  ;;  %v1781_v43 = vmul.f32 1.442695, %v3564_v24  ;;  %1843 = vadd.xlane.f32.xlu1 %v2715_v46 }
 0x2c4   : > { %2720 = vpow2.f32 %v1785_v30  ;;  %1839 = vadd.xlane.f32.xlu2 %v2717_v31  ;;  %v2719_v7 = vpop.eup %2718 }
 0x2c5   : > { %2722 = vpow2.f32 %v1781_v43  ;;  %1835 = vadd.xlane.f32.xlu0 %v2713_v23 }
 0x2c6   : > { %2724 = vpow2.f32 %v1783_v48 }
 0x2c7   : > { %v1696_v55 = vpop.xlane.xlu2 %1695  ;;  %v1694_v59 = vpop.xlane.xlu1 %1693 }
 0x2c8   : > { %v3573_v51 = vsub.f32 %v3409_v0, %v1696_v55  ;;  %v1692_v52 = vpop.xlane.xlu0 %1691  ;;  %v3581_v61 = vsub.f32 %v3413_v1, %v1694_v59 }
 0x2c9   : > { %v3576_v53 = vsub.f32 %v3417_v5, %v1692_v52 }
 0x2ca   : > { %v2721_v14 = vpop.eup %2720  ;;  %v1791_v56 = vmul.f32 1.442695, %v3573_v51  ;;  %v1789_v63 = vmul.f32 1.442695, %v3581_v61 }
 0x2cb   : > { %v2723_v15 = vpop.eup %2722  ;;  %v1787_v60 = vmul.f32 1.442695, %v3576_v53  ;;  %1849 = vadd.xlane.f32.xlu1 %v2721_v14 }
 0x2cc   : > { %2726 = vpow2.f32 %v1791_v56  ;;  %1845 = vadd.xlane.f32.xlu2 %v2723_v15  ;;  %v2725_v29 = vpop.eup %2724 }
 0x2cd   : > { %2728 = vpow2.f32 %v1787_v60  ;;  %1841 = vadd.xlane.f32.xlu0 %v2719_v7 }
 0x2ce   : > { %2730 = vpow2.f32 %v1789_v63 }
 0x2cf   : > { %v1702_v0 = vpop.xlane.xlu2 %1701  ;;  %v1700_v5 = vpop.xlane.xlu1 %1699 }
 0x2d0   : > { %v3585_v3 = vsub.f32 %v3430_v11, %v1702_v0  ;;  %v1698_v28 = vpop.xlane.xlu0 %1697  ;;  %v3593_v10 = vsub.f32 %v3434_v12, %v1700_v5 }
 0x2d1   : > { %v3588_v32 = vsub.f32 %v3438_v18, %v1698_v28 }
 0x2d2   : > { %v2727_v6 = vpop.eup %2726  ;;  %v1797_v1 = vmul.f32 1.442695, %v3585_v3  ;;  %v1795_v16 = vmul.f32 1.442695, %v3593_v10 }
 0x2d3   : > { %v2729_v13 = vpop.eup %2728  ;;  %v1793_v9 = vmul.f32 1.442695, %v3588_v32  ;;  %1855 = vadd.xlane.f32.xlu1 %v2727_v6 }
 0x2d4   : > { %2732 = vpow2.f32 %v1797_v1  ;;  %1851 = vadd.xlane.f32.xlu2 %v2729_v13  ;;  %v2731_v50 = vpop.eup %2730 }
 0x2d5   : > { %2734 = vpow2.f32 %v1793_v9  ;;  %1847 = vadd.xlane.f32.xlu0 %v2725_v29 }
 0x2d6   : > { %2736 = vpow2.f32 %v1795_v16 }
 0x2d7   : > { %v1708_v11 = vpop.xlane.xlu2 %1707  ;;  %v1706_v18 = vpop.xlane.xlu1 %1705 }
 0x2d8   : > { %v3597_v19 = vsub.f32 %v3453_v25, %v1708_v11  ;;  %v1704_v45 = vpop.xlane.xlu0 %1703  ;;  %v3605_v30 = vsub.f32 %v3457_v26, %v1706_v18 }
 0x2d9   : > { %v3600_v20 = vsub.f32 %v3462_v27, %v1704_v45 }
 0x2da   : > { %v2733_v22 = vpop.eup %2732  ;;  %v1803_v12 = vmul.f32 1.442695, %v3597_v19  ;;  %v1801_v31 = vmul.f32 1.442695, %v3605_v30 }
 0x2db   : > { %v2735_v23 = vpop.eup %2734  ;;  %v1799_v46 = vmul.f32 1.442695, %v3600_v20  ;;  %1861 = vadd.xlane.f32.xlu1 %v2733_v22 }
 0x2dc   : > { %2738 = vpow2.f32 %v1803_v12  ;;  %1857 = vadd.xlane.f32.xlu2 %v2735_v23  ;;  %v2737_v48 = vpop.eup %2736 }
 0x2dd   : > { %2740 = vpow2.f32 %v1799_v46  ;;  %1853 = vadd.xlane.f32.xlu0 %v2731_v50 }
 0x2de   : > { %2742 = vpow2.f32 %v1801_v31 }
 0x2df   : > { %v1714_v25 = vpop.xlane.xlu2 %1713  ;;  %v1712_v27 = vpop.xlane.xlu1 %1711 }
 0x2e0   : > { %v3609_v43 = vsub.f32 %v3471_v33, %v1714_v25  ;;  %v1710_v55 = vpop.xlane.xlu0 %1709  ;;  %v3617_v56 = vsub.f32 %v3475_v34, %v1712_v27 }
 0x2e1   : > { %v3612_v59 = vsub.f32 %v3479_v35, %v1710_v55 }
 0x2e2   : > { %v2739_v52 = vpop.eup %2738  ;;  %v1809_v26 = vmul.f32 1.442695, %v3609_v43  ;;  %v1807_v15 = vmul.f32 1.442695, %v3617_v56 }
 0x2e3   : > { %v2741_v7 = vpop.eup %2740  ;;  %v1805_v14 = vmul.f32 1.442695, %v3612_v59  ;;  %1867 = vadd.xlane.f32.xlu1 %v2739_v52 }
 0x2e4   : > { %2744 = vpow2.f32 %v1809_v26  ;;  %1863 = vadd.xlane.f32.xlu2 %v2741_v7  ;;  %v2743_v63 = vpop.eup %2742 }
 0x2e5   : > { %2746 = vpow2.f32 %v1805_v14  ;;  %1859 = vadd.xlane.f32.xlu0 %v2737_v48 }
 0x2e6   : > { %2748 = vpow2.f32 %v1807_v15 }
 0x2e7   : > { %v1720_v33 = vpop.xlane.xlu2 %1719  ;;  %v1718_v35 = vpop.xlane.xlu1 %1717 }
 0x2e8   : > { %v3621_v60 = vsub.f32 %v3486_v2, %v1720_v33  ;;  %v1716_v0 = vpop.xlane.xlu0 %1715  ;;  %v3629_v1 = vsub.f32 %v3490_v36, %v1718_v35 }
 0x2e9   : > { %v3624_v5 = vsub.f32 %v3494_v37, %v1716_v0 }
 0x2ea   : > { %v2745_v28 = vpop.eup %2744  ;;  %v1815_v34 = vmul.f32 1.442695, %v3621_v60  ;;  %v1813_v13 = vmul.f32 1.442695, %v3629_v1 }
 0x2eb   : > { %v2747_v29 = vpop.eup %2746  ;;  %v1811_v6 = vmul.f32 1.442695, %v3624_v5  ;;  %1873 = vadd.xlane.f32.xlu1 %v2745_v28 }
 0x2ec   : > { %2750 = vpow2.f32 %v1815_v34  ;;  %1869 = vadd.xlane.f32.xlu2 %v2747_v29  ;;  %v2749_v16 = vpop.eup %2748 }
 0x2ed   : > { %2752 = vpow2.f32 %v1811_v6  ;;  %1865 = vadd.xlane.f32.xlu0 %v2743_v63 }
 0x2ee   : > { %2754 = vpow2.f32 %v1813_v13 }
 0x2ef   : > { %v1726_v2 = vpop.xlane.xlu2 %1725  ;;  %v1724_v37 = vpop.xlane.xlu1 %1723 }
 0x2f0   : > { %v3633_v9 = vsub.f32 %v3501_v38, %v1726_v2  ;;  %v1722_v11 = vpop.xlane.xlu0 %1721  ;;  %v3641_v12 = vsub.f32 %v3505_v39, %v1724_v37 }
 0x2f1   : > { %v3636_v18 = vsub.f32 %v3509_v40, %v1722_v11 }
 0x2f2   : > { %v2751_v45 = vpop.eup %2750  ;;  %v1821_v36 = vmul.f32 1.442695, %v3633_v9  ;;  %v1819_v38 = vmul.f32 1.442695, %v3641_v12 }
 0x2f3   : > { %v2753_v50 = vpop.eup %2752  ;;  %v1817_v22 = vmul.f32 1.442695, %v3636_v18  ;;  %1879 = vadd.xlane.f32.xlu1 %v2751_v45 }
 0x2f4   : > { %2756 = vpow2.f32 %v1821_v36  ;;  %1875 = vadd.xlane.f32.xlu2 %v2753_v50  ;;  %v2755_v40 = vpop.eup %2754 }
 0x2f5   : > { %2758 = vpow2.f32 %v1817_v22  ;;  %1871 = vadd.xlane.f32.xlu0 %v2749_v16 }
 0x2f6   : > { %2760 = vpow2.f32 %v1819_v38 }
 0x2f7   : > { %v1730_v25 = vpop.xlane.xlu1 %1729 }
 0x2f8   : > { %v1728_v23 = vpop.xlane.xlu0 %1727  ;;  %v3649_v39 = vsub.f32 %v3516_v41, %v1730_v25 }
 0x2f9   : > { %v3645_v46 = vsub.f32 %v3520_v42, %v1728_v23 }
 0x2fa   : > { %v2757_v31 = vpop.eup %2756  ;;  %v1825_v48 = vmul.f32 1.442695, %v3649_v39 }
 0x2fb   : > { %v2759_v27 = vpop.eup %2758  ;;  %v1823_v55 = vmul.f32 1.442695, %v3645_v46  ;;  %1885 = vadd.xlane.f32.xlu1 %v2757_v31 }
 0x2fc   : > { %1881 = vadd.xlane.f32.xlu2 %v2759_v27  ;;  %v2761_v52 = vpop.eup %2760 }
 0x2fd   : > { %2762 = vpow2.f32 %v1823_v55  ;;  %1877 = vadd.xlane.f32.xlu0 %v2755_v40 }
 0x2fe   : > { %2764 = vpow2.f32 %v1825_v48 }
 0x303   : > { %v2763_v26 = vpop.eup %2762 }
 0x304   : > { %1887 = vadd.xlane.f32.xlu2 %v2763_v26  ;;  %v2765_v42 = vpop.eup %2764 }
 0x305   : > { %1883 = vadd.xlane.f32.xlu0 %v2761_v52 }
 0x30d   : > { %1889 = vadd.xlane.f32.xlu0 %v2765_v42 }
 0x326   : > { %v1832_v7 = vpop.xlane.xlu1 %1831 }
 0x327   : > { %2766 = vlog2.f32 %v1832_v7  ;;  %v1828_v14 = vpop.xlane.xlu2 %1827 }
 0x328   : > { %2768 = vlog2.f32 %v1828_v14 }
 0x32d   : > { %v2767_v41 = vpop.eup %2766 }
 0x32e   : > { %v2769_v33 = vpop.eup %2768  ;;  %v1896_v15 = vmul.f32 0.6931472, %v2767_v41  ;;  %v1838_v35 = vpop.xlane.xlu1 %1837 }
 0x32f   : > { %v1892_v0 = vmul.f32 0.6931472, %v2769_v33  ;;  %2770 = vlog2.f32 %v1838_v35  ;;  %v1834_v63 = vpop.xlane.xlu2 %1833 }
 0x330   : > { %v1830_v28 = vpop.xlane.xlu0 %1829  ;;  %v1957_v34 = vsub.f32 %v3525_v47, %v1896_v15  ;;  %2772 = vlog2.f32 %v1834_v63 }
 0x331   : > { %v1955_v29 = vsub.f32 %v3528_v49, %v1892_v0  ;;  %2774 = vlog2.f32 %v1830_v28 }
 0x332   : > { %1989 = vst [vmem:[%s3122_s10 + $0x10] sm:$0xff] %v1957_v34 }
 0x333   : > { %1987 = vst [vmem:[%s3122_s10] sm:$0xff] %v1955_v29 }
 0x335   : > { %v2771_v6 = vpop.eup %2770 }
 0x336   : > { %v2773_v2 = vpop.eup %2772  ;;  %v1902_v13 = vmul.f32 0.6931472, %v2771_v6  ;;  %v1844_v37 = vpop.xlane.xlu1 %1843 }
 0x337   : > { %v2775_v11 = vpop.eup %2774  ;;  %v1898_v16 = vmul.f32 0.6931472, %v2773_v2  ;;  %2776 = vlog2.f32 %v1844_v37  ;;  %v1840_v45 = vpop.xlane.xlu2 %1839 }
 0x338   : > { %v1836_v36 = vpop.xlane.xlu0 %1835  ;;  %v1960_v47 = vsub.f32 %v3533_v54, %v1902_v13  ;;  %v1894_v50 = vmul.f32 0.6931472, %v2775_v11  ;;  %2778 = vlog2.f32 %v1840_v45 }
 0x339   : > { %v1958_v49 = vsub.f32 %v3536_v57, %v1898_v16  ;;  %2780 = vlog2.f32 %v1836_v36 }
 0x33a   : > { %1992 = vst [vmem:[%s3122_s10 + $0x28] sm:$0xff] %v1960_v47  ;;  %v1956_v22 = vsub.f32 %v3539_v58, %v1894_v50 }
 0x33b   : > { %1990 = vst [vmem:[%s3122_s10 + $0x18] sm:$0xff] %v1958_v49 }
 0x33c   : > { %1988 = vst [vmem:[%s3122_s10 + $0x8] sm:$0xff] %v1956_v22 }
 0x33d   : > { %v2777_v38 = vpop.eup %2776 }
 0x33e   : > { %v2779_v23 = vpop.eup %2778  ;;  %v1908_v40 = vmul.f32 0.6931472, %v2777_v38  ;;  %v1850_v25 = vpop.xlane.xlu1 %1849 }
 0x33f   : > { %v2781_v31 = vpop.eup %2780  ;;  %v1904_v27 = vmul.f32 0.6931472, %v2779_v23  ;;  %2782 = vlog2.f32 %v1850_v25  ;;  %v1846_v54 = vpop.xlane.xlu2 %1845 }
 0x340   : > { %v1842_v55 = vpop.xlane.xlu0 %1841  ;;  %v1963_v57 = vsub.f32 %v3549_v4, %v1908_v40  ;;  %v1900_v48 = vmul.f32 0.6931472, %v2781_v31  ;;  %2784 = vlog2.f32 %v1846_v54 }
 0x341   : > { %v1961_v58 = vsub.f32 %v3552_v8, %v1904_v27  ;;  %2786 = vlog2.f32 %v1842_v55 }
 0x342   : > { %1995 = vst [vmem:[%s3122_s10 + $0x40] sm:$0xff] %v1963_v57  ;;  %v1959_v52 = vsub.f32 %v3544_v62, %v1900_v48 }
 0x343   : > { %1993 = vst [vmem:[%s3122_s10 + $0x30] sm:$0xff] %v1961_v58 }
 0x344   : > { %1991 = vst [vmem:[%s3122_s10 + $0x20] sm:$0xff] %v1959_v52 }
 0x345   : > { %v2783_v26 = vpop.eup %2782 }
 0x346   : > { %v2785_v42 = vpop.eup %2784  ;;  %v1914_v7 = vmul.f32 0.6931472, %v2783_v26  ;;  %v1856_v14 = vpop.xlane.xlu1 %1855 }
 0x347   : > { %v2787_v41 = vpop.eup %2786  ;;  %v1910_v33 = vmul.f32 0.6931472, %v2785_v42  ;;  %2788 = vlog2.f32 %v1856_v14  ;;  %v1852_v4 = vpop.xlane.xlu2 %1851 }
 0x348   : > { %v1848_v15 = vpop.xlane.xlu0 %1847  ;;  %v1966_v8 = vsub.f32 %v3561_v21, %v1914_v7  ;;  %v1906_v35 = vmul.f32 0.6931472, %v2787_v41  ;;  %2790 = vlog2.f32 %v1852_v4 }
 0x349   : > { %v1964_v62 = vsub.f32 %v3564_v24, %v1910_v33  ;;  %2792 = vlog2.f32 %v1848_v15 }
 0x34a   : > { %1998 = vst [vmem:[%s3122_s10 + $0x58] sm:$0xff] %v1966_v8  ;;  %v1962_v0 = vsub.f32 %v3557_v17, %v1906_v35 }
 0x34b   : > { %1996 = vst [vmem:[%s3122_s10 + $0x48] sm:$0xff] %v1964_v62 }
 0x34c   : > { %1994 = vst [vmem:[%s3122_s10 + $0x38] sm:$0xff] %v1962_v0 }
 0x34d   : > { %v2789_v63 = vpop.eup %2788 }
 0x34e   : > { %v2791_v28 = vpop.eup %2790  ;;  %v1920_v34 = vmul.f32 0.6931472, %v2789_v63  ;;  %v1862_v29 = vpop.xlane.xlu1 %1861 }
 0x34f   : > { %v2793_v6 = vpop.eup %2792  ;;  %v1916_v2 = vmul.f32 0.6931472, %v2791_v28  ;;  %2794 = vlog2.f32 %v1862_v29  ;;  %v1858_v21 = vpop.xlane.xlu2 %1857 }
 0x350   : > { %v1854_v13 = vpop.xlane.xlu0 %1853  ;;  %v1969_v24 = vsub.f32 %v3573_v51, %v1920_v34  ;;  %v1912_v37 = vmul.f32 0.6931472, %v2793_v6  ;;  %2796 = vlog2.f32 %v1858_v21 }
 0x351   : > { %v1967_v17 = vsub.f32 %v3576_v53, %v1916_v2  ;;  %2798 = vlog2.f32 %v1854_v13 }
 0x352   : > { %2001 = vst [vmem:[%s3122_s10 + $0x70] sm:$0xff] %v1969_v24  ;;  %v1965_v11 = vsub.f32 %v3569_v44, %v1912_v37 }
 0x353   : > { %1999 = vst [vmem:[%s3122_s10 + $0x60] sm:$0xff] %v1967_v17 }
 0x354   : > { %1997 = vst [vmem:[%s3122_s10 + $0x50] sm:$0xff] %v1965_v11 }
 0x355   : > { %v2795_v16 = vpop.eup %2794 }
 0x356   : > { %v2797_v45 = vpop.eup %2796  ;;  %v1926_v36 = vmul.f32 0.6931472, %v2795_v16  ;;  %v1868_v47 = vpop.xlane.xlu1 %1867 }
 0x357   : > { %v2799_v50 = vpop.eup %2798  ;;  %v1922_v49 = vmul.f32 0.6931472, %v2797_v45  ;;  %2800 = vlog2.f32 %v1868_v47  ;;  %v1864_v51 = vpop.xlane.xlu2 %1863 }
 0x358   : > { %v1860_v22 = vpop.xlane.xlu0 %1859  ;;  %v1972_v53 = vsub.f32 %v3585_v3, %v1926_v36  ;;  %v1918_v38 = vmul.f32 0.6931472, %v2799_v50  ;;  %2802 = vlog2.f32 %v1864_v51 }
 0x359   : > { %v1970_v44 = vsub.f32 %v3588_v32, %v1922_v49  ;;  %2804 = vlog2.f32 %v1860_v22 }
 0x35a   : > { %2004 = vst [vmem:[%s3122_s10 + $0x88] sm:$0xff] %v1972_v53  ;;  %v1968_v23 = vsub.f32 %v3581_v61, %v1918_v38 }
 0x35b   : > { %2002 = vst [vmem:[%s3122_s10 + $0x78] sm:$0xff] %v1970_v44 }
 0x35c   : > { %2000 = vst [vmem:[%s3122_s10 + $0x68] sm:$0xff] %v1968_v23 }
 0x35d   : > { %v2801_v40 = vpop.eup %2800 }
 0x35e   : > { %v2803_v25 = vpop.eup %2802  ;;  %v1932_v31 = vmul.f32 0.6931472, %v2801_v40  ;;  %v1874_v27 = vpop.xlane.xlu1 %1873 }
 0x35f   : > { %v2805_v54 = vpop.eup %2804  ;;  %v1928_v55 = vmul.f32 0.6931472, %v2803_v25  ;;  %2806 = vlog2.f32 %v1874_v27  ;;  %v1870_v3 = vpop.xlane.xlu2 %1869 }
 0x360   : > { %v1866_v57 = vpop.xlane.xlu0 %1865  ;;  %v1975_v32 = vsub.f32 %v3597_v19, %v1932_v31  ;;  %v1924_v48 = vmul.f32 0.6931472, %v2805_v54  ;;  %2808 = vlog2.f32 %v1870_v3 }
 0x361   : > { %v1973_v61 = vsub.f32 %v3600_v20, %v1928_v55  ;;  %2810 = vlog2.f32 %v1866_v57 }
 0x362   : > { %2007 = vst [vmem:[%s3122_s10 + $0xa0] sm:$0xff] %v1975_v32  ;;  %v1971_v58 = vsub.f32 %v3593_v10, %v1924_v48 }
 0x363   : > { %2005 = vst [vmem:[%s3122_s10 + $0x90] sm:$0xff] %v1973_v61 }
 0x364   : > { %2003 = vst [vmem:[%s3122_s10 + $0x80] sm:$0xff] %v1971_v58 }
 0x365   : > { %v2807_v52 = vpop.eup %2806 }
 0x366   : > { %v2809_v26 = vpop.eup %2808  ;;  %v1938_v42 = vmul.f32 0.6931472, %v2807_v52  ;;  %v1880_v7 = vpop.xlane.xlu1 %1879 }
 0x367   : > { %v2811_v14 = vpop.eup %2810  ;;  %v1934_v41 = vmul.f32 0.6931472, %v2809_v26  ;;  %2812 = vlog2.f32 %v1880_v7  ;;  %v1876_v19 = vpop.xlane.xlu2 %1875 }
 0x368   : > { %v1872_v33 = vpop.xlane.xlu0 %1871  ;;  %v1978_v20 = vsub.f32 %v3609_v43, %v1938_v42  ;;  %v1930_v4 = vmul.f32 0.6931472, %v2811_v14  ;;  %2814 = vlog2.f32 %v1876_v19 }
 0x369   : > { %v1976_v10 = vsub.f32 %v3612_v59, %v1934_v41  ;;  %2816 = vlog2.f32 %v1872_v33 }
 0x36a   : > { %2010 = vst [vmem:[%s3122_s10 + $0xb8] sm:$0xff] %v1978_v20  ;;  %v1974_v15 = vsub.f32 %v3605_v30, %v1930_v4 }
 0x36b   : > { %2008 = vst [vmem:[%s3122_s10 + $0xa8] sm:$0xff] %v1976_v10 }
 0x36c   : > { %2006 = vst [vmem:[%s3122_s10 + $0x98] sm:$0xff] %v1974_v15 }
 0x36d   : > { %v2813_v8 = vpop.eup %2812 }
 0x36e   : > { %v2815_v35 = vpop.eup %2814  ;;  %v1944_v62 = vmul.f32 0.6931472, %v2813_v8  ;;  %v1886_v0 = vpop.xlane.xlu1 %1885 }
 0x36f   : > { %v2817_v63 = vpop.eup %2816  ;;  %v1940_v28 = vmul.f32 0.6931472, %v2815_v35  ;;  %2818 = vlog2.f32 %v1886_v0  ;;  %v1882_v43 = vpop.xlane.xlu2 %1881 }
 0x370   : > { %v1878_v34 = vpop.xlane.xlu0 %1877  ;;  %v1981_v59 = vsub.f32 %v3621_v60, %v1944_v62  ;;  %v1936_v29 = vmul.f32 0.6931472, %v2817_v63  ;;  %2820 = vlog2.f32 %v1882_v43 }
 0x371   : > { %v1979_v30 = vsub.f32 %v3624_v5, %v1940_v28  ;;  %2822 = vlog2.f32 %v1878_v34 }
 0x372   : > { %2013 = vst [vmem:[%s3122_s10 + $0xd0] sm:$0xff] %v1981_v59  ;;  %v1977_v6 = vsub.f32 %v3617_v56, %v1936_v29 }
 0x373   : > { %2011 = vst [vmem:[%s3122_s10 + $0xc0] sm:$0xff] %v1979_v30 }
 0x374   : > { %2009 = vst [vmem:[%s3122_s10 + $0xb0] sm:$0xff] %v1977_v6 }
 0x375   : > { %v2819_v2 = vpop.eup %2818 }
 0x376   : > { %v2821_v21 = vpop.eup %2820  ;;  %v1950_v13 = vmul.f32 0.6931472, %v2819_v2 }
 0x377   : > { %v2823_v24 = vpop.eup %2822  ;;  %v1946_v37 = vmul.f32 0.6931472, %v2821_v21  ;;  %v1888_v17 = vpop.xlane.xlu2 %1887 }
 0x378   : > { %v1884_v60 = vpop.xlane.xlu0 %1883  ;;  %v1984_v11 = vsub.f32 %v3633_v9, %v1950_v13  ;;  %v1942_v16 = vmul.f32 0.6931472, %v2823_v24  ;;  %2824 = vlog2.f32 %v1888_v17 }
 0x379   : > { %v1982_v5 = vsub.f32 %v3636_v18, %v1946_v37  ;;  %2826 = vlog2.f32 %v1884_v60 }
 0x37a   : > { %2016 = vst [vmem:[%s3122_s10 + $0xe8] sm:$0xff] %v1984_v11  ;;  %v1980_v56 = vsub.f32 %v3629_v1, %v1942_v16 }
 0x37b   : > { %2014 = vst [vmem:[%s3122_s10 + $0xd8] sm:$0xff] %v1982_v5 }
 0x37c   : > { %2012 = vst [vmem:[%s3122_s10 + $0xc8] sm:$0xff] %v1980_v56 }
 0x37e   : > { %v2825_v45 = vpop.eup %2824 }
 0x37f   : > { %v2827_v36 = vpop.eup %2826  ;;  %v1952_v47 = vmul.f32 0.6931472, %v2825_v45 }
 0x380   : > { %v1890_v50 = vpop.xlane.xlu0 %1889  ;;  %v1948_v49 = vmul.f32 0.6931472, %v2827_v36 }
 0x381   : > { %2828 = vlog2.f32 %v1890_v50  ;;  %v1985_v9 = vsub.f32 %v3645_v46, %v1952_v47 }
 0x382   : > { %v1983_v51 = vsub.f32 %v3641_v12, %v1948_v49 }
 0x383   : > { %2017 = vst [vmem:[%s3122_s10 + $0xf0] sm:$0xff] %v1985_v9 }
 0x384   : > { %2015 = vst [vmem:[%s3122_s10 + $0xe0] sm:$0xff] %v1983_v51 }
 0x387   : > { %v2829_v18 = vpop.eup %2828 }
 0x388   : > { %v1954_v22 = vmul.f32 0.6931472, %v2829_v18 }
 0x38a   : > { %v1986_v53 = vsub.f32 %v3649_v39, %v1954_v22 }
 0x38c   : > { %2018 = vst [vmem:[%s3122_s10 + $0xf8] sm:$0xff] %v1986_v53 }
 0x38d PF: > { %s15_s21 = sadd.s32 1, %s2884_s21   ;;  %s3742_s15 = smov %s2864_s16 }
 0x38e   : > { %p12_p0 = scmp.ge.s32.totalorder %s15_s21, 10   ;;  %s3743_s16 = smov %s2963_s28 }
 0x38f   : > { %s3744_s17 = smov %s2876_s19  ;;  %s3745_s18 = smov %s2880_s20 }
 0x390   : > { %s3746_s19 = smov %s3749_s22  ;;  %s3747_s20 = smov %s3753_s23 }
 0x391   :  { %14 = sbr.rel (!%p12_p0) target bundleno = 4 (0x4), region = 113 }

// kernel: gcn_pia2_unlearn_forward.7
= control target key start
LH: loop header
LB: loop body
LE: loop exit
PB: predicated region body
PF: predicated region fallthrough
CT: control target
= control target key end

     0   :  { %s2315_s12 = smov 0   ;;  %s2317_s13 = smov 0   ;;  %s2776_s0 = inlined_call_operand.vmem [shape: bf16[1024,1024], index: 0, kind: input, shape index: {}]   ;;  %s2777_s1 = inlined_call_operand.vmem [shape: bf16[1024,128], index: 1, kind: input, shape index: {}]   ;;  %s2778_s2 = inlined_call_operand.vmem [shape: f32[1,128], index: 2, kind: input, shape index: {}]   ;;  %s2779_s3 = inlined_call_operand.vmem [shape: f32[1024,128], index: 3, kind: output, shape index: {}]  }
   0x1   :  { %s2319_s14 = smov 0   ;;  %s2321_s15 = smov 0  }
   0x2   :  { %s2323_s16 = smov 0   ;;  %s2325_s17 = smov 0  }
   0x3   :  { %s2327_s18 = smov 0  }
   0x4 LB: > { %s22_s19 = sadd.s32 1, %s2284_s16  ;;  %s25_s20 = sadd.s32 1, %s2288_s17  ;;  %s2292_s18 = sphi %s2327_s18, %s13_s18   ;;  %s2288_s17 = sphi %s2325_s17, %s2785_s17   ;;  %s2284_s16 = sphi %s2323_s16, %s2784_s16   ;;  %s2280_s15 = sphi %s2321_s15, %s2783_s15   ;;  %s2276_s14 = sphi %s2319_s14, %s2782_s14   ;;  %s2272_s13 = sphi %s2317_s13, %s2781_s13   ;;  %s2268_s12 = sphi %s2315_s12, %s2780_s12  }
   0x5   : > { %p23_p0 = scmp.ge.s32.totalorder %s22_s19, 2  ;;  %p41_p1 = scmp.ne.s32.totalorder %s2272_s13, %s2268_s12 }
   0x6   : > { %p42_p2 = scmp.eq.s32.totalorder %s2292_s18, 0  ;;  %s34_s24 = sadd.s32 1, %s2272_s13 }
   0x7   : > { %s2787_s19 = smov (%p23_p0, %s22_s19), 0  ;;  %s2789_s20 = smov (!%p23_p0, %s25_s20), %s2288_s17 }
   0x8   : > { %p43_p3 = por %p42_p2, %p41_p1  ;;  %p27_p4 = scmp.ge.s32.totalorder %s2789_s20, 4 }
   0x9   : > { %s30_s21 = ssub.s32 %s2284_s16, %s2787_s19  ;;  %p1683_p6 = scmp.ge.s32.totalorder %s2292_s18, 8 }
   0xa   : > { %s2791_s20 = smov (%p27_p4, %s2789_s20), 0 }
   0xb   : > { %s29_s22 = ssub.s32 %s2288_s17, %s2791_s20  ;;  %143 = sbr.rel (%p1683_p6) target bundleno = 87 (0x57), region = 20 }
   0xc   : > { %s31_s23 = sor.u32 %s30_s21, %s29_s22 }
   0xd   : > { %p32_p5 = scmp.eq.s32.totalorder %s31_s23, 0 }
   0xf   : > { %s2366_s25 = scalar_select %p32_p5, %s2272_s13, %s34_s24  }
  0x10   : > { %146 = sbr.rel (!%p43_p3) target bundleno = 87 (0x57), region = 24  ;;  %s148_s26 = sand.u32 (%p43_p3), 1, %s2272_s13  }
  0x11   : > { %s1686_s27 = sshll.u32 (%p43_p3), %s2284_s16, 2  ;;  %s1684_s28 = sshll.u32 (%p43_p3), %s148_s26, 9 }
  0x12   : > { %s2083_s29 = sshll.u32 (%p43_p3), %s2288_s17, 8  ;;  %s2380_s8 = scalar_lea.vmem (%p43_p3), [#allocation3], %s1684_s28 }
  0x13   : > { %s154_s30 = sadd.s32 (%p43_p3), %s2083_s29, %s1686_s27 }
  0x14   : > { %s1688_s4 = sshll.u32 (%p43_p3), %s154_s30, 2 }
  0x15   : > { %s2375_s7 = scalar_lea.vmem %s2776_s0, %s1688_s4 }
  0x16   : > { %v169_v0 = vld [vmem:[%s2375_s7] sm:$0xff]  ;;  %v171_v1 = vld [vmem:[%s2375_s7 + $0x8] sm:$0xff] }
  0x17   : > { %v173_v2 = vld [vmem:[%s2375_s7 + $0x20] sm:$0xff]  ;;  %170 = vst [vmem:[%s2380_s8] sm:$0xff] %v169_v0  ;;  %v175_v3 = vld [vmem:[%s2375_s7 + $0x28] sm:$0xff] }
  0x18   : > { %172 = vst [vmem:[%s2380_s8 + $0x8] sm:$0xff] %v171_v1  ;;  %v177_v4 = vld [vmem:[%s2375_s7 + $0x40] sm:$0xff]  ;;  %v179_v5 = vld [vmem:[%s2375_s7 + $0x48] sm:$0xff] }
  0x19   : > { %174 = vst [vmem:[%s2380_s8 + $0x10] sm:$0xff] %v173_v2  ;;  %v181_v6 = vld [vmem:[%s2375_s7 + $0x60] sm:$0xff]  ;;  %v183_v7 = vld [vmem:[%s2375_s7 + $0x68] sm:$0xff] }
  0x1a   : > { %176 = vst [vmem:[%s2380_s8 + $0x18] sm:$0xff] %v175_v3  ;;  %v185_v8 = vld [vmem:[%s2375_s7 + $0x80] sm:$0xff]  ;;  %v187_v9 = vld [vmem:[%s2375_s7 + $0x88] sm:$0xff] }
  0x1b   : > { %178 = vst [vmem:[%s2380_s8 + $0x20] sm:$0xff] %v177_v4  ;;  %v189_v10 = vld [vmem:[%s2375_s7 + $0xa0] sm:$0xff]  ;;  %v191_v11 = vld [vmem:[%s2375_s7 + $0xa8] sm:$0xff] }
  0x1c   : > { %180 = vst [vmem:[%s2380_s8 + $0x28] sm:$0xff] %v179_v5  ;;  %v193_v12 = vld [vmem:[%s2375_s7 + $0xc0] sm:$0xff]  ;;  %v195_v13 = vld [vmem:[%s2375_s7 + $0xc8] sm:$0xff] }
  0x1d   : > { %182 = vst [vmem:[%s2380_s8 + $0x30] sm:$0xff] %v181_v6  ;;  %v197_v14 = vld [vmem:[%s2375_s7 + $0xe0] sm:$0xff]  ;;  %v199_v15 = vld [vmem:[%s2375_s7 + $0xe8] sm:$0xff] }
  0x1e   : > { %184 = vst [vmem:[%s2380_s8 + $0x38] sm:$0xff] %v183_v7  ;;  %v201_v16 = vld [vmem:[%s2375_s7 + $0x100] sm:$0xff]  ;;  %v203_v17 = vld [vmem:[%s2375_s7 + $0x108] sm:$0xff] }
  0x1f   : > { %186 = vst [vmem:[%s2380_s8 + $0x40] sm:$0xff] %v185_v8  ;;  %v205_v18 = vld [vmem:[%s2375_s7 + $0x120] sm:$0xff]  ;;  %v207_v19 = vld [vmem:[%s2375_s7 + $0x128] sm:$0xff] }
  0x20   : > { %188 = vst [vmem:[%s2380_s8 + $0x48] sm:$0xff] %v187_v9  ;;  %v209_v20 = vld [vmem:[%s2375_s7 + $0x140] sm:$0xff]  ;;  %v211_v21 = vld [vmem:[%s2375_s7 + $0x148] sm:$0xff] }
  0x21   : > { %190 = vst [vmem:[%s2380_s8 + $0x50] sm:$0xff] %v189_v10  ;;  %v213_v22 = vld [vmem:[%s2375_s7 + $0x160] sm:$0xff]  ;;  %v215_v23 = vld [vmem:[%s2375_s7 + $0x168] sm:$0xff] }
  0x22   : > { %192 = vst [vmem:[%s2380_s8 + $0x58] sm:$0xff] %v191_v11  ;;  %v217_v24 = vld [vmem:[%s2375_s7 + $0x180] sm:$0xff]  ;;  %v219_v25 = vld [vmem:[%s2375_s7 + $0x188] sm:$0xff] }
  0x23   : > { %194 = vst [vmem:[%s2380_s8 + $0x60] sm:$0xff] %v193_v12  ;;  %v221_v26 = vld [vmem:[%s2375_s7 + $0x1a0] sm:$0xff]  ;;  %v223_v27 = vld [vmem:[%s2375_s7 + $0x1a8] sm:$0xff] }
  0x24   : > { %196 = vst [vmem:[%s2380_s8 + $0x68] sm:$0xff] %v195_v13  ;;  %v225_v28 = vld [vmem:[%s2375_s7 + $0x1c0] sm:$0xff]  ;;  %v227_v29 = vld [vmem:[%s2375_s7 + $0x1c8] sm:$0xff] }
  0x25   : > { %198 = vst [vmem:[%s2380_s8 + $0x70] sm:$0xff] %v197_v14  ;;  %v229_v30 = vld [vmem:[%s2375_s7 + $0x1e0] sm:$0xff]  ;;  %v231_v31 = vld [vmem:[%s2375_s7 + $0x1e8] sm:$0xff] }
  0x26   : > { %200 = vst [vmem:[%s2380_s8 + $0x78] sm:$0xff] %v199_v15  ;;  %v233_v32 = vld [vmem:[%s2375_s7 + $0x200] sm:$0xff]  ;;  %v235_v33 = vld [vmem:[%s2375_s7 + $0x208] sm:$0xff] }
  0x27   : > { %202 = vst [vmem:[%s2380_s8 + $0x80] sm:$0xff] %v201_v16  ;;  %v237_v34 = vld [vmem:[%s2375_s7 + $0x220] sm:$0xff]  ;;  %v239_v35 = vld [vmem:[%s2375_s7 + $0x228] sm:$0xff] }
  0x28   : > { %204 = vst [vmem:[%s2380_s8 + $0x88] sm:$0xff] %v203_v17  ;;  %v241_v36 = vld [vmem:[%s2375_s7 + $0x240] sm:$0xff]  ;;  %v243_v37 = vld [vmem:[%s2375_s7 + $0x248] sm:$0xff] }
  0x29   : > { %206 = vst [vmem:[%s2380_s8 + $0x90] sm:$0xff] %v205_v18  ;;  %v245_v38 = vld [vmem:[%s2375_s7 + $0x260] sm:$0xff]  ;;  %v247_v39 = vld [vmem:[%s2375_s7 + $0x268] sm:$0xff] }
  0x2a   : > { %208 = vst [vmem:[%s2380_s8 + $0x98] sm:$0xff] %v207_v19  ;;  %v249_v40 = vld [vmem:[%s2375_s7 + $0x280] sm:$0xff]  ;;  %v251_v41 = vld [vmem:[%s2375_s7 + $0x288] sm:$0xff] }
  0x2b   : > { %210 = vst [vmem:[%s2380_s8 + $0xa0] sm:$0xff] %v209_v20  ;;  %v253_v42 = vld [vmem:[%s2375_s7 + $0x2a0] sm:$0xff]  ;;  %v255_v43 = vld [vmem:[%s2375_s7 + $0x2a8] sm:$0xff] }
  0x2c   : > { %212 = vst [vmem:[%s2380_s8 + $0xa8] sm:$0xff] %v211_v21  ;;  %v257_v44 = vld [vmem:[%s2375_s7 + $0x2c0] sm:$0xff]  ;;  %v259_v45 = vld [vmem:[%s2375_s7 + $0x2c8] sm:$0xff] }
  0x2d   : > { %214 = vst [vmem:[%s2380_s8 + $0xb0] sm:$0xff] %v213_v22  ;;  %v261_v46 = vld [vmem:[%s2375_s7 + $0x2e0] sm:$0xff]  ;;  %v263_v47 = vld [vmem:[%s2375_s7 + $0x2e8] sm:$0xff] }
  0x2e   : > { %216 = vst [vmem:[%s2380_s8 + $0xb8] sm:$0xff] %v215_v23  ;;  %v265_v48 = vld [vmem:[%s2375_s7 + $0x300] sm:$0xff]  ;;  %v267_v49 = vld [vmem:[%s2375_s7 + $0x308] sm:$0xff] }
  0x2f   : > { %218 = vst [vmem:[%s2380_s8 + $0xc0] sm:$0xff] %v217_v24  ;;  %v269_v50 = vld [vmem:[%s2375_s7 + $0x320] sm:$0xff]  ;;  %v271_v51 = vld [vmem:[%s2375_s7 + $0x328] sm:$0xff] }
  0x30   : > { %220 = vst [vmem:[%s2380_s8 + $0xc8] sm:$0xff] %v219_v25  ;;  %v273_v52 = vld [vmem:[%s2375_s7 + $0x340] sm:$0xff]  ;;  %v275_v53 = vld [vmem:[%s2375_s7 + $0x348] sm:$0xff] }
  0x31   : > { %222 = vst [vmem:[%s2380_s8 + $0xd0] sm:$0xff] %v221_v26  ;;  %v277_v54 = vld [vmem:[%s2375_s7 + $0x360] sm:$0xff]  ;;  %v279_v55 = vld [vmem:[%s2375_s7 + $0x368] sm:$0xff] }
  0x32   : > { %224 = vst [vmem:[%s2380_s8 + $0xd8] sm:$0xff] %v223_v27  ;;  %v281_v56 = vld [vmem:[%s2375_s7 + $0x380] sm:$0xff]  ;;  %v283_v57 = vld [vmem:[%s2375_s7 + $0x388] sm:$0xff] }
  0x33   : > { %226 = vst [vmem:[%s2380_s8 + $0xe0] sm:$0xff] %v225_v28  ;;  %v285_v58 = vld [vmem:[%s2375_s7 + $0x3a0] sm:$0xff]  ;;  %v287_v59 = vld [vmem:[%s2375_s7 + $0x3a8] sm:$0xff] }
  0x34   : > { %228 = vst [vmem:[%s2380_s8 + $0xe8] sm:$0xff] %v227_v29  ;;  %v289_v60 = vld [vmem:[%s2375_s7 + $0x3c0] sm:$0xff]  ;;  %v291_v61 = vld [vmem:[%s2375_s7 + $0x3c8] sm:$0xff] }
  0x35   : > { %230 = vst [vmem:[%s2380_s8 + $0xf0] sm:$0xff] %v229_v30  ;;  %v293_v62 = vld [vmem:[%s2375_s7 + $0x3e0] sm:$0xff]  ;;  %v295_v63 = vld [vmem:[%s2375_s7 + $0x3e8] sm:$0xff] }
  0x36   : > { %232 = vst [vmem:[%s2380_s8 + $0xf8] sm:$0xff] %v231_v31 }
  0x37   : > { %234 = vst [vmem:[%s2380_s8 + $0x100] sm:$0xff] %v233_v32 }
  0x38   : > { %236 = vst [vmem:[%s2380_s8 + $0x108] sm:$0xff] %v235_v33 }
  0x39   : > { %238 = vst [vmem:[%s2380_s8 + $0x110] sm:$0xff] %v237_v34 }
  0x3a   : > { %240 = vst [vmem:[%s2380_s8 + $0x118] sm:$0xff] %v239_v35 }
  0x3b   : > { %242 = vst [vmem:[%s2380_s8 + $0x120] sm:$0xff] %v241_v36 }
  0x3c   : > { %244 = vst [vmem:[%s2380_s8 + $0x128] sm:$0xff] %v243_v37 }
  0x3d   : > { %246 = vst [vmem:[%s2380_s8 + $0x130] sm:$0xff] %v245_v38 }
  0x3e   : > { %248 = vst [vmem:[%s2380_s8 + $0x138] sm:$0xff] %v247_v39 }
  0x3f   : > { %250 = vst [vmem:[%s2380_s8 + $0x140] sm:$0xff] %v249_v40 }
  0x40   : > { %252 = vst [vmem:[%s2380_s8 + $0x148] sm:$0xff] %v251_v41 }
  0x41   : > { %254 = vst [vmem:[%s2380_s8 + $0x150] sm:$0xff] %v253_v42 }
  0x42   : > { %256 = vst [vmem:[%s2380_s8 + $0x158] sm:$0xff] %v255_v43 }
  0x43   : > { %258 = vst [vmem:[%s2380_s8 + $0x160] sm:$0xff] %v257_v44 }
  0x44   : > { %260 = vst [vmem:[%s2380_s8 + $0x168] sm:$0xff] %v259_v45 }
  0x45   : > { %262 = vst [vmem:[%s2380_s8 + $0x170] sm:$0xff] %v261_v46 }
  0x46   : > { %264 = vst [vmem:[%s2380_s8 + $0x178] sm:$0xff] %v263_v47 }
  0x47   : > { %266 = vst [vmem:[%s2380_s8 + $0x180] sm:$0xff] %v265_v48 }
  0x48   : > { %268 = vst [vmem:[%s2380_s8 + $0x188] sm:$0xff] %v267_v49 }
  0x49   : > { %270 = vst [vmem:[%s2380_s8 + $0x190] sm:$0xff] %v269_v50 }
  0x4a   : > { %272 = vst [vmem:[%s2380_s8 + $0x198] sm:$0xff] %v271_v51 }
  0x4b   : > { %274 = vst [vmem:[%s2380_s8 + $0x1a0] sm:$0xff] %v273_v52 }
  0x4c   : > { %276 = vst [vmem:[%s2380_s8 + $0x1a8] sm:$0xff] %v275_v53 }
  0x4d   : > { %278 = vst [vmem:[%s2380_s8 + $0x1b0] sm:$0xff] %v277_v54 }
  0x4e   : > { %280 = vst [vmem:[%s2380_s8 + $0x1b8] sm:$0xff] %v279_v55 }
  0x4f   : > { %282 = vst [vmem:[%s2380_s8 + $0x1c0] sm:$0xff] %v281_v56 }
  0x50   : > { %284 = vst [vmem:[%s2380_s8 + $0x1c8] sm:$0xff] %v283_v57 }
  0x51   : > { %286 = vst [vmem:[%s2380_s8 + $0x1d0] sm:$0xff] %v285_v58 }
  0x52   : > { %288 = vst [vmem:[%s2380_s8 + $0x1d8] sm:$0xff] %v287_v59 }
  0x53   : > { %290 = vst [vmem:[%s2380_s8 + $0x1e0] sm:$0xff] %v289_v60 }
  0x54   : > { %292 = vst [vmem:[%s2380_s8 + $0x1e8] sm:$0xff] %v291_v61 }
  0x55   : > { %294 = vst [vmem:[%s2380_s8 + $0x1f0] sm:$0xff] %v293_v62 }
  0x56   : > { %296 = vst [vmem:[%s2380_s8 + $0x1f8] sm:$0xff] %v295_v63 }
  0x57 PF: > { %p1689_p7 = scmp.ge.s32.totalorder %s2292_s18, 1  ;;  %p310_p8 = scmp.lt.s32.totalorder %s2292_s18, 9 }
  0x59   : > { %p311_p9 = pnand %p1689_p7, %p310_p8 }
  0x5a   : > { %s317_s9 = sand.u32 (!%p311_p9), 1, %s2268_s12   ;;  %s1691_s10 = sshll.u32 (!%p311_p9), %s2276_s14, 6 }
  0x5b   : > { %314 = sbr.rel (%p311_p9) target bundleno = 593 (0x251), region = 51  ;;  %s1690_s11 = sshll.u32 (!%p311_p9), %s317_s9, 9 }
  0x5c   : > { %p348_p10 = scmp.lt.s32.totalorder (!%p311_p9), %s1691_s10, 127  ;;  %s1693_s21 = sshll.u32 (!%p311_p9), %s2280_s15, 5 }
  0x5d   : > { %p354_p11 = scmp.lt.s32.totalorder (!%p311_p9), %s1693_s21, 127  ;;  %s2522_s12 = scalar_lea.vmem (!%p311_p9), [#allocation3], %s1690_s11 }
  0x5e   : > { %p1695_p12 = scmp.ne.s32.totalorder (!%p311_p9), %s2276_s14, 0 }
  0x60   : > { %s2793_s10 = smov (!%p348_p10, %s1691_s10), 127  ;;  %s2795_s21 = smov (!%p354_p11, %s1693_s21), 127 }
  0x61   : > { %s1692_s22 = sshll.u32 %s2793_s10, 2  ;;  %s1694_s27 = sshll.u32 %s2795_s21, 3 }
  0x62   : > { %s2515_s26 = scalar_lea.vmem %s2777_s1, %s1692_s22  ;;  %s2520_s30 = scalar_lea.vmem %s2779_s3, %s1694_s27 }
  0x63   : > { %362 = sbr.rel (%p1695_p12) target bundleno = 137 (0x89), region = 59 }
  0x68   : > { %v2294_v0 = vmov 0.0  }
  0x69   : > { %363 = vst [vmem:[#allocation2 + $0xb0] sm:$0xff] %v2294_v0 }
  0x6a   : > { %364 = vst [vmem:[#allocation2] sm:$0xff] %v2294_v0 }
  0x6b   : > { %365 = vst [vmem:[#allocation2 + $0xd8] sm:$0xff] %v2294_v0 }
  0x6c   : > { %366 = vst [vmem:[#allocation2 + $0x18] sm:$0xff] %v2294_v0 }
  0x6d   : > { %367 = vst [vmem:[#allocation2 + $0x50] sm:$0xff] %v2294_v0 }
  0x6e   : > { %368 = vst [vmem:[#allocation2 + $0x68] sm:$0xff] %v2294_v0 }
  0x6f   : > { %369 = vst [vmem:[#allocation2 + $0x30] sm:$0xff] %v2294_v0 }
  0x70   : > { %370 = vst [vmem:[#allocation2 + $0x48] sm:$0xff] %v2294_v0 }
  0x71   : > { %371 = vst [vmem:[#allocation2 + $0x80] sm:$0xff] %v2294_v0 }
  0x72   : > { %372 = vst [vmem:[#allocation2 + $0x88] sm:$0xff] %v2294_v0 }
  0x73   : > { %373 = vst [vmem:[#allocation2 + $0xe8] sm:$0xff] %v2294_v0 }
  0x74   : > { %374 = vst [vmem:[#allocation2 + $0xb8] sm:$0xff] %v2294_v0 }
  0x75   : > { %375 = vst [vmem:[#allocation2 + $0x60] sm:$0xff] %v2294_v0 }
  0x76   : > { %376 = vst [vmem:[#allocation2 + $0xf0] sm:$0xff] %v2294_v0 }
  0x77   : > { %377 = vst [vmem:[#allocation2 + $0x8] sm:$0xff] %v2294_v0 }
  0x78   : > { %378 = vst [vmem:[#allocation2 + $0x78] sm:$0xff] %v2294_v0 }
  0x79   : > { %379 = vst [vmem:[#allocation2 + $0x38] sm:$0xff] %v2294_v0 }
  0x7a   : > { %380 = vst [vmem:[#allocation2 + $0x58] sm:$0xff] %v2294_v0 }
  0x7b   : > { %381 = vst [vmem:[#allocation2 + $0x40] sm:$0xff] %v2294_v0 }
  0x7c   : > { %382 = vst [vmem:[#allocation2 + $0xc8] sm:$0xff] %v2294_v0 }
  0x7d   : > { %383 = vst [vmem:[#allocation2 + $0xe0] sm:$0xff] %v2294_v0 }
  0x7e   : > { %384 = vst [vmem:[#allocation2 + $0x90] sm:$0xff] %v2294_v0 }
  0x7f   : > { %385 = vst [vmem:[#allocation2 + $0x70] sm:$0xff] %v2294_v0 }
  0x80   : > { %386 = vst [vmem:[#allocation2 + $0xc0] sm:$0xff] %v2294_v0 }
  0x81   : > { %387 = vst [vmem:[#allocation2 + $0xa8] sm:$0xff] %v2294_v0 }
  0x82   : > { %388 = vst [vmem:[#allocation2 + $0xd0] sm:$0xff] %v2294_v0 }
  0x83   : > { %389 = vst [vmem:[#allocation2 + $0x10] sm:$0xff] %v2294_v0 }
  0x84   : > { %390 = vst [vmem:[#allocation2 + $0x28] sm:$0xff] %v2294_v0 }
  0x85   : > { %391 = vst [vmem:[#allocation2 + $0xa0] sm:$0xff] %v2294_v0 }
  0x86   : > { %392 = vst [vmem:[#allocation2 + $0xf8] sm:$0xff] %v2294_v0 }
  0x87   : > { %393 = vst [vmem:[#allocation2 + $0x20] sm:$0xff] %v2294_v0 }
  0x88   : > { %394 = vst [vmem:[#allocation2 + $0x98] sm:$0xff] %v2294_v0 }
  0x89 PF: > { %v2155_v1 = vld [vmem:[%s2515_s26 + $0x38] sm:$0xff]  ;;  %v2154_v5 = vld [vmem:[%s2515_s26 + $0x30] sm:$0xff]  ;;  %v2153_v9 = vld [vmem:[%s2515_s26 + $0x28] sm:$0xff]  ;;  %p2080_p13 = scmp.ne.s32.totalorder %s2276_s14, 1 }
  0x8a   : > { %v2163_v2 = vld [vmem:[%s2515_s26 + $0x78] sm:$0xff]  ;;  %1067 = vmatpush.bf16.msra.mxu0 %v2155_v1  ;;  %v2162_v6 = vld [vmem:[%s2515_s26 + $0x70] sm:$0xff]  ;;  %v2161_v10 = vld [vmem:[%s2515_s26 + $0x68] sm:$0xff] }
  0x8b   : > { %v2171_v3 = vld [vmem:[%s2515_s26 + $0xb8] sm:$0xff]  ;;  %1156 = vmatpush.bf16.msra.mxu1 %v2163_v2  ;;  %v2170_v7 = vld [vmem:[%s2515_s26 + $0xb0] sm:$0xff]  ;;  %v2169_v11 = vld [vmem:[%s2515_s26 + $0xa8] sm:$0xff] }
  0x8c   : > { %v2179_v4 = vld [vmem:[%s2515_s26 + $0xf8] sm:$0xff]  ;;  %1245 = vmatpush.bf16.msra.mxu2 %v2171_v3  ;;  %v2178_v8 = vld [vmem:[%s2515_s26 + $0xf0] sm:$0xff]  ;;  %v2177_v12 = vld [vmem:[%s2515_s26 + $0xe8] sm:$0xff] }
  0x8d   : > { %1334 = vmatpush.bf16.msra.mxu3 %v2179_v4  ;;  %v2152_v13 = vld [vmem:[%s2515_s26 + $0x20] sm:$0xff]  ;;  %v2151_v17 = vld [vmem:[%s2515_s26 + $0x18] sm:$0xff]  ;;  %v2150_v21 = vld [vmem:[%s2515_s26 + $0x10] sm:$0xff] }
  0x8e   : > { %1068 = vmatpush.bf16.msra.mxu0 %v2154_v5  ;;  %v2160_v14 = vld [vmem:[%s2515_s26 + $0x60] sm:$0xff]  ;;  %v2159_v18 = vld [vmem:[%s2515_s26 + $0x58] sm:$0xff]  ;;  %v2158_v22 = vld [vmem:[%s2515_s26 + $0x50] sm:$0xff] }
  0x8f   : > { %1157 = vmatpush.bf16.msra.mxu1 %v2162_v6  ;;  %v2168_v15 = vld [vmem:[%s2515_s26 + $0xa0] sm:$0xff]  ;;  %v2167_v19 = vld [vmem:[%s2515_s26 + $0x98] sm:$0xff]  ;;  %v2166_v23 = vld [vmem:[%s2515_s26 + $0x90] sm:$0xff] }
  0x90   : > { %1246 = vmatpush.bf16.msra.mxu2 %v2170_v7  ;;  %v2176_v16 = vld [vmem:[%s2515_s26 + $0xe0] sm:$0xff]  ;;  %v2175_v20 = vld [vmem:[%s2515_s26 + $0xd8] sm:$0xff]  ;;  %v2174_v24 = vld [vmem:[%s2515_s26 + $0xd0] sm:$0xff] }
  0x91   : > { %1335 = vmatpush.bf16.msra.mxu3 %v2178_v8  ;;  %v2149_v25 = vld [vmem:[%s2515_s26 + $0x8] sm:$0xff]  ;;  %v2148_v29 = vld [vmem:[%s2515_s26] sm:$0xff]  ;;  %v2086_v34 = vld [vmem:[%s2522_s12 + $0xc] sm:$0xf0] }
  0x92   : > { %1069 = vmatpush.bf16.msra.mxu0 %v2153_v9  ;;  %v2157_v26 = vld [vmem:[%s2515_s26 + $0x48] sm:$0xff]  ;;  %v2156_v30 = vld [vmem:[%s2515_s26 + $0x40] sm:$0xff]  ;;  %v1700_v36 = vld [vmem:[%s2522_s12 + $0x10] sm:$0xf0] }
  0x93   : > { %1158 = vmatpush.bf16.msra.mxu1 %v2161_v10  ;;  %v2165_v27 = vld [vmem:[%s2515_s26 + $0x88] sm:$0xff]  ;;  %v2164_v31 = vld [vmem:[%s2515_s26 + $0x80] sm:$0xff]  ;;  %v2087_v38 = vld [vmem:[%s2522_s12 + $0x14] sm:$0xf0] }
  0x94   : > { %1247 = vmatpush.bf16.msra.mxu2 %v2169_v11  ;;  %v2173_v28 = vld [vmem:[%s2515_s26 + $0xc8] sm:$0xff]  ;;  %v2172_v32 = vld [vmem:[%s2515_s26 + $0xc0] sm:$0xff]  ;;  %v1708_v40 = vld [vmem:[%s2522_s12 + $0x18] sm:$0xf0] }
  0x95   : > { %1336 = vmatpush.bf16.msra.mxu3 %v2177_v12  ;;  %v1698_v33 = vld [vmem:[%s2522_s12] sm:$0xf]  ;;  %v2084_v35 = vld [vmem:[%s2522_s12 + $0x4] sm:$0xf]  ;;  %v1706_v37 = vld [vmem:[%s2522_s12 + $0x8] sm:$0xf] }
  0x96   : > { %1070 = vmatpush.bf16.msra.mxu0 %v2152_v13  ;;  %v2085_v39 = vld [vmem:[%s2522_s12 + $0xc] sm:$0xf]  ;;  %v1699_v41 = vor.u32 %v2086_v34, %v1698_v33  ;;  %v1703_v42 = vor.u32 %v2084_v35, %v1700_v36  ;;  %v1707_v43 = vor.u32 %v2087_v38, %v1706_v37  ;;  %v1714_v45 = vld [vmem:[%s2522_s12 + $0x20] sm:$0xf]  ;;  %v2090_v46 = vld [vmem:[%s2522_s12 + $0x2c] sm:$0xf0] }
  0x97   : > { %1159 = vmatpush.bf16.msra.mxu1 %v2160_v14  ;;  %v1711_v44 = vor.u32 %v2085_v39, %v1708_v40  ;;  %v2088_v47 = vld [vmem:[%s2522_s12 + $0x24] sm:$0xf]  ;;  %v1716_v48 = vld [vmem:[%s2522_s12 + $0x30] sm:$0xf0]  ;;  %v1722_v49 = vld [vmem:[%s2522_s12 + $0x28] sm:$0xf]  ;;  %v1715_v53 = vor.u32 %v2090_v46, %v1714_v45 }
  0x98   : > { %1248 = vmatpush.bf16.msra.mxu2 %v2168_v15  ;;  %v2091_v50 = vld [vmem:[%s2522_s12 + $0x34] sm:$0xf0]  ;;  %v2089_v51 = vld [vmem:[%s2522_s12 + $0x2c] sm:$0xf]  ;;  %v1724_v52 = vld [vmem:[%s2522_s12 + $0x38] sm:$0xf0]  ;;  %v1719_v54 = vor.u32 %v2088_v47, %v1716_v48 }
  0x99   : > { %1337 = vmatpush.bf16.msra.mxu3 %v2176_v16  ;;  %v1723_v55 = vor.u32 %v2091_v50, %v1722_v49  ;;  %v1727_v56 = vor.u32 %v2089_v51, %v1724_v52  ;;  %v1730_v57 = vld [vmem:[%s2522_s12 + $0x40] sm:$0xf]  ;;  %v2094_v58 = vld [vmem:[%s2522_s12 + $0x4c] sm:$0xf0]  ;;  %v2092_v59 = vld [vmem:[%s2522_s12 + $0x44] sm:$0xf] }
  0x9a   : > { %1071 = vmatpush.bf16.msra.mxu0 %v2151_v17  ;;  %v1732_v60 = vld [vmem:[%s2522_s12 + $0x50] sm:$0xf0]  ;;  %v1738_v61 = vld [vmem:[%s2522_s12 + $0x48] sm:$0xf]  ;;  %v2095_v62 = vld [vmem:[%s2522_s12 + $0x54] sm:$0xf0]  ;;  %v1731_v1 = vor.u32 %v2094_v58, %v1730_v57 }
  0x9b   : > { %1160 = vmatpush.bf16.msra.mxu1 %v2159_v18  ;;  %v2093_v63 = vld [vmem:[%s2522_s12 + $0x4c] sm:$0xf]  ;;  %v1740_v0 = vld [vmem:[%s2522_s12 + $0x58] sm:$0xf0]  ;;  %v1735_v2 = vor.u32 %v2092_v59, %v1732_v60  ;;  %v1739_v3 = vor.u32 %v2095_v62, %v1738_v61  ;;  %v1746_v5 = vld [vmem:[%s2522_s12 + $0x60] sm:$0xf] }
  0x9c   : > { %1249 = vmatpush.bf16.msra.mxu2 %v2167_v19  ;;  %v1743_v4 = vor.u32 %v2093_v63, %v1740_v0  ;;  %v2098_v6 = vld [vmem:[%s2522_s12 + $0x6c] sm:$0xf0]  ;;  %v2096_v7 = vld [vmem:[%s2522_s12 + $0x64] sm:$0xf]  ;;  %v1748_v8 = vld [vmem:[%s2522_s12 + $0x70] sm:$0xf0] }
  0x9d   : > { %1338 = vmatpush.bf16.msra.mxu3 %v2175_v20  ;;  %v1754_v9 = vld [vmem:[%s2522_s12 + $0x68] sm:$0xf]  ;;  %v2099_v10 = vld [vmem:[%s2522_s12 + $0x74] sm:$0xf0]  ;;  %v2097_v11 = vld [vmem:[%s2522_s12 + $0x6c] sm:$0xf]  ;;  %v1747_v13 = vor.u32 %v2098_v6, %v1746_v5  ;;  %v1751_v14 = vor.u32 %v2096_v7, %v1748_v8 }
  0x9e   : > { %1072 = vmatpush.bf16.msra.mxu0 %v2150_v21  ;;  %v1756_v12 = vld [vmem:[%s2522_s12 + $0x78] sm:$0xf0]  ;;  %v1755_v15 = vor.u32 %v2099_v10, %v1754_v9  ;;  %v1762_v17 = vld [vmem:[%s2522_s12 + $0x80] sm:$0xf]  ;;  %v2102_v18 = vld [vmem:[%s2522_s12 + $0x8c] sm:$0xf0] }
  0x9f   : > { %1161 = vmatpush.bf16.msra.mxu1 %v2158_v22  ;;  %v1759_v16 = vor.u32 %v2097_v11, %v1756_v12  ;;  %v2100_v19 = vld [vmem:[%s2522_s12 + $0x84] sm:$0xf]  ;;  %v1764_v20 = vld [vmem:[%s2522_s12 + $0x90] sm:$0xf0]  ;;  %v1770_v21 = vld [vmem:[%s2522_s12 + $0x88] sm:$0xf] }
  0xa0   : > { %1250 = vmatpush.bf16.msra.mxu2 %v2166_v23  ;;  %v2103_v22 = vld [vmem:[%s2522_s12 + $0x94] sm:$0xf0]  ;;  %v2101_v23 = vld [vmem:[%s2522_s12 + $0x8c] sm:$0xf]  ;;  %v1786_v33 = vld [vmem:[%s2522_s12 + $0xa8] sm:$0xf] }
  0xa1   : > { %1339 = vmatpush.bf16.msra.mxu3 %v2174_v24  ;;  %v1772_v24 = vld [vmem:[%s2522_s12 + $0x98] sm:$0xf0]  ;;  %v2107_v34 = vld [vmem:[%s2522_s12 + $0xb4] sm:$0xf0]  ;;  %v2105_v35 = vld [vmem:[%s2522_s12 + $0xac] sm:$0xf] }
  0xa2   : > { %1073 = vmatpush.bf16.msra.mxu0 %v2149_v25  ;;  %v1763_v25 = vor.u32 %v2102_v18, %v1762_v17  ;;  %v1788_v36 = vld [vmem:[%s2522_s12 + $0xb8] sm:$0xf0]  ;;  %v1787_v39 = vor.u32 %v2107_v34, %v1786_v33  ;;  %v1802_v45 = vld [vmem:[%s2522_s12 + $0xc8] sm:$0xf]  ;;  %v2111_v46 = vld [vmem:[%s2522_s12 + $0xd4] sm:$0xf0] }
  0xa3   : > { %1162 = vmatpush.bf16.msra.mxu1 %v2157_v26  ;;  %v1767_v26 = vor.u32 %v2100_v19, %v1764_v20  ;;  %v1791_v40 = vor.u32 %v2105_v35, %v1788_v36  ;;  %v2109_v47 = vld [vmem:[%s2522_s12 + $0xcc] sm:$0xf]  ;;  %v1804_v48 = vld [vmem:[%s2522_s12 + $0xd8] sm:$0xf0]  ;;  %v1803_v51 = vor.u32 %v2111_v46, %v1802_v45  ;;  %v1818_v57 = vld [vmem:[%s2522_s12 + $0xe8] sm:$0xf] }
  0xa4   : > { %1251 = vmatpush.bf16.msra.mxu2 %v2165_v27  ;;  %v1771_v27 = vor.u32 %v2103_v22, %v1770_v21  ;;  %v1807_v52 = vor.u32 %v2109_v47, %v1804_v48  ;;  %v2115_v58 = vld [vmem:[%s2522_s12 + $0xf4] sm:$0xf0]  ;;  %v2113_v59 = vld [vmem:[%s2522_s12 + $0xec] sm:$0xf]  ;;  %v1820_v60 = vld [vmem:[%s2522_s12 + $0xf8] sm:$0xf0] }
  0xa5   : > { %1340 = vmatpush.bf16.msra.mxu3 %v2173_v28  ;;  %v1775_v28 = vor.u32 %v2101_v23, %v1772_v24  ;;  %v1819_v63 = vor.u32 %v2115_v58, %v1818_v57  ;;  %v1823_v0 = vor.u32 %v2113_v59, %v1820_v60  ;;  %v1834_v5 = vld [vmem:[%s2522_s12 + $0x108] sm:$0xf]  ;;  %v2119_v6 = vld [vmem:[%s2522_s12 + $0x114] sm:$0xf0]  ;;  %v2117_v7 = vld [vmem:[%s2522_s12 + $0x10c] sm:$0xf] }
  0xa6   : > { %1074 = vmatpush.bf16.msra.mxu0 %v2148_v29  ;;  %v1778_v29 = vld [vmem:[%s2522_s12 + $0xa0] sm:$0xf]  ;;  %v1836_v8 = vld [vmem:[%s2522_s12 + $0x118] sm:$0xf0]  ;;  %v395_v21 = vld [vmem:[#allocation2 + $0xb0] sm:$0xff] }
  0xa7   : > { %1163 = vmatpush.bf16.msra.mxu1 %v2156_v30  ;;  %v2106_v30 = vld [vmem:[%s2522_s12 + $0xac] sm:$0xf0]  ;;  %v1842_v23 = vld [vmem:[%s2522_s12 + $0x120] sm:$0xf]  ;;  %v1860_v57 = vld [vmem:[%s2522_s12 + $0x150] sm:$0xf0] }
  0xa8   : > { %1252 = vmatpush.bf16.msra.mxu2 %v2164_v31  ;;  %v2104_v31 = vld [vmem:[%s2522_s12 + $0xa4] sm:$0xf]  ;;  %v1779_v37 = vor.u32 %v2106_v30, %v1778_v29  ;;  %v2122_v24 = vld [vmem:[%s2522_s12 + $0x12c] sm:$0xf0]  ;;  %v2123_v29 = vld [vmem:[%s2522_s12 + $0x134] sm:$0xf0] }
  0xa9   : > { %1341 = vmatpush.bf16.msra.mxu3 %v2172_v32  ;;  %1075 = vmatmul.bf16.vlgmr.msra.gmra.mxu0 %v1699_v41  ;;  %v1780_v32 = vld [vmem:[%s2522_s12 + $0xb0] sm:$0xf0]  ;;  %v1794_v41 = vld [vmem:[%s2522_s12 + $0xc0] sm:$0xf]  ;;  %v2121_v30 = vld [vmem:[%s2522_s12 + $0x12c] sm:$0xf]  ;;  %v1843_v35 = vor.u32 %v2122_v24, %v1842_v23 }
  0xaa   : > { %1164 = vmatmul.bf16.vlgmr.msra.gmra.mxu1 %v1703_v42  ;;  %v1783_v38 = vor.u32 %v2104_v31, %v1780_v32  ;;  %v2110_v42 = vld [vmem:[%s2522_s12 + $0xcc] sm:$0xf0]  ;;  %v1852_v31 = vld [vmem:[%s2522_s12 + $0x138] sm:$0xf0]  ;;  %v1866_v58 = vld [vmem:[%s2522_s12 + $0x148] sm:$0xf] }
  0xab   : > { %1253 = vmatmul.bf16.vlgmr.msra.gmra.mxu2 %v1707_v43  ;;  %v2108_v43 = vld [vmem:[%s2522_s12 + $0xc4] sm:$0xf]  ;;  %v1795_v49 = vor.u32 %v2110_v42, %v1794_v41  ;;  %v1855_v41 = vor.u32 %v2121_v30, %v1852_v31  ;;  %v2127_v59 = vld [vmem:[%s2522_s12 + $0x154] sm:$0xf0]  ;;  %v2125_v60 = vld [vmem:[%s2522_s12 + $0x14c] sm:$0xf] }
  0xac   : > { %1342 = vmatmul.bf16.vlgmr.msra.gmra.mxu3 %v1711_v44  ;;  %v1796_v44 = vld [vmem:[%s2522_s12 + $0xd0] sm:$0xf0]  ;;  %v396_v42 = vld [vmem:[#allocation2] sm:$0xff]  ;;  %v1882_v24 = vld [vmem:[%s2522_s12 + $0x168] sm:$0xf] }
  0xad   : > { %v1799_v50 = vor.u32 %v2108_v43, %v1796_v44  ;;  %v1876_v23 = vld [vmem:[%s2522_s12 + $0x170] sm:$0xf0] }
  0xb9   : > { %1080 = vmatmul.bf16.gmra.mxu0 %v1715_v53  ;;  %v1810_v53 = vld [vmem:[%s2522_s12 + $0xe0] sm:$0xf] }
  0xba   : > { %1169 = vmatmul.bf16.gmra.mxu1 %v1719_v54  ;;  %v2114_v54 = vld [vmem:[%s2522_s12 + $0xec] sm:$0xf0] }
  0xbb   : > { %1258 = vmatmul.bf16.gmra.mxu2 %v1723_v55  ;;  %v2112_v55 = vld [vmem:[%s2522_s12 + $0xe4] sm:$0xf]  ;;  %v1811_v61 = vor.u32 %v2114_v54, %v1810_v53  ;;  %v1858_v53 = vld [vmem:[%s2522_s12 + $0x140] sm:$0xf]  ;;  %v2126_v54 = vld [vmem:[%s2522_s12 + $0x14c] sm:$0xf0] }
  0xbc   : > { %1347 = vmatmul.bf16.gmra.mxu3 %v1727_v56  ;;  %v1812_v56 = vld [vmem:[%s2522_s12 + $0xf0] sm:$0xf0] }
  0xbd   : > { %v1815_v62 = vor.u32 %v2112_v55, %v1812_v56  ;;  %v2124_v56 = vld [vmem:[%s2522_s12 + $0x144] sm:$0xf] }
  0xc9   : > { %1085 = vmatmul.bf16.gmra.mxu0 %v1731_v1  ;;  %v1826_v1 = vld [vmem:[%s2522_s12 + $0x100] sm:$0xf] }
  0xca   : > { %1174 = vmatmul.bf16.gmra.mxu1 %v1735_v2  ;;  %v2118_v2 = vld [vmem:[%s2522_s12 + $0x10c] sm:$0xf0] }
  0xcb   : > { %1263 = vmatmul.bf16.gmra.mxu2 %v1739_v3  ;;  %v2116_v3 = vld [vmem:[%s2522_s12 + $0x104] sm:$0xf]  ;;  %v1827_v9 = vor.u32 %v2118_v2, %v1826_v1  ;;  %v1859_v1 = vor.u32 %v2126_v54, %v1858_v53  ;;  %v1863_v2 = vor.u32 %v2124_v56, %v1860_v57  ;;  %v1892_v53 = vld [vmem:[%s2522_s12 + $0x190] sm:$0xf0]  ;;  %v1898_v54 = vld [vmem:[%s2522_s12 + $0x188] sm:$0xf] }
  0xcc   : > { %1352 = vmatmul.bf16.gmra.mxu3 %v1743_v4  ;;  %v1828_v4 = vld [vmem:[%s2522_s12 + $0x110] sm:$0xf0]  ;;  %v2133_v56 = vld [vmem:[%s2522_s12 + $0x18c] sm:$0xf]  ;;  %v1900_v57 = vld [vmem:[%s2522_s12 + $0x198] sm:$0xf0] }
  0xcd   : > { %v1831_v10 = vor.u32 %v2116_v3, %v1828_v4 }
  0xd9   : > { %1090 = vmatmul.bf16.gmra.mxu0 %v1747_v13  ;;  %v1835_v13 = vor.u32 %v2119_v6, %v1834_v5  ;;  %v1867_v6 = vor.u32 %v2127_v59, %v1866_v58 }
  0xda   : > { %1179 = vmatmul.bf16.gmra.mxu1 %v1751_v14  ;;  %v1839_v14 = vor.u32 %v2117_v7, %v1836_v8  ;;  %v398_v8 = vld [vmem:[#allocation2 + $0x18] sm:$0xff] }
  0xdb   : > { %1268 = vmatmul.bf16.gmra.mxu2 %v1755_v15 }
  0xdc   : > { %1357 = vmatmul.bf16.gmra.mxu3 %v1759_v16 }
  0xe9   : > { %1095 = vmatmul.bf16.gmra.mxu0 %v1763_v25 }
  0xea   : > { %1184 = vmatmul.bf16.gmra.mxu1 %v1767_v26  ;;  %v2120_v26 = vld [vmem:[%s2522_s12 + $0x124] sm:$0xf] }
  0xeb   : > { %1273 = vmatmul.bf16.gmra.mxu2 %v1771_v27  ;;  %v1844_v27 = vld [vmem:[%s2522_s12 + $0x130] sm:$0xf0] }
  0xec   : > { %1362 = vmatmul.bf16.gmra.mxu3 %v1775_v28  ;;  %v1850_v28 = vld [vmem:[%s2522_s12 + $0x128] sm:$0xf]  ;;  %v1847_v36 = vor.u32 %v2120_v26, %v1844_v27  ;;  %v2129_v26 = vld [vmem:[%s2522_s12 + $0x16c] sm:$0xf]  ;;  %v1884_v27 = vld [vmem:[%s2522_s12 + $0x178] sm:$0xf0] }
  0xf9   : > { %1100 = vmatmul.bf16.gmra.mxu0 %v1779_v37 }
  0xfa   : > { %1189 = vmatmul.bf16.gmra.mxu1 %v1783_v38 }
  0xfb   : > { %1278 = vmatmul.bf16.gmra.mxu2 %v1787_v39 }
  0xfc   : > { %1367 = vmatmul.bf16.gmra.mxu3 %v1791_v40  ;;  %v1851_v40 = vor.u32 %v2123_v29, %v1850_v28 }
 0x109   : > { %1105 = vmatmul.bf16.gmra.mxu0 %v1795_v49 }
 0x10a   : > { %1194 = vmatmul.bf16.gmra.mxu1 %v1799_v50 }
 0x10b   : > { %1283 = vmatmul.bf16.gmra.mxu2 %v1803_v51  ;;  %v397_v51 = vld [vmem:[#allocation2 + $0xd8] sm:$0xff] }
 0x10c   : > { %1372 = vmatmul.bf16.gmra.mxu3 %v1807_v52 }
 0x119   : > { %1110 = vmatmul.bf16.gmra.mxu0 %v1811_v61  ;;  %v1868_v61 = vld [vmem:[%s2522_s12 + $0x158] sm:$0xf0] }
 0x11a   : > { %1199 = vmatmul.bf16.gmra.mxu1 %v1815_v62  ;;  %v1871_v7 = vor.u32 %v2125_v60, %v1868_v61 }
 0x11b   : > { %1288 = vmatmul.bf16.gmra.mxu2 %v1819_v63 }
 0x11c   : > { %1377 = vmatmul.bf16.gmra.mxu3 %v1823_v0 }
 0x126   : > { %v1076_v11 = vpop.f32.mrf.mxu0 }
 0x127   : > { %v1165_v12 = vpop.f32.mrf.mxu1 }
 0x128   : > { %v1166_v15 = vadd.f32 %v1165_v12, %v1076_v11 }
 0x129   : > { %1115 = vmatmul.bf16.gmra.mxu0 %v1827_v9 }
 0x12a   : > { %1204 = vmatmul.bf16.gmra.mxu1 %v1831_v10 }
 0x12b   : > { %1293 = vmatmul.bf16.gmra.mxu2 %v1835_v13 }
 0x12c   : > { %1382 = vmatmul.bf16.gmra.mxu3 %v1839_v14 }
 0x12e   : > { %v1254_v16 = vpop.f32.mrf.mxu2  ;;  %v1078_v19 = vpop.f32.mrf.mxu0 }
 0x12f   : > { %v1343_v17 = vpop.f32.mrf.mxu3  ;;  %v1255_v18 = vadd.f32 %v1254_v16, %v1166_v15  ;;  %v1167_v20 = vpop.f32.mrf.mxu1 }
 0x130   : > { %v1168_v32 = vadd.f32 %v1167_v20, %v1078_v19  ;;  %v1874_v19 = vld [vmem:[%s2522_s12 + $0x160] sm:$0xf]  ;;  %v2130_v20 = vld [vmem:[%s2522_s12 + $0x16c] sm:$0xf0] }
 0x131   : > { %v1344_v22 = vadd.f32 %v1343_v17, %v1255_v18  ;;  %v399_v17 = vld [vmem:[#allocation2 + $0x50] sm:$0xff]  ;;  %v1875_v31 = vor.u32 %v2130_v20, %v1874_v19  ;;  %v1914_v20 = vld [vmem:[%s2522_s12 + $0x1a8] sm:$0xf] }
 0x132   : > { %v1908_v19 = vld [vmem:[%s2522_s12 + $0x1b0] sm:$0xf0] }
 0x133   : > { %v1423_v25 = vadd.f32 %v1344_v22, %v395_v21  ;;  %v2128_v22 = vld [vmem:[%s2522_s12 + $0x164] sm:$0xf] }
 0x135   : > { %1455 = vst [vmem:[#allocation2 + $0xb0] sm:$0xff] %v1423_v25  ;;  %v2131_v25 = vld [vmem:[%s2522_s12 + $0x174] sm:$0xf0] }
 0x136   : > { %v1256_v33 = vpop.f32.mrf.mxu2  ;;  %v1081_v38 = vpop.f32.mrf.mxu0 }
 0x137   : > { %v1345_v34 = vpop.f32.mrf.mxu3  ;;  %v1257_v37 = vadd.f32 %v1256_v33, %v1168_v32  ;;  %v1170_v39 = vpop.f32.mrf.mxu1  ;;  %v1879_v32 = vor.u32 %v2128_v22, %v1876_v23  ;;  %v2137_v22 = vld [vmem:[%s2522_s12 + $0x1ac] sm:$0xf]  ;;  %v1916_v23 = vld [vmem:[%s2522_s12 + $0x1b8] sm:$0xf0] }
 0x138   : > { %v1171_v45 = vadd.f32 %v1170_v39, %v1081_v38  ;;  %v400_v38 = vld [vmem:[#allocation2 + $0x68] sm:$0xff] }
 0x139   : > { %v1346_v43 = vadd.f32 %v1345_v34, %v1257_v37  ;;  %1120 = vmatmul.bf16.gmra.mxu0 %v1843_v35  ;;  %v1887_v37 = vor.u32 %v2129_v26, %v1884_v27 }
 0x13a   : > { %1209 = vmatmul.bf16.gmra.mxu1 %v1847_v36  ;;  %v1883_v36 = vor.u32 %v2131_v25, %v1882_v24 }
 0x13b   : > { %v1424_v44 = vadd.f32 %v1346_v43, %v396_v42  ;;  %1298 = vmatmul.bf16.gmra.mxu2 %v1851_v40 }
 0x13c   : > { %1387 = vmatmul.bf16.gmra.mxu3 %v1855_v41 }
 0x13d   : > { %1456 = vst [vmem:[#allocation2] sm:$0xff] %v1424_v44 }
 0x13e   : > { %v1259_v46 = vpop.f32.mrf.mxu2  ;;  %v1083_v49 = vpop.f32.mrf.mxu0 }
 0x13f   : > { %v1348_v47 = vpop.f32.mrf.mxu3  ;;  %v1260_v48 = vadd.f32 %v1259_v46, %v1171_v45  ;;  %v1172_v50 = vpop.f32.mrf.mxu1 }
 0x140   : > { %v1173_v62 = vadd.f32 %v1172_v50, %v1083_v49  ;;  %v1890_v49 = vld [vmem:[%s2522_s12 + $0x180] sm:$0xf]  ;;  %v2134_v50 = vld [vmem:[%s2522_s12 + $0x18c] sm:$0xf0] }
 0x141   : > { %v1349_v52 = vadd.f32 %v1348_v47, %v1260_v48  ;;  %v401_v47 = vld [vmem:[#allocation2 + $0x30] sm:$0xff]  ;;  %v1891_v61 = vor.u32 %v2134_v50, %v1890_v49  ;;  %v1930_v50 = vld [vmem:[%s2522_s12 + $0x1c8] sm:$0xf] }
 0x142   : > { %v1924_v49 = vld [vmem:[%s2522_s12 + $0x1d0] sm:$0xf0] }
 0x143   : > { %v1425_v55 = vadd.f32 %v1349_v52, %v397_v51  ;;  %v2132_v52 = vld [vmem:[%s2522_s12 + $0x184] sm:$0xf] }
 0x145   : > { %1457 = vst [vmem:[#allocation2 + $0xd8] sm:$0xff] %v1425_v55  ;;  %v2135_v55 = vld [vmem:[%s2522_s12 + $0x194] sm:$0xf0] }
 0x146   : > { %v1261_v63 = vpop.f32.mrf.mxu2  ;;  %v1086_v4 = vpop.f32.mrf.mxu0 }
 0x147   : > { %v1350_v0 = vpop.f32.mrf.mxu3  ;;  %v1262_v3 = vadd.f32 %v1261_v63, %v1173_v62  ;;  %v1175_v5 = vpop.f32.mrf.mxu1  ;;  %v1895_v62 = vor.u32 %v2132_v52, %v1892_v53  ;;  %v2141_v52 = vld [vmem:[%s2522_s12 + $0x1cc] sm:$0xf]  ;;  %v1932_v53 = vld [vmem:[%s2522_s12 + $0x1d8] sm:$0xf0] }
 0x148   : > { %v1176_v11 = vadd.f32 %v1175_v5, %v1086_v4  ;;  %v402_v4 = vld [vmem:[#allocation2 + $0x48] sm:$0xff] }
 0x149   : > { %v1351_v9 = vadd.f32 %v1350_v0, %v1262_v3  ;;  %1125 = vmatmul.bf16.gmra.mxu0 %v1859_v1  ;;  %v1903_v3 = vor.u32 %v2133_v56, %v1900_v57 }
 0x14a   : > { %1214 = vmatmul.bf16.gmra.mxu1 %v1863_v2  ;;  %v1899_v2 = vor.u32 %v2135_v55, %v1898_v54 }
 0x14b   : > { %v1426_v10 = vadd.f32 %v1351_v9, %v398_v8  ;;  %1303 = vmatmul.bf16.gmra.mxu2 %v1867_v6 }
 0x14c   : > { %1392 = vmatmul.bf16.gmra.mxu3 %v1871_v7 }
 0x14d   : > { %1458 = vst [vmem:[#allocation2 + $0x18] sm:$0xff] %v1426_v10 }
 0x14e   : > { %v1264_v12 = vpop.f32.mrf.mxu2  ;;  %v1088_v15 = vpop.f32.mrf.mxu0 }
 0x14f   : > { %v1353_v13 = vpop.f32.mrf.mxu3  ;;  %v1265_v14 = vadd.f32 %v1264_v12, %v1176_v11  ;;  %v1177_v16 = vpop.f32.mrf.mxu1 }
 0x150   : > { %v1178_v28 = vadd.f32 %v1177_v16, %v1088_v15  ;;  %v1906_v15 = vld [vmem:[%s2522_s12 + $0x1a0] sm:$0xf]  ;;  %v2138_v16 = vld [vmem:[%s2522_s12 + $0x1ac] sm:$0xf0] }
 0x151   : > { %v1354_v18 = vadd.f32 %v1353_v13, %v1265_v14  ;;  %v403_v13 = vld [vmem:[#allocation2 + $0x80] sm:$0xff]  ;;  %v1907_v27 = vor.u32 %v2138_v16, %v1906_v15  ;;  %v1940_v15 = vld [vmem:[%s2522_s12 + $0x1f0] sm:$0xf0]  ;;  %v1946_v16 = vld [vmem:[%s2522_s12 + $0x1e8] sm:$0xf] }
 0x153   : > { %v1427_v21 = vadd.f32 %v1354_v18, %v399_v17  ;;  %v2136_v18 = vld [vmem:[%s2522_s12 + $0x1a4] sm:$0xf] }
 0x155   : > { %1459 = vst [vmem:[#allocation2 + $0x50] sm:$0xff] %v1427_v21  ;;  %v2139_v21 = vld [vmem:[%s2522_s12 + $0x1b4] sm:$0xf0] }
 0x156   : > { %v1266_v29 = vpop.f32.mrf.mxu2  ;;  %v1091_v34 = vpop.f32.mrf.mxu0 }
 0x157   : > { %v1355_v30 = vpop.f32.mrf.mxu3  ;;  %v1267_v33 = vadd.f32 %v1266_v29, %v1178_v28  ;;  %v1180_v35 = vpop.f32.mrf.mxu1  ;;  %v1911_v28 = vor.u32 %v2136_v18, %v1908_v19  ;;  %v2145_v18 = vld [vmem:[%s2522_s12 + $0x1ec] sm:$0xf]  ;;  %v1948_v19 = vld [vmem:[%s2522_s12 + $0x1f8] sm:$0xf0] }
 0x158   : > { %v1181_v41 = vadd.f32 %v1180_v35, %v1091_v34  ;;  %v404_v34 = vld [vmem:[#allocation2 + $0x88] sm:$0xff] }
 0x159   : > { %v1356_v39 = vadd.f32 %v1355_v30, %v1267_v33  ;;  %1130 = vmatmul.bf16.gmra.mxu0 %v1875_v31  ;;  %v1919_v33 = vor.u32 %v2137_v22, %v1916_v23 }
 0x15a   : > { %1219 = vmatmul.bf16.gmra.mxu1 %v1879_v32  ;;  %v1915_v32 = vor.u32 %v2139_v21, %v1914_v20 }
 0x15b   : > { %v1428_v40 = vadd.f32 %v1356_v39, %v400_v38  ;;  %1308 = vmatmul.bf16.gmra.mxu2 %v1883_v36 }
 0x15c   : > { %1397 = vmatmul.bf16.gmra.mxu3 %v1887_v37 }
 0x15d   : > { %1460 = vst [vmem:[#allocation2 + $0x68] sm:$0xff] %v1428_v40 }
 0x15e   : > { %v1269_v42 = vpop.f32.mrf.mxu2  ;;  %v1093_v45 = vpop.f32.mrf.mxu0 }
 0x15f   : > { %v1358_v43 = vpop.f32.mrf.mxu3  ;;  %v1270_v44 = vadd.f32 %v1269_v42, %v1181_v41  ;;  %v1182_v46 = vpop.f32.mrf.mxu1 }
 0x160   : > { %v1183_v58 = vadd.f32 %v1182_v46, %v1093_v45  ;;  %v1922_v45 = vld [vmem:[%s2522_s12 + $0x1c0] sm:$0xf]  ;;  %v2142_v46 = vld [vmem:[%s2522_s12 + $0x1cc] sm:$0xf0] }
 0x161   : > { %v1359_v48 = vadd.f32 %v1358_v43, %v1270_v44  ;;  %v405_v43 = vld [vmem:[#allocation2 + $0xe8] sm:$0xff]  ;;  %v1923_v57 = vor.u32 %v2142_v46, %v1922_v45 }
 0x163   : > { %v1429_v51 = vadd.f32 %v1359_v48, %v401_v47  ;;  %v2140_v48 = vld [vmem:[%s2522_s12 + $0x1c4] sm:$0xf] }
 0x165   : > { %1461 = vst [vmem:[#allocation2 + $0x30] sm:$0xff] %v1429_v51  ;;  %v2143_v51 = vld [vmem:[%s2522_s12 + $0x1d4] sm:$0xf0] }
 0x166   : > { %v1271_v59 = vpop.f32.mrf.mxu2  ;;  %v1096_v0 = vpop.f32.mrf.mxu0 }
 0x167   : > { %v1360_v60 = vpop.f32.mrf.mxu3  ;;  %v1272_v63 = vadd.f32 %v1271_v59, %v1183_v58  ;;  %v1185_v1 = vpop.f32.mrf.mxu1  ;;  %v1927_v58 = vor.u32 %v2140_v48, %v1924_v49  ;;  %v410_v48 = vld [vmem:[#allocation2 + $0x78] sm:$0xff] }
 0x168   : > { %v1186_v7 = vadd.f32 %v1185_v1, %v1096_v0  ;;  %v406_v0 = vld [vmem:[#allocation2 + $0xb8] sm:$0xff] }
 0x169   : > { %v1361_v5 = vadd.f32 %v1360_v60, %v1272_v63  ;;  %1135 = vmatmul.bf16.gmra.mxu0 %v1891_v61  ;;  %v1935_v63 = vor.u32 %v2141_v52, %v1932_v53 }
 0x16a   : > { %1224 = vmatmul.bf16.gmra.mxu1 %v1895_v62  ;;  %v1931_v62 = vor.u32 %v2143_v51, %v1930_v50 }
 0x16b   : > { %v1430_v6 = vadd.f32 %v1361_v5, %v402_v4  ;;  %1313 = vmatmul.bf16.gmra.mxu2 %v1899_v2 }
 0x16c   : > { %1402 = vmatmul.bf16.gmra.mxu3 %v1903_v3 }
 0x16d   : > { %1462 = vst [vmem:[#allocation2 + $0x48] sm:$0xff] %v1430_v6 }
 0x16e   : > { %v1274_v8 = vpop.f32.mrf.mxu2  ;;  %v1098_v11 = vpop.f32.mrf.mxu0 }
 0x16f   : > { %v1363_v9 = vpop.f32.mrf.mxu3  ;;  %v1275_v10 = vadd.f32 %v1274_v8, %v1186_v7  ;;  %v1187_v12 = vpop.f32.mrf.mxu1 }
 0x170   : > { %v1188_v24 = vadd.f32 %v1187_v12, %v1098_v11  ;;  %v1938_v11 = vld [vmem:[%s2522_s12 + $0x1e0] sm:$0xf]  ;;  %v2146_v12 = vld [vmem:[%s2522_s12 + $0x1ec] sm:$0xf0] }
 0x171   : > { %v1364_v14 = vadd.f32 %v1363_v9, %v1275_v10  ;;  %v407_v9 = vld [vmem:[#allocation2 + $0x60] sm:$0xff]  ;;  %v1939_v23 = vor.u32 %v2146_v12, %v1938_v11 }
 0x172   : > { %v413_v11 = vld [vmem:[#allocation2 + $0x40] sm:$0xff] }
 0x173   : > { %v1431_v17 = vadd.f32 %v1364_v14, %v403_v13  ;;  %v2144_v14 = vld [vmem:[%s2522_s12 + $0x1e4] sm:$0xf] }
 0x175   : > { %1463 = vst [vmem:[#allocation2 + $0x80] sm:$0xff] %v1431_v17  ;;  %v2147_v17 = vld [vmem:[%s2522_s12 + $0x1f4] sm:$0xf0] }
 0x176   : > { %v1276_v25 = vpop.f32.mrf.mxu2  ;;  %v1101_v30 = vpop.f32.mrf.mxu0 }
 0x177   : > { %v1365_v26 = vpop.f32.mrf.mxu3  ;;  %v1277_v29 = vadd.f32 %v1276_v25, %v1188_v24  ;;  %v1190_v31 = vpop.f32.mrf.mxu1  ;;  %v1943_v24 = vor.u32 %v2144_v14, %v1940_v15 }
 0x178   : > { %v1191_v37 = vadd.f32 %v1190_v31, %v1101_v30  ;;  %v408_v30 = vld [vmem:[#allocation2 + $0xf0] sm:$0xff] }
 0x179   : > { %v1366_v35 = vadd.f32 %v1365_v26, %v1277_v29  ;;  %1140 = vmatmul.bf16.gmra.mxu0 %v1907_v27  ;;  %v1951_v29 = vor.u32 %v2145_v18, %v1948_v19 }
 0x17a   : > { %1229 = vmatmul.bf16.gmra.mxu1 %v1911_v28  ;;  %v1947_v28 = vor.u32 %v2147_v17, %v1946_v16 }
 0x17b   : > { %v1432_v36 = vadd.f32 %v1366_v35, %v404_v34  ;;  %1318 = vmatmul.bf16.gmra.mxu2 %v1915_v32 }
 0x17c   : > { %1407 = vmatmul.bf16.gmra.mxu3 %v1919_v33 }
 0x17d   : > { %1464 = vst [vmem:[#allocation2 + $0x88] sm:$0xff] %v1432_v36 }
 0x17e   : > { %v1279_v38 = vpop.f32.mrf.mxu2  ;;  %v1103_v41 = vpop.f32.mrf.mxu0 }
 0x17f   : > { %v1368_v39 = vpop.f32.mrf.mxu3  ;;  %v1280_v40 = vadd.f32 %v1279_v38, %v1191_v37  ;;  %v1192_v42 = vpop.f32.mrf.mxu1 }
 0x180   : > { %v1193_v54 = vadd.f32 %v1192_v42, %v1103_v41 }
 0x181   : > { %v1369_v44 = vadd.f32 %v1368_v39, %v1280_v40  ;;  %v409_v39 = vld [vmem:[#allocation2 + $0x8] sm:$0xff] }
 0x183   : > { %v1433_v47 = vadd.f32 %v1369_v44, %v405_v43 }
 0x185   : > { %1465 = vst [vmem:[#allocation2 + $0xe8] sm:$0xff] %v1433_v47 }
 0x186   : > { %v1281_v55 = vpop.f32.mrf.mxu2  ;;  %v1106_v60 = vpop.f32.mrf.mxu0 }
 0x187   : > { %v1370_v56 = vpop.f32.mrf.mxu3  ;;  %v1282_v59 = vadd.f32 %v1281_v55, %v1193_v54  ;;  %v1195_v61 = vpop.f32.mrf.mxu1 }
 0x188   : > { %v1196_v3 = vadd.f32 %v1195_v61, %v1106_v60 }
 0x189   : > { %v1371_v1 = vadd.f32 %v1370_v56, %v1282_v59  ;;  %1145 = vmatmul.bf16.gmra.mxu0 %v1923_v57  ;;  %v411_v57 = vld [vmem:[#allocation2 + $0x38] sm:$0xff] }
 0x18a   : > { %1234 = vmatmul.bf16.gmra.mxu1 %v1927_v58 }
 0x18b   : > { %v1434_v2 = vadd.f32 %v1371_v1, %v406_v0  ;;  %1323 = vmatmul.bf16.gmra.mxu2 %v1931_v62 }
 0x18c   : > { %1412 = vmatmul.bf16.gmra.mxu3 %v1935_v63 }
 0x18d   : > { %1466 = vst [vmem:[#allocation2 + $0xb8] sm:$0xff] %v1434_v2  ;;  %v412_v2 = vld [vmem:[#allocation2 + $0x58] sm:$0xff] }
 0x18e   : > { %v1284_v4 = vpop.f32.mrf.mxu2  ;;  %v1108_v7 = vpop.f32.mrf.mxu0 }
 0x18f   : > { %v1373_v5 = vpop.f32.mrf.mxu3  ;;  %v1285_v6 = vadd.f32 %v1284_v4, %v1196_v3  ;;  %v1197_v8 = vpop.f32.mrf.mxu1 }
 0x190   : > { %v1198_v20 = vadd.f32 %v1197_v8, %v1108_v7 }
 0x191   : > { %v1374_v10 = vadd.f32 %v1373_v5, %v1285_v6 }
 0x193   : > { %v1435_v13 = vadd.f32 %v1374_v10, %v407_v9 }
 0x195   : > { %1467 = vst [vmem:[#allocation2 + $0x60] sm:$0xff] %v1435_v13 }
 0x196   : > { %v1286_v21 = vpop.f32.mrf.mxu2  ;;  %v1111_v26 = vpop.f32.mrf.mxu0 }
 0x197   : > { %v1375_v22 = vpop.f32.mrf.mxu3  ;;  %v1287_v25 = vadd.f32 %v1286_v21, %v1198_v20  ;;  %v1200_v27 = vpop.f32.mrf.mxu1  ;;  %v414_v20 = vld [vmem:[#allocation2 + $0xc8] sm:$0xff] }
 0x198   : > { %v1201_v33 = vadd.f32 %v1200_v27, %v1111_v26 }
 0x199   : > { %v1376_v31 = vadd.f32 %v1375_v22, %v1287_v25  ;;  %1150 = vmatmul.bf16.gmra.mxu0 %v1939_v23 }
 0x19a   : > { %1239 = vmatmul.bf16.gmra.mxu1 %v1943_v24 }
 0x19b   : > { %v1436_v32 = vadd.f32 %v1376_v31, %v408_v30  ;;  %1328 = vmatmul.bf16.gmra.mxu2 %v1947_v28 }
 0x19c   : > { %1417 = vmatmul.bf16.gmra.mxu3 %v1951_v29  ;;  %v415_v29 = vld [vmem:[#allocation2 + $0xe0] sm:$0xff] }
 0x19d   : > { %1468 = vst [vmem:[#allocation2 + $0xf0] sm:$0xff] %v1436_v32 }
 0x19e   : > { %v1289_v34 = vpop.f32.mrf.mxu2  ;;  %v1113_v37 = vpop.f32.mrf.mxu0 }
 0x19f   : > { %v1378_v35 = vpop.f32.mrf.mxu3  ;;  %v1290_v36 = vadd.f32 %v1289_v34, %v1201_v33  ;;  %v1202_v38 = vpop.f32.mrf.mxu1 }
 0x1a0   : > { %v1203_v42 = vadd.f32 %v1202_v38, %v1113_v37  ;;  %v416_v38 = vld [vmem:[#allocation2 + $0x90] sm:$0xff] }
 0x1a1   : > { %v1379_v40 = vadd.f32 %v1378_v35, %v1290_v36 }
 0x1a3   : > { %v1437_v41 = vadd.f32 %v1379_v40, %v409_v39 }
 0x1a5   : > { %1469 = vst [vmem:[#allocation2 + $0x8] sm:$0xff] %v1437_v41 }
 0x1a6   : > { %v1291_v43 = vpop.f32.mrf.mxu2  ;;  %v1116_v46 = vpop.f32.mrf.mxu0 }
 0x1a7   : > { %v1380_v44 = vpop.f32.mrf.mxu3  ;;  %v1292_v45 = vadd.f32 %v1291_v43, %v1203_v42  ;;  %v1205_v47 = vpop.f32.mrf.mxu1 }
 0x1a8   : > { %v1206_v51 = vadd.f32 %v1205_v47, %v1116_v46  ;;  %v417_v47 = vld [vmem:[#allocation2 + $0x70] sm:$0xff] }
 0x1a9   : > { %v1381_v49 = vadd.f32 %v1380_v44, %v1292_v45 }
 0x1ab   : > { %v1438_v50 = vadd.f32 %v1381_v49, %v410_v48 }
 0x1ad   : > { %1470 = vst [vmem:[#allocation2 + $0x78] sm:$0xff] %v1438_v50 }
 0x1ae   : > { %v1294_v52 = vpop.f32.mrf.mxu2  ;;  %v1118_v55 = vpop.f32.mrf.mxu0 }
 0x1af   : > { %v1383_v53 = vpop.f32.mrf.mxu3  ;;  %v1295_v54 = vadd.f32 %v1294_v52, %v1206_v51  ;;  %v1207_v56 = vpop.f32.mrf.mxu1 }
 0x1b0   : > { %v1208_v60 = vadd.f32 %v1207_v56, %v1118_v55  ;;  %v418_v56 = vld [vmem:[#allocation2 + $0xc0] sm:$0xff] }
 0x1b1   : > { %v1384_v58 = vadd.f32 %v1383_v53, %v1295_v54 }
 0x1b3   : > { %v1439_v59 = vadd.f32 %v1384_v58, %v411_v57 }
 0x1b5   : > { %1471 = vst [vmem:[#allocation2 + $0x38] sm:$0xff] %v1439_v59 }
 0x1b6   : > { %v1296_v61 = vpop.f32.mrf.mxu2  ;;  %v1121_v0 = vpop.f32.mrf.mxu0 }
 0x1b7   : > { %v1385_v62 = vpop.f32.mrf.mxu3  ;;  %v1297_v63 = vadd.f32 %v1296_v61, %v1208_v60  ;;  %v1210_v1 = vpop.f32.mrf.mxu1 }
 0x1b8   : > { %v1211_v5 = vadd.f32 %v1210_v1, %v1121_v0  ;;  %v419_v1 = vld [vmem:[#allocation2 + $0xa8] sm:$0xff] }
 0x1b9   : > { %v1386_v3 = vadd.f32 %v1385_v62, %v1297_v63 }
 0x1bb   : > { %v1440_v4 = vadd.f32 %v1386_v3, %v412_v2 }
 0x1bd   : > { %1472 = vst [vmem:[#allocation2 + $0x58] sm:$0xff] %v1440_v4 }
 0x1be   : > { %v1299_v6 = vpop.f32.mrf.mxu2  ;;  %v1123_v9 = vpop.f32.mrf.mxu0 }
 0x1bf   : > { %v1388_v7 = vpop.f32.mrf.mxu3  ;;  %v1300_v8 = vadd.f32 %v1299_v6, %v1211_v5  ;;  %v1212_v10 = vpop.f32.mrf.mxu1 }
 0x1c0   : > { %v1213_v14 = vadd.f32 %v1212_v10, %v1123_v9  ;;  %v420_v10 = vld [vmem:[#allocation2 + $0xd0] sm:$0xff] }
 0x1c1   : > { %v1389_v12 = vadd.f32 %v1388_v7, %v1300_v8 }
 0x1c3   : > { %v1441_v13 = vadd.f32 %v1389_v12, %v413_v11 }
 0x1c5   : > { %1473 = vst [vmem:[#allocation2 + $0x40] sm:$0xff] %v1441_v13 }
 0x1c6   : > { %v1301_v15 = vpop.f32.mrf.mxu2  ;;  %v1126_v18 = vpop.f32.mrf.mxu0 }
 0x1c7   : > { %v1390_v16 = vpop.f32.mrf.mxu3  ;;  %v1302_v17 = vadd.f32 %v1301_v15, %v1213_v14  ;;  %v1215_v19 = vpop.f32.mrf.mxu1 }
 0x1c8   : > { %v1216_v23 = vadd.f32 %v1215_v19, %v1126_v18  ;;  %v421_v19 = vld [vmem:[#allocation2 + $0x10] sm:$0xff] }
 0x1c9   : > { %v1391_v21 = vadd.f32 %v1390_v16, %v1302_v17 }
 0x1cb   : > { %v1442_v22 = vadd.f32 %v1391_v21, %v414_v20 }
 0x1cd   : > { %1474 = vst [vmem:[#allocation2 + $0xc8] sm:$0xff] %v1442_v22 }
 0x1ce   : > { %v1304_v24 = vpop.f32.mrf.mxu2  ;;  %v1128_v27 = vpop.f32.mrf.mxu0 }
 0x1cf   : > { %v1393_v25 = vpop.f32.mrf.mxu3  ;;  %v1305_v26 = vadd.f32 %v1304_v24, %v1216_v23  ;;  %v1217_v28 = vpop.f32.mrf.mxu1 }
 0x1d0   : > { %v1218_v32 = vadd.f32 %v1217_v28, %v1128_v27  ;;  %v422_v28 = vld [vmem:[#allocation2 + $0x28] sm:$0xff] }
 0x1d1   : > { %v1394_v30 = vadd.f32 %v1393_v25, %v1305_v26 }
 0x1d3   : > { %v1443_v31 = vadd.f32 %v1394_v30, %v415_v29 }
 0x1d5   : > { %1475 = vst [vmem:[#allocation2 + $0xe0] sm:$0xff] %v1443_v31 }
 0x1d6   : > { %v1306_v33 = vpop.f32.mrf.mxu2  ;;  %v1131_v36 = vpop.f32.mrf.mxu0 }
 0x1d7   : > { %v1395_v34 = vpop.f32.mrf.mxu3  ;;  %v1307_v35 = vadd.f32 %v1306_v33, %v1218_v32  ;;  %v1220_v37 = vpop.f32.mrf.mxu1 }
 0x1d8   : > { %v1221_v41 = vadd.f32 %v1220_v37, %v1131_v36  ;;  %v423_v37 = vld [vmem:[#allocation2 + $0xa0] sm:$0xff] }
 0x1d9   : > { %v1396_v39 = vadd.f32 %v1395_v34, %v1307_v35 }
 0x1db   : > { %v1444_v40 = vadd.f32 %v1396_v39, %v416_v38 }
 0x1dd   : > { %1476 = vst [vmem:[#allocation2 + $0x90] sm:$0xff] %v1444_v40 }
 0x1de   : > { %v1309_v42 = vpop.f32.mrf.mxu2  ;;  %v1133_v45 = vpop.f32.mrf.mxu0 }
 0x1df   : > { %v1398_v43 = vpop.f32.mrf.mxu3  ;;  %v1310_v44 = vadd.f32 %v1309_v42, %v1221_v41  ;;  %v1222_v46 = vpop.f32.mrf.mxu1 }
 0x1e0   : > { %v1223_v50 = vadd.f32 %v1222_v46, %v1133_v45 }
 0x1e1   : > { %v1399_v48 = vadd.f32 %v1398_v43, %v1310_v44  ;;  %v424_v44 = vld [vmem:[#allocation2 + $0xf8] sm:$0xff] }
 0x1e3   : > { %v1445_v49 = vadd.f32 %v1399_v48, %v417_v47 }
 0x1e5   : > { %1477 = vst [vmem:[#allocation2 + $0x70] sm:$0xff] %v1445_v49 }
 0x1e6   : > { %v1311_v51 = vpop.f32.mrf.mxu2  ;;  %v1136_v54 = vpop.f32.mrf.mxu0 }
 0x1e7   : > { %v1400_v52 = vpop.f32.mrf.mxu3  ;;  %v1312_v53 = vadd.f32 %v1311_v51, %v1223_v50  ;;  %v1225_v55 = vpop.f32.mrf.mxu1 }
 0x1e8   : > { %v1226_v59 = vadd.f32 %v1225_v55, %v1136_v54 }
 0x1e9   : > { %v1401_v57 = vadd.f32 %v1400_v52, %v1312_v53  ;;  %v425_v53 = vld [vmem:[#allocation2 + $0x20] sm:$0xff] }
 0x1eb   : > { %v1446_v58 = vadd.f32 %v1401_v57, %v418_v56 }
 0x1ed   : > { %1478 = vst [vmem:[#allocation2 + $0xc0] sm:$0xff] %v1446_v58 }
 0x1ee   : > { %v1314_v60 = vpop.f32.mrf.mxu2  ;;  %v1138_v63 = vpop.f32.mrf.mxu0 }
 0x1ef   : > { %v1403_v61 = vpop.f32.mrf.mxu3  ;;  %v1315_v62 = vadd.f32 %v1314_v60, %v1226_v59  ;;  %v1227_v0 = vpop.f32.mrf.mxu1 }
 0x1f0   : > { %v1228_v4 = vadd.f32 %v1227_v0, %v1138_v63 }
 0x1f1   : > { %v1404_v2 = vadd.f32 %v1403_v61, %v1315_v62  ;;  %v426_v61 = vld [vmem:[#allocation2 + $0x98] sm:$0xff] }
 0x1f3   : > { %v1447_v3 = vadd.f32 %v1404_v2, %v419_v1 }
 0x1f5   : > { %1479 = vst [vmem:[#allocation2 + $0xa8] sm:$0xff] %v1447_v3 }
 0x1f6   : > { %v1316_v5 = vpop.f32.mrf.mxu2  ;;  %v1141_v8 = vpop.f32.mrf.mxu0 }
 0x1f7   : > { %v1405_v6 = vpop.f32.mrf.mxu3  ;;  %v1317_v7 = vadd.f32 %v1316_v5, %v1228_v4  ;;  %v1230_v9 = vpop.f32.mrf.mxu1 }
 0x1f8   : > { %v1231_v13 = vadd.f32 %v1230_v9, %v1141_v8 }
 0x1f9   : > { %v1406_v11 = vadd.f32 %v1405_v6, %v1317_v7 }
 0x1fb   : > { %v1448_v12 = vadd.f32 %v1406_v11, %v420_v10 }
 0x1fd   : > { %1480 = vst [vmem:[#allocation2 + $0xd0] sm:$0xff] %v1448_v12 }
 0x1fe   : > { %v1319_v14 = vpop.f32.mrf.mxu2  ;;  %v1143_v17 = vpop.f32.mrf.mxu0 }
 0x1ff   : > { %v1408_v15 = vpop.f32.mrf.mxu3  ;;  %v1320_v16 = vadd.f32 %v1319_v14, %v1231_v13  ;;  %v1232_v18 = vpop.f32.mrf.mxu1 }
 0x200   : > { %v1233_v22 = vadd.f32 %v1232_v18, %v1143_v17 }
 0x201   : > { %v1409_v20 = vadd.f32 %v1408_v15, %v1320_v16 }
 0x203   : > { %v1449_v21 = vadd.f32 %v1409_v20, %v421_v19 }
 0x205   : > { %1481 = vst [vmem:[#allocation2 + $0x10] sm:$0xff] %v1449_v21 }
 0x206   : > { %v1321_v23 = vpop.f32.mrf.mxu2  ;;  %v1146_v26 = vpop.f32.mrf.mxu0 }
 0x207   : > { %v1410_v24 = vpop.f32.mrf.mxu3  ;;  %v1322_v25 = vadd.f32 %v1321_v23, %v1233_v22  ;;  %v1235_v27 = vpop.f32.mrf.mxu1 }
 0x208   : > { %v1236_v31 = vadd.f32 %v1235_v27, %v1146_v26 }
 0x209   : > { %v1411_v29 = vadd.f32 %v1410_v24, %v1322_v25 }
 0x20b   : > { %v1450_v30 = vadd.f32 %v1411_v29, %v422_v28 }
 0x20d   : > { %1482 = vst [vmem:[#allocation2 + $0x28] sm:$0xff] %v1450_v30 }
 0x20e   : > { %v1324_v32 = vpop.f32.mrf.mxu2  ;;  %v1148_v35 = vpop.f32.mrf.mxu0 }
 0x20f   : > { %v1413_v33 = vpop.f32.mrf.mxu3  ;;  %v1325_v34 = vadd.f32 %v1324_v32, %v1236_v31  ;;  %v1237_v36 = vpop.f32.mrf.mxu1 }
 0x210   : > { %v1238_v40 = vadd.f32 %v1237_v36, %v1148_v35 }
 0x211   : > { %v1414_v38 = vadd.f32 %v1413_v33, %v1325_v34 }
 0x213   : > { %v1451_v39 = vadd.f32 %v1414_v38, %v423_v37 }
 0x215   : > { %1483 = vst [vmem:[#allocation2 + $0xa0] sm:$0xff] %v1451_v39 }
 0x216   : > { %v1326_v41 = vpop.f32.mrf.mxu2  ;;  %v1151_v45 = vpop.f32.mrf.mxu0 }
 0x217   : > { %v1415_v42 = vpop.f32.mrf.mxu3  ;;  %v1327_v43 = vadd.f32 %v1326_v41, %v1238_v40  ;;  %v1240_v46 = vpop.f32.mrf.mxu1 }
 0x218   : > { %v1241_v49 = vadd.f32 %v1240_v46, %v1151_v45 }
 0x219   : > { %v1416_v47 = vadd.f32 %v1415_v42, %v1327_v43 }
 0x21b   : > { %v1452_v48 = vadd.f32 %v1416_v47, %v424_v44 }
 0x21d   : > { %1484 = vst [vmem:[#allocation2 + $0xf8] sm:$0xff] %v1452_v48 }
 0x21e   : > { %v1329_v50 = vpop.f32.mrf.mxu2  ;;  %v1153_v55 = vpop.f32.mrf.mxu0 }
 0x21f   : > { %v1418_v51 = vpop.f32.mrf.mxu3  ;;  %v1330_v52 = vadd.f32 %v1329_v50, %v1241_v49  ;;  %v1242_v56 = vpop.f32.mrf.mxu1 }
 0x220   : > { %v1243_v58 = vadd.f32 %v1242_v56, %v1153_v55 }
 0x221   : > { %v1419_v54 = vadd.f32 %v1418_v51, %v1330_v52 }
 0x223   : > { %v1453_v57 = vadd.f32 %v1419_v54, %v425_v53 }
 0x225   : > { %1485 = vst [vmem:[#allocation2 + $0x20] sm:$0xff] %v1453_v57 }
 0x226   : > { %v1331_v59 = vpop.f32.mrf.mxu2 }
 0x227   : > { %v1332_v60 = vadd.f32 %v1331_v59, %v1243_v58  ;;  %v1420_v62 = vpop.f32.mrf.mxu3 }
 0x229   : > { %v1421_v63 = vadd.f32 %v1420_v62, %v1332_v60  ;;  %1490 = sbr.rel (%p2080_p13) target bundleno = 593 (0x251), region = 63 }
 0x22b   : > { %v1454_v0 = vadd.f32 %v1421_v63, %v426_v61 }
 0x22d   : > { %1486 = vst [vmem:[#allocation2 + $0x98] sm:$0xff] %v1454_v0 }
 0x22e   : > { %v1491_v1 = vld [vmem:[#allocation2 + $0xb0] sm:$0xff]  ;;  %v2689_v2 = vld [vmem:[%s2778_s2] ss:$0 sm:$0xff]  ;;  %v1493_v4 = vld [vmem:[#allocation2 + $0xd8] sm:$0xff] }
 0x22f   : > { %v1492_v3 = vld [vmem:[#allocation2] sm:$0xff]  ;;  %v1494_v5 = vld [vmem:[#allocation2 + $0x18] sm:$0xff]  ;;  %v1527_v6 = vadd.f32 %v2689_v2, %v1491_v1  ;;  %v1529_v8 = vadd.f32 %v2689_v2, %v1493_v4  ;;  %v1495_v9 = vld [vmem:[#allocation2 + $0x50] sm:$0xff] }
 0x230   : > { %v1528_v7 = vadd.f32 %v2689_v2, %v1492_v3  ;;  %v1496_v10 = vld [vmem:[#allocation2 + $0x68] sm:$0xff]  ;;  %v1530_v11 = vadd.f32 %v2689_v2, %v1494_v5  ;;  %v1497_v12 = vld [vmem:[#allocation2 + $0x30] sm:$0xff]  ;;  %v1531_v13 = vadd.f32 %v2689_v2, %v1495_v9  ;;  %v1499_v16 = vld [vmem:[#allocation2 + $0x80] sm:$0xff] }
 0x231   : > { %1559 = vst [vmem:[%s2520_s30] sm:$0xff] %v1527_v6  ;;  %v1498_v14 = vld [vmem:[#allocation2 + $0x48] sm:$0xff]  ;;  %v1532_v15 = vadd.f32 %v2689_v2, %v1496_v10  ;;  %v1533_v17 = vadd.f32 %v2689_v2, %v1497_v12  ;;  %v1535_v21 = vadd.f32 %v2689_v2, %v1499_v16  ;;  %v1502_v22 = vld [vmem:[#allocation2 + $0xb8] sm:$0xff]  ;;  %v1503_v24 = vld [vmem:[#allocation2 + $0x60] sm:$0xff] }
 0x232   : > { %1560 = vst [vmem:[%s2520_s30 + $0x8] sm:$0xff] %v1528_v7  ;;  %v1500_v18 = vld [vmem:[#allocation2 + $0x88] sm:$0xff]  ;;  %v1534_v19 = vadd.f32 %v2689_v2, %v1498_v14  ;;  %v1504_v26 = vld [vmem:[#allocation2 + $0xf0] sm:$0xff]  ;;  %v1538_v27 = vadd.f32 %v2689_v2, %v1502_v22  ;;  %v1539_v29 = vadd.f32 %v2689_v2, %v1503_v24  ;;  %v1506_v30 = vld [vmem:[#allocation2 + $0x78] sm:$0xff] }
 0x233   : > { %1561 = vst [vmem:[%s2520_s30 + $0x10] sm:$0xff] %v1529_v8  ;;  %v1501_v20 = vld [vmem:[#allocation2 + $0xe8] sm:$0xff]  ;;  %v1536_v23 = vadd.f32 %v2689_v2, %v1500_v18  ;;  %v1540_v31 = vadd.f32 %v2689_v2, %v1504_v26  ;;  %v1507_v32 = vld [vmem:[#allocation2 + $0x38] sm:$0xff]  ;;  %v1542_v35 = vadd.f32 %v2689_v2, %v1506_v30  ;;  %v1509_v36 = vld [vmem:[#allocation2 + $0x40] sm:$0xff] }
 0x234   : > { %1562 = vst [vmem:[%s2520_s30 + $0x18] sm:$0xff] %v1530_v11  ;;  %v1537_v25 = vadd.f32 %v2689_v2, %v1501_v20  ;;  %v1505_v28 = vld [vmem:[#allocation2 + $0x8] sm:$0xff]  ;;  %v1508_v34 = vld [vmem:[#allocation2 + $0x58] sm:$0xff]  ;;  %v1543_v37 = vadd.f32 %v2689_v2, %v1507_v32  ;;  %v1511_v40 = vld [vmem:[#allocation2 + $0xe0] sm:$0xff]  ;;  %v1545_v41 = vadd.f32 %v2689_v2, %v1509_v36 }
 0x235   : > { %1563 = vst [vmem:[%s2520_s30 + $0x20] sm:$0xff] %v1531_v13  ;;  %v1541_v33 = vadd.f32 %v2689_v2, %v1505_v28  ;;  %v1510_v38 = vld [vmem:[#allocation2 + $0xc8] sm:$0xff]  ;;  %v1544_v39 = vadd.f32 %v2689_v2, %v1508_v34  ;;  %v1512_v42 = vld [vmem:[#allocation2 + $0x90] sm:$0xff]  ;;  %v1547_v45 = vadd.f32 %v2689_v2, %v1511_v40  ;;  %v1514_v46 = vld [vmem:[#allocation2 + $0xc0] sm:$0xff] }
 0x236   : > { %1564 = vst [vmem:[%s2520_s30 + $0x28] sm:$0xff] %v1532_v15  ;;  %v1546_v43 = vadd.f32 %v2689_v2, %v1510_v38  ;;  %v1513_v44 = vld [vmem:[#allocation2 + $0x70] sm:$0xff]  ;;  %v1548_v47 = vadd.f32 %v2689_v2, %v1512_v42  ;;  %v1515_v48 = vld [vmem:[#allocation2 + $0xa8] sm:$0xff]  ;;  %v1550_v51 = vadd.f32 %v2689_v2, %v1514_v46  ;;  %v1519_v56 = vld [vmem:[#allocation2 + $0xa0] sm:$0xff] }
 0x237   : > { %1565 = vst [vmem:[%s2520_s30 + $0x30] sm:$0xff] %v1533_v17  ;;  %v1549_v49 = vadd.f32 %v2689_v2, %v1513_v44  ;;  %v1516_v50 = vld [vmem:[#allocation2 + $0xd0] sm:$0xff]  ;;  %v1551_v53 = vadd.f32 %v2689_v2, %v1515_v48  ;;  %v1518_v54 = vld [vmem:[#allocation2 + $0x28] sm:$0xff]  ;;  %v1520_v58 = vld [vmem:[#allocation2 + $0xf8] sm:$0xff]  ;;  %v1555_v61 = vadd.f32 %v2689_v2, %v1519_v56 }
 0x238   : > { %1566 = vst [vmem:[%s2520_s30 + $0x38] sm:$0xff] %v1534_v19  ;;  %v1517_v52 = vld [vmem:[#allocation2 + $0x10] sm:$0xff]  ;;  %v1552_v55 = vadd.f32 %v2689_v2, %v1516_v50  ;;  %v1554_v59 = vadd.f32 %v2689_v2, %v1518_v54  ;;  %v1521_v60 = vld [vmem:[#allocation2 + $0x20] sm:$0xff]  ;;  %v1522_v62 = vld [vmem:[#allocation2 + $0x98] sm:$0xff]  ;;  %v1556_v63 = vadd.f32 %v2689_v2, %v1520_v58 }
 0x239   : > { %1567 = vst [vmem:[%s2520_s30 + $0x40] sm:$0xff] %v1535_v21  ;;  %v1553_v57 = vadd.f32 %v2689_v2, %v1517_v52  ;;  %v1557_v0 = vadd.f32 %v2689_v2, %v1521_v60  ;;  %v1558_v1 = vadd.f32 %v2689_v2, %v1522_v62 }
 0x23a   : > { %1568 = vst [vmem:[%s2520_s30 + $0x48] sm:$0xff] %v1536_v23 }
 0x23b   : > { %1569 = vst [vmem:[%s2520_s30 + $0x50] sm:$0xff] %v1537_v25 }
 0x23c   : > { %1570 = vst [vmem:[%s2520_s30 + $0x58] sm:$0xff] %v1538_v27 }
 0x23d   : > { %1571 = vst [vmem:[%s2520_s30 + $0x60] sm:$0xff] %v1539_v29 }
 0x23e   : > { %1572 = vst [vmem:[%s2520_s30 + $0x68] sm:$0xff] %v1540_v31 }
 0x23f   : > { %1573 = vst [vmem:[%s2520_s30 + $0x70] sm:$0xff] %v1541_v33 }
 0x240   : > { %1574 = vst [vmem:[%s2520_s30 + $0x78] sm:$0xff] %v1542_v35 }
 0x241   : > { %1575 = vst [vmem:[%s2520_s30 + $0x80] sm:$0xff] %v1543_v37 }
 0x242   : > { %1576 = vst [vmem:[%s2520_s30 + $0x88] sm:$0xff] %v1544_v39 }
 0x243   : > { %1577 = vst [vmem:[%s2520_s30 + $0x90] sm:$0xff] %v1545_v41 }
 0x244   : > { %1578 = vst [vmem:[%s2520_s30 + $0x98] sm:$0xff] %v1546_v43 }
 0x245   : > { %1579 = vst [vmem:[%s2520_s30 + $0xa0] sm:$0xff] %v1547_v45 }
 0x246   : > { %1580 = vst [vmem:[%s2520_s30 + $0xa8] sm:$0xff] %v1548_v47 }
 0x247   : > { %1581 = vst [vmem:[%s2520_s30 + $0xb0] sm:$0xff] %v1549_v49 }
 0x248   : > { %1582 = vst [vmem:[%s2520_s30 + $0xb8] sm:$0xff] %v1550_v51 }
 0x249   : > { %1583 = vst [vmem:[%s2520_s30 + $0xc0] sm:$0xff] %v1551_v53 }
 0x24a   : > { %1584 = vst [vmem:[%s2520_s30 + $0xc8] sm:$0xff] %v1552_v55 }
 0x24b   : > { %1585 = vst [vmem:[%s2520_s30 + $0xd0] sm:$0xff] %v1553_v57 }
 0x24c   : > { %1586 = vst [vmem:[%s2520_s30 + $0xd8] sm:$0xff] %v1554_v59 }
 0x24d   : > { %1587 = vst [vmem:[%s2520_s30 + $0xe0] sm:$0xff] %v1555_v61 }
 0x24e   : > { %1588 = vst [vmem:[%s2520_s30 + $0xe8] sm:$0xff] %v1556_v63 }
 0x24f   : > { %1589 = vst [vmem:[%s2520_s30 + $0xf0] sm:$0xff] %v1557_v0 }
 0x250   : > { %1590 = vst [vmem:[%s2520_s30 + $0xf8] sm:$0xff] %v1558_v1 }
 0x251 PF: > { %s13_s18 = sadd.s32 1, %s2292_s18   ;;  %s2780_s12 = smov %s2272_s13 }
 0x252   : > { %p10_p0 = scmp.ge.s32.totalorder %s13_s18, 10   ;;  %s2781_s13 = smov %s2366_s25 }
 0x253   : > { %s2782_s14 = smov %s2284_s16  ;;  %s2783_s15 = smov %s2288_s17 }
 0x254   : > { %s2784_s16 = smov %s2787_s19  ;;  %s2785_s17 = smov %s2791_s20 }
 0x255   :  { %12 = sbr.rel (!%p10_p0) target bundleno = 4 (0x4), region = 101 }

</bundles_post_ra>
